<compile_context>
chip_gen: v5e
topology: v5e:2x2
jax: 0.10.0
libtpu: 0.0.40
codegen_flags: <defaults>
</compile_context>

<pallas_src>
import functools

import jax
import jax.numpy as jnp
from jax import lax
from jax.experimental import pallas as pl
from jax.experimental.pallas import tpu as pltpu


def _round_up(x, m):
    return (x + m - 1) // m * m


def _pack_layout(input_size, hidden_size, num_layers, output_size):
    """Row offsets for the single packed (rows, cols) parameter operand."""
    H = hidden_size
    cols = max(3 * H, output_size)
    layout = {}
    row = 0
    for l in range(num_layers):
        in_l = input_size if l == 0 else H
        layout[f"w_ih_l{l}"] = row
        row += _round_up(in_l, 8)
        layout[f"w_hh_l{l}"] = row
        row += _round_up(H, 8)
        layout[f"b_l{l}"] = row            # row+0: fused b_i (3H), row+1: b_hn (H)
        row += 8
    layout["w_fc"] = row
    row += _round_up(H, 8)
    layout["b_fc"] = row
    row += 8
    return layout, row, cols


def init_params(key, *, input_size, hidden_size, num_layers, output_size):
    """Deterministic PyTorch-layout nn.GRU / nn.Linear parameters."""
    H = hidden_size
    k = 1.0 / jnp.sqrt(jnp.float32(H))
    params = {}
    for l in range(num_layers):
        in_l = input_size if l == 0 else H
        key, k1, k2, k3, k4 = jax.random.split(key, 5)
        params[f"weight_ih_l{l}"] = jax.random.uniform(k1, (3 * H, in_l), jnp.float32, -k, k)
        params[f"weight_hh_l{l}"] = jax.random.uniform(k2, (3 * H, H), jnp.float32, -k, k)
        params[f"bias_ih_l{l}"] = jax.random.uniform(k3, (3 * H,), jnp.float32, -k, k)
        params[f"bias_hh_l{l}"] = jax.random.uniform(k4, (3 * H,), jnp.float32, -k, k)
    key, k5, k6 = jax.random.split(key, 3)
    params["fc_weight"] = jax.random.uniform(k5, (output_size, H), jnp.float32, -k, k)
    params["fc_bias"] = jax.random.uniform(k6, (output_size,), jnp.float32, -k, k)
    return params


def pack_params(params, *, input_size, hidden_size, num_layers, output_size):
    """Pack all GRU + FC params into ONE f32 (rows, cols) operand.

    Weights are pre-transposed to (in, 3H) with gate columns [r | z | n].
    b_i = [b_ih_r + b_hh_r | b_ih_z + b_hh_z | b_ih_n]; b_hn kept separate.
    """
    H = hidden_size
    layout, rows, cols = _pack_layout(input_size, hidden_size, num_layers, output_size)
    buf = jnp.zeros((rows, cols), jnp.float32)
    for l in range(num_layers):
        in_l = input_size if l == 0 else H
        w_ih = params[f"weight_ih_l{l}"]       # (3H, in_l)
        w_hh = params[f"weight_hh_l{l}"]       # (3H, H)
        b_ih = params[f"bias_ih_l{l}"]         # (3H,)
        b_hh = params[f"bias_hh_l{l}"]         # (3H,)
        r_ih = layout[f"w_ih_l{l}"]
        r_hh = layout[f"w_hh_l{l}"]
        r_b = layout[f"b_l{l}"]
        buf = buf.at[r_ih:r_ih + in_l, :3 * H].set(w_ih.T)
        buf = buf.at[r_hh:r_hh + H, :3 * H].set(w_hh.T)
        b_i = jnp.concatenate([b_ih[:2 * H] + b_hh[:2 * H], b_ih[2 * H:]])
        buf = buf.at[r_b, :3 * H].set(b_i)
        buf = buf.at[r_b + 1, :H].set(b_hh[2 * H:])
    buf = buf.at[layout["w_fc"]:layout["w_fc"] + H, :output_size].set(params["fc_weight"].T)
    buf = buf.at[layout["b_fc"], :output_size].set(params["fc_bias"])
    return buf, layout


def _make_kernel(*, batch, seq_len, input_size, hidden_size, num_layers, output_size, layout):
    B, S, I, H, O = batch, seq_len, input_size, hidden_size, output_size

    def kernel(x_ref, p_ref, out_ref, hseq_ref):
        # hseq_ref: (B, S, H) VMEM scratch holding one layer's full output sequence.
        def rows(r0, n):
            return p_ref[r0:r0 + n, :]

        cur = x_ref[...].reshape(B * S, I)            # b-major rows (b*S + t)

        for l in range(num_layers):
            in_l = I if l == 0 else H
            w_ih = rows(layout[f"w_ih_l{l}"], in_l)[:, :3 * H]   # (in_l, 3H) [r|z|n]
            w_hh = rows(layout[f"w_hh_l{l}"], H)[:, :3 * H]      # (H, 3H)
            r_b = layout[f"b_l{l}"]
            b_i = rows(r_b, 1)[:, :3 * H]                        # (1, 3H)
            b_hn = rows(r_b + 1, 1)[:, :H]                       # (1, H)

            # Batched input-side gate pre-activations for ALL timesteps: one matmul.
            gi_all = jnp.dot(cur, w_ih, preferred_element_type=jnp.float32) + b_i  # (B*S, 3H)
            gi = gi_all.reshape(B, S, 3 * H)

            # Hoisted bias broadcast for the unrolled recurrence.
            b_hn_b = jnp.broadcast_to(b_hn, (B, H))

            h = jnp.zeros((B, H), jnp.float32)
            for t in range(S):                                   # static unroll
                gi_t = lax.slice_in_dim(gi, t, t + 1, axis=1).reshape(B, 3 * H)
                gh = jnp.dot(h, w_hh, preferred_element_type=jnp.float32)       # (B, 3H)
                rz = jax.nn.sigmoid(gi_t[:, :2 * H] + gh[:, :2 * H])            # fused r/z
                r = rz[:, :H]
                z = rz[:, H:]
                n = jnp.tanh(gi_t[:, 2 * H:] + r * (gh[:, 2 * H:] + b_hn_b))
                h = (1.0 - z) * n + z * h
                hseq_ref[:, pl.ds(t, 1), :] = h[:, None, :]
            cur = hseq_ref[...].reshape(B * S, H)

        # Dropout(0.3) is identity in eval mode (applied to the full gru_out in the spec).
        w_fc = rows(layout["w_fc"], H)[:, :O]                    # (H, O)
        b_fc = rows(layout["b_fc"], 1)[:, :O]                    # (1, O)
        out = jnp.dot(cur, w_fc, preferred_element_type=jnp.float32) + b_fc      # (B*S, O)
        out_ref[...] = out.reshape(B, S, O).astype(out_ref.dtype)                # one full store

    return kernel


def gru_fc_forward(x, packed_params, *, layout, input_size, hidden_size, num_layers, output_size):
    """x: (batch, seq_len, input_size) f32 -> (batch, seq_len, output_size) f32."""
    B, S, _ = x.shape
    kernel = _make_kernel(batch=B, seq_len=S, input_size=input_size, hidden_size=hidden_size,
                          num_layers=num_layers, output_size=output_size, layout=layout)
    return pl.pallas_call(
        kernel,
        out_shape=jax.ShapeDtypeStruct((B, S, output_size), jnp.float32),
        in_specs=[pl.BlockSpec(memory_space=pltpu.MemorySpace.VMEM),
                  pl.BlockSpec(memory_space=pltpu.MemorySpace.VMEM)],
        out_specs=pl.BlockSpec(memory_space=pltpu.MemorySpace.VMEM),
        scratch_shapes=[pltpu.VMEM((B, S, hidden_size), jnp.float32)],
    )(x, packed_params)


def gru_fc_reference(x, params, *, num_layers, hidden_size):
    """Pure-JAX reference (lax.scan) using PyTorch-layout parameters."""
    H = hidden_size
    B, S, _ = x.shape
    cur = x
    for l in range(num_layers):
        w_ih = params[f"weight_ih_l{l}"]
        w_hh = params[f"weight_hh_l{l}"]
        b_ih = params[f"bias_ih_l{l}"]
        b_hh = params[f"bias_hh_l{l}"]

        def step(h, x_t, w_ih=w_ih, w_hh=w_hh, b_ih=b_ih, b_hh=b_hh):
            gi = x_t @ w_ih.T + b_ih
            gh = h @ w_hh.T + b_hh
            r = jax.nn.sigmoid(gi[:, :H] + gh[:, :H])
            z = jax.nn.sigmoid(gi[:, H:2 * H] + gh[:, H:2 * H])
            n = jnp.tanh(gi[:, 2 * H:] + r * gh[:, 2 * H:])
            h_new = (1.0 - z) * n + z * h
            return h_new, h_new

        h0 = jnp.zeros((B, H), jnp.float32)
        _, ys = jax.lax.scan(step, h0, jnp.swapaxes(cur, 0, 1))
        cur = jnp.swapaxes(ys, 0, 1)
    return cur @ params["fc_weight"].T + params["fc_bias"]


if __name__ == "__main__":
    configs = dict(seq_len=8, pred_len=4, input_size=4,
                   hidden_size=32, num_layers=2, output_size=4)
    B = 2
    S, I = configs["seq_len"], configs["input_size"]
    H, L, O = configs["hidden_size"], configs["num_layers"], configs["output_size"]

    key = jax.random.PRNGKey(0)
    key, kx, kp = jax.random.split(key, 3)
    x = jax.random.normal(kx, (B, S, I), jnp.float32)
    # unused decoder-side inputs, kept for signature parity with the PyTorch module
    x_mark_enc = jnp.zeros((B, S, 1), jnp.float32)
    x_dec = jnp.zeros((B, S, I), jnp.float32)
    x_mark_dec = jnp.zeros((B, S, 1), jnp.float32)

    params = init_params(kp, input_size=I, hidden_size=H, num_layers=L, output_size=O)
    packed, layout = pack_params(params, input_size=I, hidden_size=H,
                                 num_layers=L, output_size=O)

    fwd = functools.partial(gru_fc_forward, layout=layout, input_size=I,
                            hidden_size=H, num_layers=L, output_size=O)
    out = jax.block_until_ready(fwd(x, packed))

    ref = gru_fc_reference(x, params, num_layers=L, hidden_size=H)
    assert out.shape == (B, S, O), out.shape
    max_err = float(jnp.max(jnp.abs(out - ref)))
    assert jnp.allclose(out, ref, atol=1e-4, rtol=1e-4), max_err

    print("KERNEL_OK")
</pallas_src>

<mosaic_0001>
module attributes {stable_mosaic.version = 11 : i64} {
  func.func @kernel(%arg0: memref<2x8x4xf32, #tpu.memory_space<vmem>>, %arg1: memref<160x96xf32, #tpu.memory_space<vmem>>, %arg2: memref<2x8x4xf32, #tpu.memory_space<vmem>>, %arg3: memref<2x8x32xf32, #tpu.memory_space<vmem>>) attributes {dimension_semantics = [], scalar_prefetch = 0 : i64, scratch_operands = 1 : i64, tpu.core_type = #tpu.core_type<tc>} {
    %c0 = arith.constant 0 : index
    %c0_0 = arith.constant 0 : index
    %c0_1 = arith.constant 0 : index
    %0 = vector.load %arg0[%c0, %c0_0, %c0_1] : memref<2x8x4xf32, #tpu.memory_space<vmem>>, vector<2x8x4xf32>
    %1 = vector.shape_cast %0 : vector<2x8x4xf32> to vector<16x4xf32>
    %c0_2 = arith.constant 0 : index
    %c0_3 = arith.constant 0 : index
    %2 = vector.load %arg1[%c0_2, %c0_3] : memref<160x96xf32, #tpu.memory_space<vmem>>, vector<4x96xf32>
    %c8 = arith.constant 8 : index
    %c0_4 = arith.constant 0 : index
    %3 = vector.load %arg1[%c8, %c0_4] : memref<160x96xf32, #tpu.memory_space<vmem>>, vector<32x96xf32>
    %c40 = arith.constant 40 : index
    %c0_5 = arith.constant 0 : index
    %4 = vector.load %arg1[%c40, %c0_5] : memref<160x96xf32, #tpu.memory_space<vmem>>, vector<1x96xf32>
    %c41 = arith.constant 41 : index
    %c0_6 = arith.constant 0 : index
    %5 = vector.load %arg1[%c41, %c0_6] : memref<160x96xf32, #tpu.memory_space<vmem>>, vector<1x96xf32>
    %6 = vector.extract_strided_slice %5 {offsets = [0, 0], sizes = [1, 32], strides = [1, 1]} : vector<1x96xf32> to vector<1x32xf32>
    %cst = arith.constant dense<0.000000e+00> : vector<16x96xf32>
    %7 = tpu.matmul %1, %2, %cst {dimension_numbers = #tpu.dot_dimension_numbers<[1], [0], [0], [1], [0, 0, 1, 1], [], []>} : vector<16x4xf32>, vector<4x96xf32>, vector<16x96xf32> -> vector<16x96xf32>
    %8 = vector.broadcast %4 : vector<1x96xf32> to vector<16x96xf32>
    %9 = arith.addf %7, %8 : vector<16x96xf32>
    %10 = vector.shape_cast %9 : vector<16x96xf32> to vector<2x8x96xf32>
    %11 = vector.shape_cast %6 : vector<1x32xf32> to vector<1x32xf32>
    %12 = vector.broadcast %11 : vector<1x32xf32> to vector<2x32xf32>
    %cst_7 = arith.constant 0.000000e+00 : f32
    %13 = vector.broadcast %cst_7 : f32 to vector<2x32xf32>
    %14 = vector.extract_strided_slice %10 {offsets = [0, 0, 0], sizes = [2, 1, 96], strides = [1, 1, 1]} : vector<2x8x96xf32> to vector<2x1x96xf32>
    %15 = vector.shape_cast %14 : vector<2x1x96xf32> to vector<2x96xf32>
    %cst_8 = arith.constant dense<0.000000e+00> : vector<2x96xf32>
    %16 = tpu.matmul %13, %3, %cst_8 {dimension_numbers = #tpu.dot_dimension_numbers<[1], [0], [0], [1], [0, 0, 1, 1], [], []>} : vector<2x32xf32>, vector<32x96xf32>, vector<2x96xf32> -> vector<2x96xf32>
    %17 = vector.extract_strided_slice %15 {offsets = [0, 0], sizes = [2, 64], strides = [1, 1]} : vector<2x96xf32> to vector<2x64xf32>
    %18 = vector.extract_strided_slice %16 {offsets = [0, 0], sizes = [2, 64], strides = [1, 1]} : vector<2x96xf32> to vector<2x64xf32>
    %19 = arith.addf %17, %18 : vector<2x64xf32>
    %20 = arith.negf %19 : vector<2x64xf32>
    %21 = math.exp %20 : vector<2x64xf32>
    %cst_9 = arith.constant 1.000000e+00 : f32
    %22 = vector.broadcast %cst_9 : f32 to vector<2x64xf32>
    %23 = arith.addf %22, %21 : vector<2x64xf32>
    %24 = arith.divf %22, %23 : vector<2x64xf32>
    %25 = vector.extract_strided_slice %24 {offsets = [0, 0], sizes = [2, 32], strides = [1, 1]} : vector<2x64xf32> to vector<2x32xf32>
    %26 = vector.extract_strided_slice %24 {offsets = [0, 32], sizes = [2, 32], strides = [1, 1]} : vector<2x64xf32> to vector<2x32xf32>
    %27 = vector.extract_strided_slice %15 {offsets = [0, 64], sizes = [2, 32], strides = [1, 1]} : vector<2x96xf32> to vector<2x32xf32>
    %28 = vector.extract_strided_slice %16 {offsets = [0, 64], sizes = [2, 32], strides = [1, 1]} : vector<2x96xf32> to vector<2x32xf32>
    %29 = arith.addf %28, %12 : vector<2x32xf32>
    %30 = arith.mulf %25, %29 : vector<2x32xf32>
    %31 = arith.addf %27, %30 : vector<2x32xf32>
    %32 = math.tanh %31 : vector<2x32xf32>
    %cst_10 = arith.constant 1.000000e+00 : f32
    %33 = vector.broadcast %cst_10 : f32 to vector<2x32xf32>
    %34 = arith.subf %33, %26 : vector<2x32xf32>
    %35 = arith.mulf %34, %32 : vector<2x32xf32>
    %36 = arith.mulf %26, %13 : vector<2x32xf32>
    %37 = arith.addf %35, %36 : vector<2x32xf32>
    %38 = vector.shape_cast %37 : vector<2x32xf32> to vector<2x1x32xf32>
    %c0_11 = arith.constant 0 : index
    %c0_12 = arith.constant 0 : index
    %c0_13 = arith.constant 0 : index
    %39 = vector.load %arg3[%c0_11, %c0_12, %c0_13] : memref<2x8x32xf32, #tpu.memory_space<vmem>>, vector<2x1x32xf32>
    tpu.vector_store %arg3[%c0_11, %c0_12, %c0_13], %38 {strides = array<i32>} : memref<2x8x32xf32, #tpu.memory_space<vmem>>, vector<2x1x32xf32>,
    %40 = vector.extract_strided_slice %10 {offsets = [0, 1, 0], sizes = [2, 1, 96], strides = [1, 1, 1]} : vector<2x8x96xf32> to vector<2x1x96xf32>
    %41 = vector.shape_cast %40 : vector<2x1x96xf32> to vector<2x96xf32>
    %cst_14 = arith.constant dense<0.000000e+00> : vector<2x96xf32>
    %42 = tpu.matmul %37, %3, %cst_14 {dimension_numbers = #tpu.dot_dimension_numbers<[1], [0], [0], [1], [0, 0, 1, 1], [], []>} : vector<2x32xf32>, vector<32x96xf32>, vector<2x96xf32> -> vector<2x96xf32>
    %43 = vector.extract_strided_slice %41 {offsets = [0, 0], sizes = [2, 64], strides = [1, 1]} : vector<2x96xf32> to vector<2x64xf32>
    %44 = vector.extract_strided_slice %42 {offsets = [0, 0], sizes = [2, 64], strides = [1, 1]} : vector<2x96xf32> to vector<2x64xf32>
    %45 = arith.addf %43, %44 : vector<2x64xf32>
    %46 = arith.negf %45 : vector<2x64xf32>
    %47 = math.exp %46 : vector<2x64xf32>
    %cst_15 = arith.constant 1.000000e+00 : f32
    %48 = vector.broadcast %cst_15 : f32 to vector<2x64xf32>
    %49 = arith.addf %48, %47 : vector<2x64xf32>
    %50 = arith.divf %48, %49 : vector<2x64xf32>
    %51 = vector.extract_strided_slice %50 {offsets = [0, 0], sizes = [2, 32], strides = [1, 1]} : vector<2x64xf32> to vector<2x32xf32>
    %52 = vector.extract_strided_slice %50 {offsets = [0, 32], sizes = [2, 32], strides = [1, 1]} : vector<2x64xf32> to vector<2x32xf32>
    %53 = vector.extract_strided_slice %41 {offsets = [0, 64], sizes = [2, 32], strides = [1, 1]} : vector<2x96xf32> to vector<2x32xf32>
    %54 = vector.extract_strided_slice %42 {offsets = [0, 64], sizes = [2, 32], strides = [1, 1]} : vector<2x96xf32> to vector<2x32xf32>
    %55 = arith.addf %54, %12 : vector<2x32xf32>
    %56 = arith.mulf %51, %55 : vector<2x32xf32>
    %57 = arith.addf %53, %56 : vector<2x32xf32>
    %58 = math.tanh %57 : vector<2x32xf32>
    %cst_16 = arith.constant 1.000000e+00 : f32
    %59 = vector.broadcast %cst_16 : f32 to vector<2x32xf32>
    %60 = arith.subf %59, %52 : vector<2x32xf32>
    %61 = arith.mulf %60, %58 : vector<2x32xf32>
    %62 = arith.mulf %52, %37 : vector<2x32xf32>
    %63 = arith.addf %61, %62 : vector<2x32xf32>
    %64 = vector.shape_cast %63 : vector<2x32xf32> to vector<2x1x32xf32>
    %c0_17 = arith.constant 0 : index
    %c1 = arith.constant 1 : index
    %c0_18 = arith.constant 0 : index
    %65 = vector.load %arg3[%c0_17, %c1, %c0_18] : memref<2x8x32xf32, #tpu.memory_space<vmem>>, vector<2x1x32xf32>
    tpu.vector_store %arg3[%c0_17, %c1, %c0_18], %64 {strides = array<i32>} : memref<2x8x32xf32, #tpu.memory_space<vmem>>, vector<2x1x32xf32>,
    %66 = vector.extract_strided_slice %10 {offsets = [0, 2, 0], sizes = [2, 1, 96], strides = [1, 1, 1]} : vector<2x8x96xf32> to vector<2x1x96xf32>
    %67 = vector.shape_cast %66 : vector<2x1x96xf32> to vector<2x96xf32>
    %cst_19 = arith.constant dense<0.000000e+00> : vector<2x96xf32>
    %68 = tpu.matmul %63, %3, %cst_19 {dimension_numbers = #tpu.dot_dimension_numbers<[1], [0], [0], [1], [0, 0, 1, 1], [], []>} : vector<2x32xf32>, vector<32x96xf32>, vector<2x96xf32> -> vector<2x96xf32>
    %69 = vector.extract_strided_slice %67 {offsets = [0, 0], sizes = [2, 64], strides = [1, 1]} : vector<2x96xf32> to vector<2x64xf32>
    %70 = vector.extract_strided_slice %68 {offsets = [0, 0], sizes = [2, 64], strides = [1, 1]} : vector<2x96xf32> to vector<2x64xf32>
    %71 = arith.addf %69, %70 : vector<2x64xf32>
    %72 = arith.negf %71 : vector<2x64xf32>
    %73 = math.exp %72 : vector<2x64xf32>
    %cst_20 = arith.constant 1.000000e+00 : f32
    %74 = vector.broadcast %cst_20 : f32 to vector<2x64xf32>
    %75 = arith.addf %74, %73 : vector<2x64xf32>
    %76 = arith.divf %74, %75 : vector<2x64xf32>
    %77 = vector.extract_strided_slice %76 {offsets = [0, 0], sizes = [2, 32], strides = [1, 1]} : vector<2x64xf32> to vector<2x32xf32>
    %78 = vector.extract_strided_slice %76 {offsets = [0, 32], sizes = [2, 32], strides = [1, 1]} : vector<2x64xf32> to vector<2x32xf32>
    %79 = vector.extract_strided_slice %67 {offsets = [0, 64], sizes = [2, 32], strides = [1, 1]} : vector<2x96xf32> to vector<2x32xf32>
    %80 = vector.extract_strided_slice %68 {offsets = [0, 64], sizes = [2, 32], strides = [1, 1]} : vector<2x96xf32> to vector<2x32xf32>
    %81 = arith.addf %80, %12 : vector<2x32xf32>
    %82 = arith.mulf %77, %81 : vector<2x32xf32>
    %83 = arith.addf %79, %82 : vector<2x32xf32>
    %84 = math.tanh %83 : vector<2x32xf32>
    %cst_21 = arith.constant 1.000000e+00 : f32
    %85 = vector.broadcast %cst_21 : f32 to vector<2x32xf32>
    %86 = arith.subf %85, %78 : vector<2x32xf32>
    %87 = arith.mulf %86, %84 : vector<2x32xf32>
    %88 = arith.mulf %78, %63 : vector<2x32xf32>
    %89 = arith.addf %87, %88 : vector<2x32xf32>
    %90 = vector.shape_cast %89 : vector<2x32xf32> to vector<2x1x32xf32>
    %c0_22 = arith.constant 0 : index
    %c2 = arith.constant 2 : index
    %c0_23 = arith.constant 0 : index
    %91 = vector.load %arg3[%c0_22, %c2, %c0_23] : memref<2x8x32xf32, #tpu.memory_space<vmem>>, vector<2x1x32xf32>
    tpu.vector_store %arg3[%c0_22, %c2, %c0_23], %90 {strides = array<i32>} : memref<2x8x32xf32, #tpu.memory_space<vmem>>, vector<2x1x32xf32>,
    %92 = vector.extract_strided_slice %10 {offsets = [0, 3, 0], sizes = [2, 1, 96], strides = [1, 1, 1]} : vector<2x8x96xf32> to vector<2x1x96xf32>
    %93 = vector.shape_cast %92 : vector<2x1x96xf32> to vector<2x96xf32>
    %cst_24 = arith.constant dense<0.000000e+00> : vector<2x96xf32>
    %94 = tpu.matmul %89, %3, %cst_24 {dimension_numbers = #tpu.dot_dimension_numbers<[1], [0], [0], [1], [0, 0, 1, 1], [], []>} : vector<2x32xf32>, vector<32x96xf32>, vector<2x96xf32> -> vector<2x96xf32>
    %95 = vector.extract_strided_slice %93 {offsets = [0, 0], sizes = [2, 64], strides = [1, 1]} : vector<2x96xf32> to vector<2x64xf32>
    %96 = vector.extract_strided_slice %94 {offsets = [0, 0], sizes = [2, 64], strides = [1, 1]} : vector<2x96xf32> to vector<2x64xf32>
    %97 = arith.addf %95, %96 : vector<2x64xf32>
    %98 = arith.negf %97 : vector<2x64xf32>
    %99 = math.exp %98 : vector<2x64xf32>
    %cst_25 = arith.constant 1.000000e+00 : f32
    %100 = vector.broadcast %cst_25 : f32 to vector<2x64xf32>
    %101 = arith.addf %100, %99 : vector<2x64xf32>
    %102 = arith.divf %100, %101 : vector<2x64xf32>
    %103 = vector.extract_strided_slice %102 {offsets = [0, 0], sizes = [2, 32], strides = [1, 1]} : vector<2x64xf32> to vector<2x32xf32>
    %104 = vector.extract_strided_slice %102 {offsets = [0, 32], sizes = [2, 32], strides = [1, 1]} : vector<2x64xf32> to vector<2x32xf32>
    %105 = vector.extract_strided_slice %93 {offsets = [0, 64], sizes = [2, 32], strides = [1, 1]} : vector<2x96xf32> to vector<2x32xf32>
    %106 = vector.extract_strided_slice %94 {offsets = [0, 64], sizes = [2, 32], strides = [1, 1]} : vector<2x96xf32> to vector<2x32xf32>
    %107 = arith.addf %106, %12 : vector<2x32xf32>
    %108 = arith.mulf %103, %107 : vector<2x32xf32>
    %109 = arith.addf %105, %108 : vector<2x32xf32>
    %110 = math.tanh %109 : vector<2x32xf32>
    %cst_26 = arith.constant 1.000000e+00 : f32
    %111 = vector.broadcast %cst_26 : f32 to vector<2x32xf32>
    %112 = arith.subf %111, %104 : vector<2x32xf32>
    %113 = arith.mulf %112, %110 : vector<2x32xf32>
    %114 = arith.mulf %104, %89 : vector<2x32xf32>
    %115 = arith.addf %113, %114 : vector<2x32xf32>
    %116 = vector.shape_cast %115 : vector<2x32xf32> to vector<2x1x32xf32>
    %c0_27 = arith.constant 0 : index
    %c3 = arith.constant 3 : index
    %c0_28 = arith.constant 0 : index
    %117 = vector.load %arg3[%c0_27, %c3, %c0_28] : memref<2x8x32xf32, #tpu.memory_space<vmem>>, vector<2x1x32xf32>
    tpu.vector_store %arg3[%c0_27, %c3, %c0_28], %116 {strides = array<i32>} : memref<2x8x32xf32, #tpu.memory_space<vmem>>, vector<2x1x32xf32>,
    %118 = vector.extract_strided_slice %10 {offsets = [0, 4, 0], sizes = [2, 1, 96], strides = [1, 1, 1]} : vector<2x8x96xf32> to vector<2x1x96xf32>
    %119 = vector.shape_cast %118 : vector<2x1x96xf32> to vector<2x96xf32>
    %cst_29 = arith.constant dense<0.000000e+00> : vector<2x96xf32>
    %120 = tpu.matmul %115, %3, %cst_29 {dimension_numbers = #tpu.dot_dimension_numbers<[1], [0], [0], [1], [0, 0, 1, 1], [], []>} : vector<2x32xf32>, vector<32x96xf32>, vector<2x96xf32> -> vector<2x96xf32>
    %121 = vector.extract_strided_slice %119 {offsets = [0, 0], sizes = [2, 64], strides = [1, 1]} : vector<2x96xf32> to vector<2x64xf32>
    %122 = vector.extract_strided_slice %120 {offsets = [0, 0], sizes = [2, 64], strides = [1, 1]} : vector<2x96xf32> to vector<2x64xf32>
    %123 = arith.addf %121, %122 : vector<2x64xf32>
    %124 = arith.negf %123 : vector<2x64xf32>
    %125 = math.exp %124 : vector<2x64xf32>
    %cst_30 = arith.constant 1.000000e+00 : f32
    %126 = vector.broadcast %cst_30 : f32 to vector<2x64xf32>
    %127 = arith.addf %126, %125 : vector<2x64xf32>
    %128 = arith.divf %126, %127 : vector<2x64xf32>
    %129 = vector.extract_strided_slice %128 {offsets = [0, 0], sizes = [2, 32], strides = [1, 1]} : vector<2x64xf32> to vector<2x32xf32>
    %130 = vector.extract_strided_slice %128 {offsets = [0, 32], sizes = [2, 32], strides = [1, 1]} : vector<2x64xf32> to vector<2x32xf32>
    %131 = vector.extract_strided_slice %119 {offsets = [0, 64], sizes = [2, 32], strides = [1, 1]} : vector<2x96xf32> to vector<2x32xf32>
    %132 = vector.extract_strided_slice %120 {offsets = [0, 64], sizes = [2, 32], strides = [1, 1]} : vector<2x96xf32> to vector<2x32xf32>
    %133 = arith.addf %132, %12 : vector<2x32xf32>
    %134 = arith.mulf %129, %133 : vector<2x32xf32>
    %135 = arith.addf %131, %134 : vector<2x32xf32>
    %136 = math.tanh %135 : vector<2x32xf32>
    %cst_31 = arith.constant 1.000000e+00 : f32
    %137 = vector.broadcast %cst_31 : f32 to vector<2x32xf32>
    %138 = arith.subf %137, %130 : vector<2x32xf32>
    %139 = arith.mulf %138, %136 : vector<2x32xf32>
    %140 = arith.mulf %130, %115 : vector<2x32xf32>
    %141 = arith.addf %139, %140 : vector<2x32xf32>
    %142 = vector.shape_cast %141 : vector<2x32xf32> to vector<2x1x32xf32>
    %c0_32 = arith.constant 0 : index
    %c4 = arith.constant 4 : index
    %c0_33 = arith.constant 0 : index
    %143 = vector.load %arg3[%c0_32, %c4, %c0_33] : memref<2x8x32xf32, #tpu.memory_space<vmem>>, vector<2x1x32xf32>
    tpu.vector_store %arg3[%c0_32, %c4, %c0_33], %142 {strides = array<i32>} : memref<2x8x32xf32, #tpu.memory_space<vmem>>, vector<2x1x32xf32>,
    %144 = vector.extract_strided_slice %10 {offsets = [0, 5, 0], sizes = [2, 1, 96], strides = [1, 1, 1]} : vector<2x8x96xf32> to vector<2x1x96xf32>
    %145 = vector.shape_cast %144 : vector<2x1x96xf32> to vector<2x96xf32>
    %cst_34 = arith.constant dense<0.000000e+00> : vector<2x96xf32>
    %146 = tpu.matmul %141, %3, %cst_34 {dimension_numbers = #tpu.dot_dimension_numbers<[1], [0], [0], [1], [0, 0, 1, 1], [], []>} : vector<2x32xf32>, vector<32x96xf32>, vector<2x96xf32> -> vector<2x96xf32>
    %147 = vector.extract_strided_slice %145 {offsets = [0, 0], sizes = [2, 64], strides = [1, 1]} : vector<2x96xf32> to vector<2x64xf32>
    %148 = vector.extract_strided_slice %146 {offsets = [0, 0], sizes = [2, 64], strides = [1, 1]} : vector<2x96xf32> to vector<2x64xf32>
    %149 = arith.addf %147, %148 : vector<2x64xf32>
    %150 = arith.negf %149 : vector<2x64xf32>
    %151 = math.exp %150 : vector<2x64xf32>
    %cst_35 = arith.constant 1.000000e+00 : f32
    %152 = vector.broadcast %cst_35 : f32 to vector<2x64xf32>
    %153 = arith.addf %152, %151 : vector<2x64xf32>
    %154 = arith.divf %152, %153 : vector<2x64xf32>
    %155 = vector.extract_strided_slice %154 {offsets = [0, 0], sizes = [2, 32], strides = [1, 1]} : vector<2x64xf32> to vector<2x32xf32>
    %156 = vector.extract_strided_slice %154 {offsets = [0, 32], sizes = [2, 32], strides = [1, 1]} : vector<2x64xf32> to vector<2x32xf32>
    %157 = vector.extract_strided_slice %145 {offsets = [0, 64], sizes = [2, 32], strides = [1, 1]} : vector<2x96xf32> to vector<2x32xf32>
    %158 = vector.extract_strided_slice %146 {offsets = [0, 64], sizes = [2, 32], strides = [1, 1]} : vector<2x96xf32> to vector<2x32xf32>
    %159 = arith.addf %158, %12 : vector<2x32xf32>
    %160 = arith.mulf %155, %159 : vector<2x32xf32>
    %161 = arith.addf %157, %160 : vector<2x32xf32>
    %162 = math.tanh %161 : vector<2x32xf32>
    %cst_36 = arith.constant 1.000000e+00 : f32
    %163 = vector.broadcast %cst_36 : f32 to vector<2x32xf32>
    %164 = arith.subf %163, %156 : vector<2x32xf32>
    %165 = arith.mulf %164, %162 : vector<2x32xf32>
    %166 = arith.mulf %156, %141 : vector<2x32xf32>
    %167 = arith.addf %165, %166 : vector<2x32xf32>
    %168 = vector.shape_cast %167 : vector<2x32xf32> to vector<2x1x32xf32>
    %c0_37 = arith.constant 0 : index
    %c5 = arith.constant 5 : index
    %c0_38 = arith.constant 0 : index
    %169 = vector.load %arg3[%c0_37, %c5, %c0_38] : memref<2x8x32xf32, #tpu.memory_space<vmem>>, vector<2x1x32xf32>
    tpu.vector_store %arg3[%c0_37, %c5, %c0_38], %168 {strides = array<i32>} : memref<2x8x32xf32, #tpu.memory_space<vmem>>, vector<2x1x32xf32>,
    %170 = vector.extract_strided_slice %10 {offsets = [0, 6, 0], sizes = [2, 1, 96], strides = [1, 1, 1]} : vector<2x8x96xf32> to vector<2x1x96xf32>
    %171 = vector.shape_cast %170 : vector<2x1x96xf32> to vector<2x96xf32>
    %cst_39 = arith.constant dense<0.000000e+00> : vector<2x96xf32>
    %172 = tpu.matmul %167, %3, %cst_39 {dimension_numbers = #tpu.dot_dimension_numbers<[1], [0], [0], [1], [0, 0, 1, 1], [], []>} : vector<2x32xf32>, vector<32x96xf32>, vector<2x96xf32> -> vector<2x96xf32>
    %173 = vector.extract_strided_slice %171 {offsets = [0, 0], sizes = [2, 64], strides = [1, 1]} : vector<2x96xf32> to vector<2x64xf32>
    %174 = vector.extract_strided_slice %172 {offsets = [0, 0], sizes = [2, 64], strides = [1, 1]} : vector<2x96xf32> to vector<2x64xf32>
    %175 = arith.addf %173, %174 : vector<2x64xf32>
    %176 = arith.negf %175 : vector<2x64xf32>
    %177 = math.exp %176 : vector<2x64xf32>
    %cst_40 = arith.constant 1.000000e+00 : f32
    %178 = vector.broadcast %cst_40 : f32 to vector<2x64xf32>
    %179 = arith.addf %178, %177 : vector<2x64xf32>
    %180 = arith.divf %178, %179 : vector<2x64xf32>
    %181 = vector.extract_strided_slice %180 {offsets = [0, 0], sizes = [2, 32], strides = [1, 1]} : vector<2x64xf32> to vector<2x32xf32>
    %182 = vector.extract_strided_slice %180 {offsets = [0, 32], sizes = [2, 32], strides = [1, 1]} : vector<2x64xf32> to vector<2x32xf32>
    %183 = vector.extract_strided_slice %171 {offsets = [0, 64], sizes = [2, 32], strides = [1, 1]} : vector<2x96xf32> to vector<2x32xf32>
    %184 = vector.extract_strided_slice %172 {offsets = [0, 64], sizes = [2, 32], strides = [1, 1]} : vector<2x96xf32> to vector<2x32xf32>
    %185 = arith.addf %184, %12 : vector<2x32xf32>
    %186 = arith.mulf %181, %185 : vector<2x32xf32>
    %187 = arith.addf %183, %186 : vector<2x32xf32>
    %188 = math.tanh %187 : vector<2x32xf32>
    %cst_41 = arith.constant 1.000000e+00 : f32
    %189 = vector.broadcast %cst_41 : f32 to vector<2x32xf32>
    %190 = arith.subf %189, %182 : vector<2x32xf32>
    %191 = arith.mulf %190, %188 : vector<2x32xf32>
    %192 = arith.mulf %182, %167 : vector<2x32xf32>
    %193 = arith.addf %191, %192 : vector<2x32xf32>
    %194 = vector.shape_cast %193 : vector<2x32xf32> to vector<2x1x32xf32>
    %c0_42 = arith.constant 0 : index
    %c6 = arith.constant 6 : index
    %c0_43 = arith.constant 0 : index
    %195 = vector.load %arg3[%c0_42, %c6, %c0_43] : memref<2x8x32xf32, #tpu.memory_space<vmem>>, vector<2x1x32xf32>
    tpu.vector_store %arg3[%c0_42, %c6, %c0_43], %194 {strides = array<i32>} : memref<2x8x32xf32, #tpu.memory_space<vmem>>, vector<2x1x32xf32>,
    %196 = vector.extract_strided_slice %10 {offsets = [0, 7, 0], sizes = [2, 1, 96], strides = [1, 1, 1]} : vector<2x8x96xf32> to vector<2x1x96xf32>
    %197 = vector.shape_cast %196 : vector<2x1x96xf32> to vector<2x96xf32>
    %cst_44 = arith.constant dense<0.000000e+00> : vector<2x96xf32>
    %198 = tpu.matmul %193, %3, %cst_44 {dimension_numbers = #tpu.dot_dimension_numbers<[1], [0], [0], [1], [0, 0, 1, 1], [], []>} : vector<2x32xf32>, vector<32x96xf32>, vector<2x96xf32> -> vector<2x96xf32>
    %199 = vector.extract_strided_slice %197 {offsets = [0, 0], sizes = [2, 64], strides = [1, 1]} : vector<2x96xf32> to vector<2x64xf32>
    %200 = vector.extract_strided_slice %198 {offsets = [0, 0], sizes = [2, 64], strides = [1, 1]} : vector<2x96xf32> to vector<2x64xf32>
    %201 = arith.addf %199, %200 : vector<2x64xf32>
    %202 = arith.negf %201 : vector<2x64xf32>
    %203 = math.exp %202 : vector<2x64xf32>
    %cst_45 = arith.constant 1.000000e+00 : f32
    %204 = vector.broadcast %cst_45 : f32 to vector<2x64xf32>
    %205 = arith.addf %204, %203 : vector<2x64xf32>
    %206 = arith.divf %204, %205 : vector<2x64xf32>
    %207 = vector.extract_strided_slice %206 {offsets = [0, 0], sizes = [2, 32], strides = [1, 1]} : vector<2x64xf32> to vector<2x32xf32>
    %208 = vector.extract_strided_slice %206 {offsets = [0, 32], sizes = [2, 32], strides = [1, 1]} : vector<2x64xf32> to vector<2x32xf32>
    %209 = vector.extract_strided_slice %197 {offsets = [0, 64], sizes = [2, 32], strides = [1, 1]} : vector<2x96xf32> to vector<2x32xf32>
    %210 = vector.extract_strided_slice %198 {offsets = [0, 64], sizes = [2, 32], strides = [1, 1]} : vector<2x96xf32> to vector<2x32xf32>
    %211 = arith.addf %210, %12 : vector<2x32xf32>
    %212 = arith.mulf %207, %211 : vector<2x32xf32>
    %213 = arith.addf %209, %212 : vector<2x32xf32>
    %214 = math.tanh %213 : vector<2x32xf32>
    %cst_46 = arith.constant 1.000000e+00 : f32
    %215 = vector.broadcast %cst_46 : f32 to vector<2x32xf32>
    %216 = arith.subf %215, %208 : vector<2x32xf32>
    %217 = arith.mulf %216, %214 : vector<2x32xf32>
    %218 = arith.mulf %208, %193 : vector<2x32xf32>
    %219 = arith.addf %217, %218 : vector<2x32xf32>
    %220 = vector.shape_cast %219 : vector<2x32xf32> to vector<2x1x32xf32>
    %c0_47 = arith.constant 0 : index
    %c7 = arith.constant 7 : index
    %c0_48 = arith.constant 0 : index
    %221 = vector.load %arg3[%c0_47, %c7, %c0_48] : memref<2x8x32xf32, #tpu.memory_space<vmem>>, vector<2x1x32xf32>
    tpu.vector_store %arg3[%c0_47, %c7, %c0_48], %220 {strides = array<i32>} : memref<2x8x32xf32, #tpu.memory_space<vmem>>, vector<2x1x32xf32>,
    %c0_49 = arith.constant 0 : index
    %c0_50 = arith.constant 0 : index
    %c0_51 = arith.constant 0 : index
    %222 = vector.load %arg3[%c0_49, %c0_50, %c0_51] : memref<2x8x32xf32, #tpu.memory_space<vmem>>, vector<2x8x32xf32>
    %223 = vector.shape_cast %222 : vector<2x8x32xf32> to vector<16x32xf32>
    %c48 = arith.constant 48 : index
    %c0_52 = arith.constant 0 : index
    %224 = vector.load %arg1[%c48, %c0_52] : memref<160x96xf32, #tpu.memory_space<vmem>>, vector<32x96xf32>
    %c80 = arith.constant 80 : index
    %c0_53 = arith.constant 0 : index
    %225 = vector.load %arg1[%c80, %c0_53] : memref<160x96xf32, #tpu.memory_space<vmem>>, vector<32x96xf32>
    %c112 = arith.constant 112 : index
    %c0_54 = arith.constant 0 : index
    %226 = vector.load %arg1[%c112, %c0_54] : memref<160x96xf32, #tpu.memory_space<vmem>>, vector<1x96xf32>
    %c113 = arith.constant 113 : index
    %c0_55 = arith.constant 0 : index
    %227 = vector.load %arg1[%c113, %c0_55] : memref<160x96xf32, #tpu.memory_space<vmem>>, vector<1x96xf32>
    %228 = vector.extract_strided_slice %227 {offsets = [0, 0], sizes = [1, 32], strides = [1, 1]} : vector<1x96xf32> to vector<1x32xf32>
    %cst_56 = arith.constant dense<0.000000e+00> : vector<16x96xf32>
    %229 = tpu.matmul %223, %224, %cst_56 {dimension_numbers = #tpu.dot_dimension_numbers<[1], [0], [0], [1], [0, 0, 1, 1], [], []>} : vector<16x32xf32>, vector<32x96xf32>, vector<16x96xf32> -> vector<16x96xf32>
    %230 = vector.broadcast %226 : vector<1x96xf32> to vector<16x96xf32>
    %231 = arith.addf %229, %230 : vector<16x96xf32>
    %232 = vector.shape_cast %231 : vector<16x96xf32> to vector<2x8x96xf32>
    %233 = vector.shape_cast %228 : vector<1x32xf32> to vector<1x32xf32>
    %234 = vector.broadcast %233 : vector<1x32xf32> to vector<2x32xf32>
    %cst_57 = arith.constant 0.000000e+00 : f32
    %235 = vector.broadcast %cst_57 : f32 to vector<2x32xf32>
    %236 = vector.extract_strided_slice %232 {offsets = [0, 0, 0], sizes = [2, 1, 96], strides = [1, 1, 1]} : vector<2x8x96xf32> to vector<2x1x96xf32>
    %237 = vector.shape_cast %236 : vector<2x1x96xf32> to vector<2x96xf32>
    %cst_58 = arith.constant dense<0.000000e+00> : vector<2x96xf32>
    %238 = tpu.matmul %235, %225, %cst_58 {dimension_numbers = #tpu.dot_dimension_numbers<[1], [0], [0], [1], [0, 0, 1, 1], [], []>} : vector<2x32xf32>, vector<32x96xf32>, vector<2x96xf32> -> vector<2x96xf32>
    %239 = vector.extract_strided_slice %237 {offsets = [0, 0], sizes = [2, 64], strides = [1, 1]} : vector<2x96xf32> to vector<2x64xf32>
    %240 = vector.extract_strided_slice %238 {offsets = [0, 0], sizes = [2, 64], strides = [1, 1]} : vector<2x96xf32> to vector<2x64xf32>
    %241 = arith.addf %239, %240 : vector<2x64xf32>
    %242 = arith.negf %241 : vector<2x64xf32>
    %243 = math.exp %242 : vector<2x64xf32>
    %cst_59 = arith.constant 1.000000e+00 : f32
    %244 = vector.broadcast %cst_59 : f32 to vector<2x64xf32>
    %245 = arith.addf %244, %243 : vector<2x64xf32>
    %246 = arith.divf %244, %245 : vector<2x64xf32>
    %247 = vector.extract_strided_slice %246 {offsets = [0, 0], sizes = [2, 32], strides = [1, 1]} : vector<2x64xf32> to vector<2x32xf32>
    %248 = vector.extract_strided_slice %246 {offsets = [0, 32], sizes = [2, 32], strides = [1, 1]} : vector<2x64xf32> to vector<2x32xf32>
    %249 = vector.extract_strided_slice %237 {offsets = [0, 64], sizes = [2, 32], strides = [1, 1]} : vector<2x96xf32> to vector<2x32xf32>
    %250 = vector.extract_strided_slice %238 {offsets = [0, 64], sizes = [2, 32], strides = [1, 1]} : vector<2x96xf32> to vector<2x32xf32>
    %251 = arith.addf %250, %234 : vector<2x32xf32>
    %252 = arith.mulf %247, %251 : vector<2x32xf32>
    %253 = arith.addf %249, %252 : vector<2x32xf32>
    %254 = math.tanh %253 : vector<2x32xf32>
    %cst_60 = arith.constant 1.000000e+00 : f32
    %255 = vector.broadcast %cst_60 : f32 to vector<2x32xf32>
    %256 = arith.subf %255, %248 : vector<2x32xf32>
    %257 = arith.mulf %256, %254 : vector<2x32xf32>
    %258 = arith.mulf %248, %235 : vector<2x32xf32>
    %259 = arith.addf %257, %258 : vector<2x32xf32>
    %260 = vector.shape_cast %259 : vector<2x32xf32> to vector<2x1x32xf32>
    %c0_61 = arith.constant 0 : index
    %c0_62 = arith.constant 0 : index
    %c0_63 = arith.constant 0 : index
    %261 = vector.load %arg3[%c0_61, %c0_62, %c0_63] : memref<2x8x32xf32, #tpu.memory_space<vmem>>, vector<2x1x32xf32>
    tpu.vector_store %arg3[%c0_61, %c0_62, %c0_63], %260 {strides = array<i32>} : memref<2x8x32xf32, #tpu.memory_space<vmem>>, vector<2x1x32xf32>,
    %262 = vector.extract_strided_slice %232 {offsets = [0, 1, 0], sizes = [2, 1, 96], strides = [1, 1, 1]} : vector<2x8x96xf32> to vector<2x1x96xf32>
    %263 = vector.shape_cast %262 : vector<2x1x96xf32> to vector<2x96xf32>
    %cst_64 = arith.constant dense<0.000000e+00> : vector<2x96xf32>
    %264 = tpu.matmul %259, %225, %cst_64 {dimension_numbers = #tpu.dot_dimension_numbers<[1], [0], [0], [1], [0, 0, 1, 1], [], []>} : vector<2x32xf32>, vector<32x96xf32>, vector<2x96xf32> -> vector<2x96xf32>
    %265 = vector.extract_strided_slice %263 {offsets = [0, 0], sizes = [2, 64], strides = [1, 1]} : vector<2x96xf32> to vector<2x64xf32>
    %266 = vector.extract_strided_slice %264 {offsets = [0, 0], sizes = [2, 64], strides = [1, 1]} : vector<2x96xf32> to vector<2x64xf32>
    %267 = arith.addf %265, %266 : vector<2x64xf32>
    %268 = arith.negf %267 : vector<2x64xf32>
    %269 = math.exp %268 : vector<2x64xf32>
    %cst_65 = arith.constant 1.000000e+00 : f32
    %270 = vector.broadcast %cst_65 : f32 to vector<2x64xf32>
    %271 = arith.addf %270, %269 : vector<2x64xf32>
    %272 = arith.divf %270, %271 : vector<2x64xf32>
    %273 = vector.extract_strided_slice %272 {offsets = [0, 0], sizes = [2, 32], strides = [1, 1]} : vector<2x64xf32> to vector<2x32xf32>
    %274 = vector.extract_strided_slice %272 {offsets = [0, 32], sizes = [2, 32], strides = [1, 1]} : vector<2x64xf32> to vector<2x32xf32>
    %275 = vector.extract_strided_slice %263 {offsets = [0, 64], sizes = [2, 32], strides = [1, 1]} : vector<2x96xf32> to vector<2x32xf32>
    %276 = vector.extract_strided_slice %264 {offsets = [0, 64], sizes = [2, 32], strides = [1, 1]} : vector<2x96xf32> to vector<2x32xf32>
    %277 = arith.addf %276, %234 : vector<2x32xf32>
    %278 = arith.mulf %273, %277 : vector<2x32xf32>
    %279 = arith.addf %275, %278 : vector<2x32xf32>
    %280 = math.tanh %279 : vector<2x32xf32>
    %cst_66 = arith.constant 1.000000e+00 : f32
    %281 = vector.broadcast %cst_66 : f32 to vector<2x32xf32>
    %282 = arith.subf %281, %274 : vector<2x32xf32>
    %283 = arith.mulf %282, %280 : vector<2x32xf32>
    %284 = arith.mulf %274, %259 : vector<2x32xf32>
    %285 = arith.addf %283, %284 : vector<2x32xf32>
    %286 = vector.shape_cast %285 : vector<2x32xf32> to vector<2x1x32xf32>
    %c0_67 = arith.constant 0 : index
    %c1_68 = arith.constant 1 : index
    %c0_69 = arith.constant 0 : index
    %287 = vector.load %arg3[%c0_67, %c1_68, %c0_69] : memref<2x8x32xf32, #tpu.memory_space<vmem>>, vector<2x1x32xf32>
    tpu.vector_store %arg3[%c0_67, %c1_68, %c0_69], %286 {strides = array<i32>} : memref<2x8x32xf32, #tpu.memory_space<vmem>>, vector<2x1x32xf32>,
    %288 = vector.extract_strided_slice %232 {offsets = [0, 2, 0], sizes = [2, 1, 96], strides = [1, 1, 1]} : vector<2x8x96xf32> to vector<2x1x96xf32>
    %289 = vector.shape_cast %288 : vector<2x1x96xf32> to vector<2x96xf32>
    %cst_70 = arith.constant dense<0.000000e+00> : vector<2x96xf32>
    %290 = tpu.matmul %285, %225, %cst_70 {dimension_numbers = #tpu.dot_dimension_numbers<[1], [0], [0], [1], [0, 0, 1, 1], [], []>} : vector<2x32xf32>, vector<32x96xf32>, vector<2x96xf32> -> vector<2x96xf32>
    %291 = vector.extract_strided_slice %289 {offsets = [0, 0], sizes = [2, 64], strides = [1, 1]} : vector<2x96xf32> to vector<2x64xf32>
    %292 = vector.extract_strided_slice %290 {offsets = [0, 0], sizes = [2, 64], strides = [1, 1]} : vector<2x96xf32> to vector<2x64xf32>
    %293 = arith.addf %291, %292 : vector<2x64xf32>
    %294 = arith.negf %293 : vector<2x64xf32>
    %295 = math.exp %294 : vector<2x64xf32>
    %cst_71 = arith.constant 1.000000e+00 : f32
    %296 = vector.broadcast %cst_71 : f32 to vector<2x64xf32>
    %297 = arith.addf %296, %295 : vector<2x64xf32>
    %298 = arith.divf %296, %297 : vector<2x64xf32>
    %299 = vector.extract_strided_slice %298 {offsets = [0, 0], sizes = [2, 32], strides = [1, 1]} : vector<2x64xf32> to vector<2x32xf32>
    %300 = vector.extract_strided_slice %298 {offsets = [0, 32], sizes = [2, 32], strides = [1, 1]} : vector<2x64xf32> to vector<2x32xf32>
    %301 = vector.extract_strided_slice %289 {offsets = [0, 64], sizes = [2, 32], strides = [1, 1]} : vector<2x96xf32> to vector<2x32xf32>
    %302 = vector.extract_strided_slice %290 {offsets = [0, 64], sizes = [2, 32], strides = [1, 1]} : vector<2x96xf32> to vector<2x32xf32>
    %303 = arith.addf %302, %234 : vector<2x32xf32>
    %304 = arith.mulf %299, %303 : vector<2x32xf32>
    %305 = arith.addf %301, %304 : vector<2x32xf32>
    %306 = math.tanh %305 : vector<2x32xf32>
    %cst_72 = arith.constant 1.000000e+00 : f32
    %307 = vector.broadcast %cst_72 : f32 to vector<2x32xf32>
    %308 = arith.subf %307, %300 : vector<2x32xf32>
    %309 = arith.mulf %308, %306 : vector<2x32xf32>
    %310 = arith.mulf %300, %285 : vector<2x32xf32>
    %311 = arith.addf %309, %310 : vector<2x32xf32>
    %312 = vector.shape_cast %311 : vector<2x32xf32> to vector<2x1x32xf32>
    %c0_73 = arith.constant 0 : index
    %c2_74 = arith.constant 2 : index
    %c0_75 = arith.constant 0 : index
    %313 = vector.load %arg3[%c0_73, %c2_74, %c0_75] : memref<2x8x32xf32, #tpu.memory_space<vmem>>, vector<2x1x32xf32>
    tpu.vector_store %arg3[%c0_73, %c2_74, %c0_75], %312 {strides = array<i32>} : memref<2x8x32xf32, #tpu.memory_space<vmem>>, vector<2x1x32xf32>,
    %314 = vector.extract_strided_slice %232 {offsets = [0, 3, 0], sizes = [2, 1, 96], strides = [1, 1, 1]} : vector<2x8x96xf32> to vector<2x1x96xf32>
    %315 = vector.shape_cast %314 : vector<2x1x96xf32> to vector<2x96xf32>
    %cst_76 = arith.constant dense<0.000000e+00> : vector<2x96xf32>
    %316 = tpu.matmul %311, %225, %cst_76 {dimension_numbers = #tpu.dot_dimension_numbers<[1], [0], [0], [1], [0, 0, 1, 1], [], []>} : vector<2x32xf32>, vector<32x96xf32>, vector<2x96xf32> -> vector<2x96xf32>
    %317 = vector.extract_strided_slice %315 {offsets = [0, 0], sizes = [2, 64], strides = [1, 1]} : vector<2x96xf32> to vector<2x64xf32>
    %318 = vector.extract_strided_slice %316 {offsets = [0, 0], sizes = [2, 64], strides = [1, 1]} : vector<2x96xf32> to vector<2x64xf32>
    %319 = arith.addf %317, %318 : vector<2x64xf32>
    %320 = arith.negf %319 : vector<2x64xf32>
    %321 = math.exp %320 : vector<2x64xf32>
    %cst_77 = arith.constant 1.000000e+00 : f32
    %322 = vector.broadcast %cst_77 : f32 to vector<2x64xf32>
    %323 = arith.addf %322, %321 : vector<2x64xf32>
    %324 = arith.divf %322, %323 : vector<2x64xf32>
    %325 = vector.extract_strided_slice %324 {offsets = [0, 0], sizes = [2, 32], strides = [1, 1]} : vector<2x64xf32> to vector<2x32xf32>
    %326 = vector.extract_strided_slice %324 {offsets = [0, 32], sizes = [2, 32], strides = [1, 1]} : vector<2x64xf32> to vector<2x32xf32>
    %327 = vector.extract_strided_slice %315 {offsets = [0, 64], sizes = [2, 32], strides = [1, 1]} : vector<2x96xf32> to vector<2x32xf32>
    %328 = vector.extract_strided_slice %316 {offsets = [0, 64], sizes = [2, 32], strides = [1, 1]} : vector<2x96xf32> to vector<2x32xf32>
    %329 = arith.addf %328, %234 : vector<2x32xf32>
    %330 = arith.mulf %325, %329 : vector<2x32xf32>
    %331 = arith.addf %327, %330 : vector<2x32xf32>
    %332 = math.tanh %331 : vector<2x32xf32>
    %cst_78 = arith.constant 1.000000e+00 : f32
    %333 = vector.broadcast %cst_78 : f32 to vector<2x32xf32>
    %334 = arith.subf %333, %326 : vector<2x32xf32>
    %335 = arith.mulf %334, %332 : vector<2x32xf32>
    %336 = arith.mulf %326, %311 : vector<2x32xf32>
    %337 = arith.addf %335, %336 : vector<2x32xf32>
    %338 = vector.shape_cast %337 : vector<2x32xf32> to vector<2x1x32xf32>
    %c0_79 = arith.constant 0 : index
    %c3_80 = arith.constant 3 : index
    %c0_81 = arith.constant 0 : index
    %339 = vector.load %arg3[%c0_79, %c3_80, %c0_81] : memref<2x8x32xf32, #tpu.memory_space<vmem>>, vector<2x1x32xf32>
    tpu.vector_store %arg3[%c0_79, %c3_80, %c0_81], %338 {strides = array<i32>} : memref<2x8x32xf32, #tpu.memory_space<vmem>>, vector<2x1x32xf32>,
    %340 = vector.extract_strided_slice %232 {offsets = [0, 4, 0], sizes = [2, 1, 96], strides = [1, 1, 1]} : vector<2x8x96xf32> to vector<2x1x96xf32>
    %341 = vector.shape_cast %340 : vector<2x1x96xf32> to vector<2x96xf32>
    %cst_82 = arith.constant dense<0.000000e+00> : vector<2x96xf32>
    %342 = tpu.matmul %337, %225, %cst_82 {dimension_numbers = #tpu.dot_dimension_numbers<[1], [0], [0], [1], [0, 0, 1, 1], [], []>} : vector<2x32xf32>, vector<32x96xf32>, vector<2x96xf32> -> vector<2x96xf32>
    %343 = vector.extract_strided_slice %341 {offsets = [0, 0], sizes = [2, 64], strides = [1, 1]} : vector<2x96xf32> to vector<2x64xf32>
    %344 = vector.extract_strided_slice %342 {offsets = [0, 0], sizes = [2, 64], strides = [1, 1]} : vector<2x96xf32> to vector<2x64xf32>
    %345 = arith.addf %343, %344 : vector<2x64xf32>
    %346 = arith.negf %345 : vector<2x64xf32>
    %347 = math.exp %346 : vector<2x64xf32>
    %cst_83 = arith.constant 1.000000e+00 : f32
    %348 = vector.broadcast %cst_83 : f32 to vector<2x64xf32>
    %349 = arith.addf %348, %347 : vector<2x64xf32>
    %350 = arith.divf %348, %349 : vector<2x64xf32>
    %351 = vector.extract_strided_slice %350 {offsets = [0, 0], sizes = [2, 32], strides = [1, 1]} : vector<2x64xf32> to vector<2x32xf32>
    %352 = vector.extract_strided_slice %350 {offsets = [0, 32], sizes = [2, 32], strides = [1, 1]} : vector<2x64xf32> to vector<2x32xf32>
    %353 = vector.extract_strided_slice %341 {offsets = [0, 64], sizes = [2, 32], strides = [1, 1]} : vector<2x96xf32> to vector<2x32xf32>
    %354 = vector.extract_strided_slice %342 {offsets = [0, 64], sizes = [2, 32], strides = [1, 1]} : vector<2x96xf32> to vector<2x32xf32>
    %355 = arith.addf %354, %234 : vector<2x32xf32>
    %356 = arith.mulf %351, %355 : vector<2x32xf32>
    %357 = arith.addf %353, %356 : vector<2x32xf32>
    %358 = math.tanh %357 : vector<2x32xf32>
    %cst_84 = arith.constant 1.000000e+00 : f32
    %359 = vector.broadcast %cst_84 : f32 to vector<2x32xf32>
    %360 = arith.subf %359, %352 : vector<2x32xf32>
    %361 = arith.mulf %360, %358 : vector<2x32xf32>
    %362 = arith.mulf %352, %337 : vector<2x32xf32>
    %363 = arith.addf %361, %362 : vector<2x32xf32>
    %364 = vector.shape_cast %363 : vector<2x32xf32> to vector<2x1x32xf32>
    %c0_85 = arith.constant 0 : index
    %c4_86 = arith.constant 4 : index
    %c0_87 = arith.constant 0 : index
    %365 = vector.load %arg3[%c0_85, %c4_86, %c0_87] : memref<2x8x32xf32, #tpu.memory_space<vmem>>, vector<2x1x32xf32>
    tpu.vector_store %arg3[%c0_85, %c4_86, %c0_87], %364 {strides = array<i32>} : memref<2x8x32xf32, #tpu.memory_space<vmem>>, vector<2x1x32xf32>,
    %366 = vector.extract_strided_slice %232 {offsets = [0, 5, 0], sizes = [2, 1, 96], strides = [1, 1, 1]} : vector<2x8x96xf32> to vector<2x1x96xf32>
    %367 = vector.shape_cast %366 : vector<2x1x96xf32> to vector<2x96xf32>
    %cst_88 = arith.constant dense<0.000000e+00> : vector<2x96xf32>
    %368 = tpu.matmul %363, %225, %cst_88 {dimension_numbers = #tpu.dot_dimension_numbers<[1], [0], [0], [1], [0, 0, 1, 1], [], []>} : vector<2x32xf32>, vector<32x96xf32>, vector<2x96xf32> -> vector<2x96xf32>
    %369 = vector.extract_strided_slice %367 {offsets = [0, 0], sizes = [2, 64], strides = [1, 1]} : vector<2x96xf32> to vector<2x64xf32>
    %370 = vector.extract_strided_slice %368 {offsets = [0, 0], sizes = [2, 64], strides = [1, 1]} : vector<2x96xf32> to vector<2x64xf32>
    %371 = arith.addf %369, %370 : vector<2x64xf32>
    %372 = arith.negf %371 : vector<2x64xf32>
    %373 = math.exp %372 : vector<2x64xf32>
    %cst_89 = arith.constant 1.000000e+00 : f32
    %374 = vector.broadcast %cst_89 : f32 to vector<2x64xf32>
    %375 = arith.addf %374, %373 : vector<2x64xf32>
    %376 = arith.divf %374, %375 : vector<2x64xf32>
    %377 = vector.extract_strided_slice %376 {offsets = [0, 0], sizes = [2, 32], strides = [1, 1]} : vector<2x64xf32> to vector<2x32xf32>
    %378 = vector.extract_strided_slice %376 {offsets = [0, 32], sizes = [2, 32], strides = [1, 1]} : vector<2x64xf32> to vector<2x32xf32>
    %379 = vector.extract_strided_slice %367 {offsets = [0, 64], sizes = [2, 32], strides = [1, 1]} : vector<2x96xf32> to vector<2x32xf32>
    %380 = vector.extract_strided_slice %368 {offsets = [0, 64], sizes = [2, 32], strides = [1, 1]} : vector<2x96xf32> to vector<2x32xf32>
    %381 = arith.addf %380, %234 : vector<2x32xf32>
    %382 = arith.mulf %377, %381 : vector<2x32xf32>
    %383 = arith.addf %379, %382 : vector<2x32xf32>
    %384 = math.tanh %383 : vector<2x32xf32>
    %cst_90 = arith.constant 1.000000e+00 : f32
    %385 = vector.broadcast %cst_90 : f32 to vector<2x32xf32>
    %386 = arith.subf %385, %378 : vector<2x32xf32>
    %387 = arith.mulf %386, %384 : vector<2x32xf32>
    %388 = arith.mulf %378, %363 : vector<2x32xf32>
    %389 = arith.addf %387, %388 : vector<2x32xf32>
    %390 = vector.shape_cast %389 : vector<2x32xf32> to vector<2x1x32xf32>
    %c0_91 = arith.constant 0 : index
    %c5_92 = arith.constant 5 : index
    %c0_93 = arith.constant 0 : index
    %391 = vector.load %arg3[%c0_91, %c5_92, %c0_93] : memref<2x8x32xf32, #tpu.memory_space<vmem>>, vector<2x1x32xf32>
    tpu.vector_store %arg3[%c0_91, %c5_92, %c0_93], %390 {strides = array<i32>} : memref<2x8x32xf32, #tpu.memory_space<vmem>>, vector<2x1x32xf32>,
    %392 = vector.extract_strided_slice %232 {offsets = [0, 6, 0], sizes = [2, 1, 96], strides = [1, 1, 1]} : vector<2x8x96xf32> to vector<2x1x96xf32>
    %393 = vector.shape_cast %392 : vector<2x1x96xf32> to vector<2x96xf32>
    %cst_94 = arith.constant dense<0.000000e+00> : vector<2x96xf32>
    %394 = tpu.matmul %389, %225, %cst_94 {dimension_numbers = #tpu.dot_dimension_numbers<[1], [0], [0], [1], [0, 0, 1, 1], [], []>} : vector<2x32xf32>, vector<32x96xf32>, vector<2x96xf32> -> vector<2x96xf32>
    %395 = vector.extract_strided_slice %393 {offsets = [0, 0], sizes = [2, 64], strides = [1, 1]} : vector<2x96xf32> to vector<2x64xf32>
    %396 = vector.extract_strided_slice %394 {offsets = [0, 0], sizes = [2, 64], strides = [1, 1]} : vector<2x96xf32> to vector<2x64xf32>
    %397 = arith.addf %395, %396 : vector<2x64xf32>
    %398 = arith.negf %397 : vector<2x64xf32>
    %399 = math.exp %398 : vector<2x64xf32>
    %cst_95 = arith.constant 1.000000e+00 : f32
    %400 = vector.broadcast %cst_95 : f32 to vector<2x64xf32>
    %401 = arith.addf %400, %399 : vector<2x64xf32>
    %402 = arith.divf %400, %401 : vector<2x64xf32>
    %403 = vector.extract_strided_slice %402 {offsets = [0, 0], sizes = [2, 32], strides = [1, 1]} : vector<2x64xf32> to vector<2x32xf32>
    %404 = vector.extract_strided_slice %402 {offsets = [0, 32], sizes = [2, 32], strides = [1, 1]} : vector<2x64xf32> to vector<2x32xf32>
    %405 = vector.extract_strided_slice %393 {offsets = [0, 64], sizes = [2, 32], strides = [1, 1]} : vector<2x96xf32> to vector<2x32xf32>
    %406 = vector.extract_strided_slice %394 {offsets = [0, 64], sizes = [2, 32], strides = [1, 1]} : vector<2x96xf32> to vector<2x32xf32>
    %407 = arith.addf %406, %234 : vector<2x32xf32>
    %408 = arith.mulf %403, %407 : vector<2x32xf32>
    %409 = arith.addf %405, %408 : vector<2x32xf32>
    %410 = math.tanh %409 : vector<2x32xf32>
    %cst_96 = arith.constant 1.000000e+00 : f32
    %411 = vector.broadcast %cst_96 : f32 to vector<2x32xf32>
    %412 = arith.subf %411, %404 : vector<2x32xf32>
    %413 = arith.mulf %412, %410 : vector<2x32xf32>
    %414 = arith.mulf %404, %389 : vector<2x32xf32>
    %415 = arith.addf %413, %414 : vector<2x32xf32>
    %416 = vector.shape_cast %415 : vector<2x32xf32> to vector<2x1x32xf32>
    %c0_97 = arith.constant 0 : index
    %c6_98 = arith.constant 6 : index
    %c0_99 = arith.constant 0 : index
    %417 = vector.load %arg3[%c0_97, %c6_98, %c0_99] : memref<2x8x32xf32, #tpu.memory_space<vmem>>, vector<2x1x32xf32>
    tpu.vector_store %arg3[%c0_97, %c6_98, %c0_99], %416 {strides = array<i32>} : memref<2x8x32xf32, #tpu.memory_space<vmem>>, vector<2x1x32xf32>,
    %418 = vector.extract_strided_slice %232 {offsets = [0, 7, 0], sizes = [2, 1, 96], strides = [1, 1, 1]} : vector<2x8x96xf32> to vector<2x1x96xf32>
    %419 = vector.shape_cast %418 : vector<2x1x96xf32> to vector<2x96xf32>
    %cst_100 = arith.constant dense<0.000000e+00> : vector<2x96xf32>
    %420 = tpu.matmul %415, %225, %cst_100 {dimension_numbers = #tpu.dot_dimension_numbers<[1], [0], [0], [1], [0, 0, 1, 1], [], []>} : vector<2x32xf32>, vector<32x96xf32>, vector<2x96xf32> -> vector<2x96xf32>
    %421 = vector.extract_strided_slice %419 {offsets = [0, 0], sizes = [2, 64], strides = [1, 1]} : vector<2x96xf32> to vector<2x64xf32>
    %422 = vector.extract_strided_slice %420 {offsets = [0, 0], sizes = [2, 64], strides = [1, 1]} : vector<2x96xf32> to vector<2x64xf32>
    %423 = arith.addf %421, %422 : vector<2x64xf32>
    %424 = arith.negf %423 : vector<2x64xf32>
    %425 = math.exp %424 : vector<2x64xf32>
    %cst_101 = arith.constant 1.000000e+00 : f32
    %426 = vector.broadcast %cst_101 : f32 to vector<2x64xf32>
    %427 = arith.addf %426, %425 : vector<2x64xf32>
    %428 = arith.divf %426, %427 : vector<2x64xf32>
    %429 = vector.extract_strided_slice %428 {offsets = [0, 0], sizes = [2, 32], strides = [1, 1]} : vector<2x64xf32> to vector<2x32xf32>
    %430 = vector.extract_strided_slice %428 {offsets = [0, 32], sizes = [2, 32], strides = [1, 1]} : vector<2x64xf32> to vector<2x32xf32>
    %431 = vector.extract_strided_slice %419 {offsets = [0, 64], sizes = [2, 32], strides = [1, 1]} : vector<2x96xf32> to vector<2x32xf32>
    %432 = vector.extract_strided_slice %420 {offsets = [0, 64], sizes = [2, 32], strides = [1, 1]} : vector<2x96xf32> to vector<2x32xf32>
    %433 = arith.addf %432, %234 : vector<2x32xf32>
    %434 = arith.mulf %429, %433 : vector<2x32xf32>
    %435 = arith.addf %431, %434 : vector<2x32xf32>
    %436 = math.tanh %435 : vector<2x32xf32>
    %cst_102 = arith.constant 1.000000e+00 : f32
    %437 = vector.broadcast %cst_102 : f32 to vector<2x32xf32>
    %438 = arith.subf %437, %430 : vector<2x32xf32>
    %439 = arith.mulf %438, %436 : vector<2x32xf32>
    %440 = arith.mulf %430, %415 : vector<2x32xf32>
    %441 = arith.addf %439, %440 : vector<2x32xf32>
    %442 = vector.shape_cast %441 : vector<2x32xf32> to vector<2x1x32xf32>
    %c0_103 = arith.constant 0 : index
    %c7_104 = arith.constant 7 : index
    %c0_105 = arith.constant 0 : index
    %443 = vector.load %arg3[%c0_103, %c7_104, %c0_105] : memref<2x8x32xf32, #tpu.memory_space<vmem>>, vector<2x1x32xf32>
    tpu.vector_store %arg3[%c0_103, %c7_104, %c0_105], %442 {strides = array<i32>} : memref<2x8x32xf32, #tpu.memory_space<vmem>>, vector<2x1x32xf32>,
    %c0_106 = arith.constant 0 : index
    %c0_107 = arith.constant 0 : index
    %c0_108 = arith.constant 0 : index
    %444 = vector.load %arg3[%c0_106, %c0_107, %c0_108] : memref<2x8x32xf32, #tpu.memory_space<vmem>>, vector<2x8x32xf32>
    %445 = vector.shape_cast %444 : vector<2x8x32xf32> to vector<16x32xf32>
    %c120 = arith.constant 120 : index
    %c0_109 = arith.constant 0 : index
    %446 = vector.load %arg1[%c120, %c0_109] : memref<160x96xf32, #tpu.memory_space<vmem>>, vector<32x96xf32>
    %447 = vector.extract_strided_slice %446 {offsets = [0, 0], sizes = [32, 4], strides = [1, 1]} : vector<32x96xf32> to vector<32x4xf32>
    %c152 = arith.constant 152 : index
    %c0_110 = arith.constant 0 : index
    %448 = vector.load %arg1[%c152, %c0_110] : memref<160x96xf32, #tpu.memory_space<vmem>>, vector<1x96xf32>
    %449 = vector.extract_strided_slice %448 {offsets = [0, 0], sizes = [1, 4], strides = [1, 1]} : vector<1x96xf32> to vector<1x4xf32>
    %cst_111 = arith.constant dense<0.000000e+00> : vector<16x4xf32>
    %450 = tpu.matmul %445, %447, %cst_111 {dimension_numbers = #tpu.dot_dimension_numbers<[1], [0], [0], [1], [0, 0, 1, 1], [], []>} : vector<16x32xf32>, vector<32x4xf32>, vector<16x4xf32> -> vector<16x4xf32>
    %451 = vector.broadcast %449 : vector<1x4xf32> to vector<16x4xf32>
    %452 = arith.addf %450, %451 : vector<16x4xf32>
    %453 = vector.shape_cast %452 : vector<16x4xf32> to vector<2x8x4xf32>
    %c0_112 = arith.constant 0 : index
    %c0_113 = arith.constant 0 : index
    %c0_114 = arith.constant 0 : index
    %454 = vector.load %arg2[%c0_112, %c0_113, %c0_114] : memref<2x8x4xf32, #tpu.memory_space<vmem>>, vector<2x8x4xf32>
    tpu.vector_store %arg2[%c0_112, %c0_113, %c0_114], %453 {strides = array<i32>} : memref<2x8x4xf32, #tpu.memory_space<vmem>>, vector<2x8x4xf32>,
    return
  }
}

</mosaic_0001>

<bundles_post_ra>
// kernel: tpu_custom_call.1
= control target key start
LH: loop header
LB: loop body
LE: loop exit
PB: predicated region body
PF: predicated region fallthrough
CT: control target
= control target key end

     0   :  { %7 = vsyncpa [#allocation4], 0  ;;  %s2443_s12 = smov [#allocation3]   ;;  %s2444_s14 = smov 128   ;;  %s2941_s0 = inlined_call_operand.vmem [shape: f32[2,8,4], index: 0, kind: input, shape index: {}]   ;;  %s2942_s1 = inlined_call_operand.hbm [shape: f32[160,96], index: 1, kind: input, shape index: {}]   ;;  %s2943_s2 = inlined_call_operand.vmem [shape: f32[2,8,4], index: 2, kind: output, shape index: {}]  }
   0x1   :  { %s14_s11 = sshll.u32 %s2942_s1, 4  ;;  %s16_s13 = sshll.u32 %s2443_s12, 4  ;;  %s15_s11 = int_to_ptr.hbm [resolvable:$true] %s14_s11  ;;  %s17_s13 = int_to_ptr.vmem [resolvable:$true] %s16_s13 }
   0x2   :  { %s2445_s15 = smov 8  }
   0x3   :  { %22 = dma.hbm_to_vmem [thread:$0]  %s15_s11, 2560, %s17_s13, [#allocation4], %s2444_s14, %s2444_s14, %s2445_s15  }
   0x4   :  { %2441 = dma.done.wait [#allocation4], 2560  }
   0x5   :  { %2442 = vsyncadd [#allocation4], 4294964736  ;;  %vm44_vm0 = vcmask 1043456   ;;  %vm2944_vm1 = vcmask 31744   ;;  %v29_v0 = vld [vmem:[#allocation3] sm:$0xf] }
   0x6   :  { %v28_v1 = vld [vmem:[%s2941_s0 + $0x8] sm:$0xff]  ;;  %v33_v2 = vld [vmem:[#allocation3 + $0x20] sm:$0xff]  ;;  %2213 = vmatpush.msk.msra.mxu1 %vm44_vm0, %v29_v0  ;;  %2160 = vmatpush.msk.msra.mxu0 %vm44_vm0, %v29_v0  ;;  %v27_v3 = vld [vmem:[%s2941_s0] sm:$0xff]  ;;  %s2446_s19 = smov 64   ;;  %v2447_v8 = vmov 0.0   ;;  %s2448_s0 = smov 96  }
   0x7   :  { %2162 = vmatmul.msk.f32.vlgmr.msra.gmra.mxu1 %vm2944_vm1, %v28_v1  ;;  %v32_v4 = vld [vmem:[#allocation3 + $0x18] sm:$0xff]  ;;  %2161 = vmatmul.msk.f32.vlgmr.msra.gmra.mxu0 %vm2944_vm1, %v27_v3  ;;  %v2220_v5 = vld [vmem:[#allocation3 + $0x29] ss:$0 sm:$0xff]  ;;  %v31_v6 = vld [vmem:[#allocation3 + $0x10] sm:$0xff]  ;;  %vm195_vm10 = vcmask 1041409   ;;  %vm72_vm11 = vcmask 261120  }
   0x8   :  { %88 = vmatpush.msrb.mxu1 %v33_v2  ;;  %213 = vmatpush.msra.mxu2 %v33_v2  ;;  %v30_v7 = vld [vmem:[#allocation3 + $0x8] sm:$0xff] }
   0x9   :  { %141 = vrot.lane.b32.xlu0 %v2220_v5, %s2446_s19  ;;  %336 = vmatpush.msra.mxu3 %v33_v2  ;;  %v2221_v15 = vld [vmem:[#allocation3 + $0x28] ss:$0 sm:$0xff] }
   0xa   :  { %89 = vmatpush.msrb.mxu1 %v32_v4  ;;  %214 = vmatpush.msra.mxu2 %v32_v4 }
   0xb   :  { %337 = vmatpush.msra.mxu3 %v32_v4  ;;  %844 = vmatpush.msrb.mxu0 %v33_v2 }
   0xc   :  { %90 = vmatpush.msrb.mxu1 %v31_v6  ;;  %215 = vmatpush.msra.mxu2 %v31_v6 }
   0xd   :  { %338 = vmatpush.msra.mxu3 %v31_v6  ;;  %845 = vmatpush.msrb.mxu0 %v32_v4 }
   0xe   :  { %91 = vmatpush.msrb.mxu1 %v30_v7  ;;  %216 = vmatpush.msra.mxu2 %v30_v7 }
   0xf   :  { %92 = vmatmul.f32.vlgmr.msrb.gmra.mxu1 %v2447_v8  ;;  %339 = vmatpush.msra.mxu3 %v30_v7 }
  0x10   :  { %463 = vmatpush.msra.mxu1 %v33_v2  ;;  %590 = vmatpush.msrb.mxu2 %v33_v2 }
  0x11   :  { %717 = vmatpush.msrb.mxu3 %v33_v2  ;;  %846 = vmatpush.msrb.mxu0 %v31_v6 }
  0x12   :  { %464 = vmatpush.msra.mxu1 %v32_v4  ;;  %591 = vmatpush.msrb.mxu2 %v32_v4 }
  0x13   :  { %718 = vmatpush.msrb.mxu3 %v32_v4  ;;  %847 = vmatpush.msrb.mxu0 %v30_v7 }
  0x14   :  { %465 = vmatpush.msra.mxu1 %v31_v6  ;;  %592 = vmatpush.msrb.mxu2 %v31_v6 }
  0x15   :  { %719 = vmatpush.msrb.mxu3 %v31_v6 }
  0x16   :  { %466 = vmatpush.msra.mxu1 %v30_v7  ;;  %593 = vmatpush.msrb.mxu2 %v30_v7 }
  0x17   :  { %720 = vmatpush.msrb.mxu3 %v30_v7 }
  0x18   :  { %971 = vmatpush.msrb.mxu1 %v33_v2 }
  0x1a   :  { %972 = vmatpush.msrb.mxu1 %v32_v4 }
  0x1c   :  { %973 = vmatpush.msrb.mxu1 %v31_v6 }
  0x1e   :  { %974 = vmatpush.msrb.mxu1 %v30_v7 }
  0x7b   :  { %v2477_v10 = vpop.permute.xlu0 %141 }
  0x84   :  { %v68_v9 = vpop.f32.mrf.mxu1  ;;  %v65_v14 = vpop.f32.mrf.mxu0 }
  0x85   :  { %v2482_v16 = vadd.f32 %v2221_v15, %v65_v14  ;;  %v2484_v18 = vadd.f32 %v2221_v15, %v68_v9 }
  0x8c   :  { %v93_v11 = vpop.f32.mrf.mxu1 }
  0x8d   :  { %v144_v12 = vadd.f32 %v2477_v10, %v93_v11  ;;  %v97_v17 = vrot.slane %v93_v11, 1  ;;  %v100_v19 = vadd.f32 %v93_v11, %v2482_v16 }
  0x8f   :  { %147 = vrot.lane.b32.xlu1 %v144_v12, %s2446_s19  ;;  %v146_v13 = vrot.slane %v144_v12, 1  ;;  %v101_v20 = vadd.f32 %v97_v17, %v2484_v18  ;;  %v2163_v21 = vmul.f32 -1.442695, %v100_v19 }
  0x91   :  { %149 = vrot.lane.b32.xlu0 %v146_v13, %s2446_s19  ;;  %v2164_v22 = vmul.f32 -1.442695, %v101_v20  ;;  %2225 = vpow2.f32 %v2163_v21 }
  0x93   :  { %2227 = vpow2.f32 %v2164_v22 }
  0x97   :  { %v2226_v23 = vpop.eup %2225 }
  0x98   :  { %v108_v25 = vadd.f32 1.0, %v2226_v23 }
  0x99   :  { %v2228_v24 = vpop.eup %2227 }
  0x9a   :  { %v109_v26 = vadd.f32 1.0, %v2228_v24  ;;  %2229 = vrcp.f32 %v108_v25  ;;  %v121_v36 = vand.u32 2147483648, %v108_v25  ;;  %vm115_vm3 = vweird.f32 %v108_v25 }
  0x9b   :  { %v119_v37 = vand.u32 2147483647, %v108_v25 }
  0x9c   :  { %2231 = vrcp.f32 %v109_v26  ;;  %v136_v39 = vand.u32 2147483648, %v109_v26  ;;  %vm130_vm6 = vweird.f32 %v109_v26  ;;  %v134_v41 = vand.u32 2147483647, %v109_v26 }
  0x9d   :  { %v122_v42 = vor.u32 1.1754944e-38, %v121_v36  ;;  %vm120_vm8 = vcmp.eq.f32.partialorder %v119_v37, 8.507059e+37 }
  0x9e   :  { %v137_v46 = vor.u32 1.1754944e-38, %v136_v39  ;;  %vm135_vm9 = vcmp.eq.f32.partialorder %v134_v41, 8.507059e+37 }
  0xa0   :  { %v2230_v27 = vpop.eup %2229 }
  0xa1   :  { %v111_v29 = vmul.f32 %v2230_v27, %v108_v25  ;;  %vm116_vm2 = vweird.f32 %v2230_v27 }
  0xa2   :  { %v2232_v28 = vpop.eup %2231  ;;  %vm117_vm5 = vmor %vm115_vm3, %vm116_vm2 }
  0xa3   :  { %v126_v30 = vmul.f32 %v2232_v28, %v109_v26  ;;  %v112_v31 = vsub.f32 1.0, %v111_v29  ;;  %vm131_vm4 = vweird.f32 %v2232_v28 }
  0xa4   :  { %vm132_vm7 = vmor %vm130_vm6, %vm131_vm4 }
  0xa5   :  { %v127_v32 = vsub.f32 1.0, %v126_v30  ;;  %v113_v33 = vmul.f32 %v2230_v27, %v112_v31 }
  0xa7   :  { %v128_v34 = vmul.f32 %v2232_v28, %v127_v32  ;;  %v114_v35 = vadd.f32 %v2230_v27, %v113_v33 }
  0xa9   :  { %v129_v38 = vadd.f32 %v2232_v28, %v128_v34  ;;  %v118_v40 = vsel %vm117_vm5, %v2230_v27, %v114_v35 }
  0xaa   :  { %v123_v45 = vsel %vm120_vm8, %v122_v42, %v118_v40 }
  0xab   :  { %v133_v43 = vsel %vm132_vm7, %v2232_v28, %v129_v38  ;;  %v167_v58 = vsub.f32 1.0, %v123_v45  ;;  %v179_v0 = vmul.f32 0.0, %v123_v45 }
  0xac   :  { %v138_v49 = vsel %vm135_vm9, %v137_v46, %v133_v43 }
  0xad   :  { %v168_v59 = vsub.f32 1.0, %v138_v49  ;;  %v180_v62 = vmul.f32 0.0, %v138_v49 }
 0x101   :  { %v148_v44 = vpop.permute.xlu1 %147 }
 0x102   :  { %v153_v47 = vmul.f32 %v148_v44, %v123_v45 }
 0x103   :  { %v150_v48 = vpop.permute.xlu0 %149 }
 0x104   :  { %v154_v50 = vmul.f32 %v150_v48, %v138_v49  ;;  %157 = vrot.lane.b32.xlu2 %v153_v47, %s2446_s19 }
 0x106   :  { %159 = vrot.lane.b32.xlu1 %v154_v50, %s2446_s19 }
 0x15e   :  { %v158_v51 = vpop.permute.xlu2 %157 }
 0x15f   :  { %v163_v52 = vadd.f32 %v158_v51, %v2482_v16 }
 0x161   :  { %2233 = vtanh.f32 %v163_v52 }
 0x167   :  { %v2234_v53 = vpop.eup %2233 }
 0x168   :  { %171 = vrot.lane.b32.xlu0 %v2234_v53, %s2448_s0 }
 0x178   :  { %v160_v54 = vpop.permute.xlu1 %159 }
 0x179   :  { %v164_v55 = vadd.f32 %v160_v54, %v2484_v18 }
 0x17b   :  { %2235 = vtanh.f32 %v164_v55 }
 0x181   :  { %v2236_v56 = vpop.eup %2235 }
 0x182   :  { %173 = vrot.lane.b32.xlu2 %v2236_v56, %s2448_s0 }
 0x1da   :  { %v172_v57 = vpop.permute.xlu0 %171 }
 0x1db   :  { %v177_v61 = vmul.f32 %v172_v57, %v167_v58 }
 0x1dc   :  { %v174_v60 = vpop.permute.xlu2 %173 }
 0x1dd   :  { %v178_v63 = vmul.f32 %v174_v60, %v168_v59  ;;  %v2496_v2 = vadd.f32 %v179_v0, %v177_v61 }
 0x1df   :  { %v2494_v1 = vadd.f32 %v180_v62, %v178_v63  ;;  %v300_v55 = vrot.slane %v2496_v2, 7 }
 0x1e1   :  { %v194_v3 = vrot.slane %v2494_v1, 7 }
 0x1e3   :  { %v196_v4 = vsel %vm195_vm10, %v194_v3, %v2496_v2 }
 0x1e4   :  { %197 = vrot.lane.b32.xlu1 %v196_v4, %s2448_s0 }
 0x256   :  { %v198_v5 = vpop.permute.xlu1 %197 }
 0x257   :  { %2165 = vmatmul.msk.f32.vlgmr.msra.gmra.mxu2 %vm72_vm11, %v198_v5 }
 0x2da   :  { %v218_v6 = vpop.f32.mrf.mxu2 }
 0x2db   :  { %v265_v7 = vadd.f32 %v218_v6, %v2477_v10  ;;  %v222_v11 = vrot.slane %v218_v6, 7  ;;  %v226_v17 = vadd.f32 %v218_v6, %v2484_v18 }
 0x2dd   :  { %270 = vrot.lane.b32.xlu0 %v265_v7, %s2446_s19  ;;  %v267_v9 = vrot.slane %v265_v7, 7  ;;  %v225_v12 = vadd.f32 %v222_v11, %v2482_v16  ;;  %v2167_v19 = vmul.f32 -1.442695, %v226_v17 }
 0x2df   :  { %268 = vrot.lane.b32.xlu2 %v267_v9, %s2446_s19  ;;  %v2166_v13 = vmul.f32 -1.442695, %v225_v12 }
 0x2e1   :  { %2237 = vpow2.f32 %v2166_v13 }
 0x2e7   :  { %v2238_v14 = vpop.eup %2237 }
 0x2e8   :  { %v233_v15 = vadd.f32 1.0, %v2238_v14 }
 0x2ea   :  { %2239 = vrcp.f32 %v233_v15  ;;  %v246_v27 = vand.u32 2147483648, %v233_v15  ;;  %vm240_vm13 = vweird.f32 %v233_v15  ;;  %v244_v28 = vand.u32 2147483647, %v233_v15 }
 0x2eb   :  { %2241 = vpow2.f32 %v2167_v19 }
 0x2ec   :  { %v247_v30 = vor.u32 1.1754944e-38, %v246_v27  ;;  %vm245_vm15 = vcmp.eq.f32.partialorder %v244_v28, 8.507059e+37 }
 0x2f0   :  { %v2240_v20 = vpop.eup %2239 }
 0x2f1   :  { %v236_v21 = vmul.f32 %v2240_v20, %v233_v15  ;;  %v2242_v23 = vpop.eup %2241  ;;  %vm241_vm12 = vweird.f32 %v2240_v20 }
 0x2f2   :  { %v234_v25 = vadd.f32 1.0, %v2242_v23  ;;  %vm242_vm14 = vmor %vm240_vm13, %vm241_vm12 }
 0x2f3   :  { %v237_v22 = vsub.f32 1.0, %v236_v21 }
 0x2f4   :  { %2243 = vrcp.f32 %v234_v25  ;;  %v261_v39 = vand.u32 2147483648, %v234_v25  ;;  %vm255_vm2 = vweird.f32 %v234_v25  ;;  %v259_v40 = vand.u32 2147483647, %v234_v25 }
 0x2f5   :  { %v238_v24 = vmul.f32 %v2240_v20, %v237_v22 }
 0x2f6   :  { %v262_v42 = vor.u32 1.1754944e-38, %v261_v39  ;;  %vm260_vm4 = vcmp.eq.f32.partialorder %v259_v40, 8.507059e+37 }
 0x2f7   :  { %v239_v26 = vadd.f32 %v2240_v20, %v238_v24 }
 0x2f9   :  { %v243_v29 = vsel %vm242_vm14, %v2240_v20, %v239_v26 }
 0x2fa   :  { %v2244_v31 = vpop.eup %2243  ;;  %v248_v33 = vsel %vm245_vm15, %v247_v30, %v243_v29 }
 0x2fb   :  { %v251_v35 = vmul.f32 %v2244_v31, %v234_v25  ;;  %vm256_vm0 = vweird.f32 %v2244_v31  ;;  %v288_v54 = vsub.f32 1.0, %v248_v33  ;;  %v303_v58 = vmul.f32 %v300_v55, %v248_v33 }
 0x2fc   :  { %vm257_vm3 = vmor %vm255_vm2, %vm256_vm0 }
 0x2fd   :  { %v252_v36 = vsub.f32 1.0, %v251_v35 }
 0x2ff   :  { %v253_v37 = vmul.f32 %v2244_v31, %v252_v36 }
 0x301   :  { %v254_v38 = vadd.f32 %v2244_v31, %v253_v37 }
 0x303   :  { %v258_v41 = vsel %vm257_vm3, %v2244_v31, %v254_v38 }
 0x304   :  { %v263_v44 = vsel %vm260_vm4, %v262_v42, %v258_v41 }
 0x305   :  { %v289_v53 = vsub.f32 1.0, %v263_v44  ;;  %v304_v60 = vmul.f32 %v263_v44, %v194_v3 }
 0x339   :  { %v269_v32 = vpop.permute.xlu2 %268 }
 0x33a   :  { %v274_v34 = vmul.f32 %v269_v32, %v248_v33 }
 0x33c   :  { %278 = vrot.lane.b32.xlu1 %v274_v34, %s2446_s19 }
 0x34f   :  { %v271_v43 = vpop.permute.xlu0 %270 }
 0x350   :  { %v275_v45 = vmul.f32 %v271_v43, %v263_v44 }
 0x352   :  { %280 = vrot.lane.b32.xlu2 %v275_v45, %s2446_s19 }
 0x3ac   :  { %v281_v46 = vpop.permute.xlu2 %280 }
 0x3ad   :  { %v285_v47 = vadd.f32 %v281_v46, %v2484_v18 }
 0x3ae   :  { %v279_v48 = vpop.permute.xlu1 %278 }
 0x3af   :  { %2245 = vtanh.f32 %v285_v47  ;;  %v284_v49 = vadd.f32 %v279_v48, %v2482_v16 }
 0x3b1   :  { %2247 = vtanh.f32 %v284_v49 }
 0x3b5   :  { %v2246_v50 = vpop.eup %2245 }
 0x3b6   :  { %294 = vrot.lane.b32.xlu1 %v2246_v50, %s2448_s0 }
 0x3b7   :  { %v2248_v51 = vpop.eup %2247 }
 0x3b8   :  { %292 = vrot.lane.b32.xlu0 %v2248_v51, %s2448_s0 }
 0x428   :  { %v295_v52 = vpop.permute.xlu1 %294 }
 0x429   :  { %v299_v57 = vmul.f32 %v295_v52, %v289_v53 }
 0x42a   :  { %v293_v56 = vpop.permute.xlu0 %292 }
 0x42b   :  { %v298_v59 = vmul.f32 %v293_v56, %v288_v54  ;;  %v2521_v62 = vadd.f32 %v304_v60, %v299_v57 }
 0x42d   :  { %v2519_v61 = vadd.f32 %v303_v58, %v298_v59  ;;  %v426_v55 = vrot.slane %v2521_v62, 7 }
 0x42f   :  { %v318_v63 = vrot.slane %v2519_v61, 1  ;;  %v425_v53 = vrot.slane %v2519_v61, 7 }
 0x431   :  { %v319_v0 = vsel %vm195_vm10, %v2521_v62, %v318_v63 }
 0x432   :  { %320 = vrot.lane.b32.xlu2 %v319_v0, %s2448_s0 }
 0x48c   :  { %v321_v4 = vpop.permute.xlu2 %320 }
 0x48d   :  { %2168 = vmatmul.msk.f32.vlgmr.msra.gmra.mxu3 %vm72_vm11, %v321_v4 }
 0x510   :  { %v341_v5 = vpop.f32.mrf.mxu3 }
 0x511   :  { %v389_v6 = vadd.f32 %v341_v5, %v2477_v10  ;;  %v345_v3 = vrot.slane %v341_v5, 6  ;;  %v346_v11 = vrot.slane %v341_v5, 7 }
 0x513   :  { %v392_v7 = vrot.slane %v389_v6, 7  ;;  %v391_v9 = vrot.slane %v389_v6, 6  ;;  %v349_v12 = vadd.f32 %v345_v3, %v2482_v16  ;;  %v350_v13 = vadd.f32 %v346_v11, %v2484_v18 }
 0x515   :  { %395 = vrot.lane.b32.xlu1 %v392_v7, %s2446_s19  ;;  %393 = vrot.lane.b32.xlu0 %v391_v9, %s2446_s19  ;;  %v2169_v14 = vmul.f32 -1.442695, %v349_v12  ;;  %v2170_v15 = vmul.f32 -1.442695, %v350_v13 }
 0x517   :  { %2249 = vpow2.f32 %v2169_v14 }
 0x518   :  { %2251 = vpow2.f32 %v2170_v15 }
 0x51d   :  { %v2250_v17 = vpop.eup %2249 }
 0x51e   :  { %v2252_v19 = vpop.eup %2251  ;;  %v357_v20 = vadd.f32 1.0, %v2250_v17 }
 0x51f   :  { %v358_v21 = vadd.f32 1.0, %v2252_v19 }
 0x520   :  { %2253 = vrcp.f32 %v357_v20  ;;  %vm364_vm7 = vweird.f32 %v357_v20  ;;  %v370_v33 = vand.u32 2147483648, %v357_v20  ;;  %v368_v35 = vand.u32 2147483647, %v357_v20 }
 0x521   :  { %2255 = vrcp.f32 %v358_v21  ;;  %v385_v32 = vand.u32 2147483648, %v358_v21  ;;  %vm379_vm8 = vweird.f32 %v358_v21  ;;  %v383_v34 = vand.u32 2147483647, %v358_v21 }
 0x522   :  { %v371_v39 = vor.u32 1.1754944e-38, %v370_v33  ;;  %vm369_vm14 = vcmp.eq.f32.partialorder %v368_v35, 8.507059e+37 }
 0x523   :  { %v386_v38 = vor.u32 1.1754944e-38, %v385_v32  ;;  %vm384_vm13 = vcmp.eq.f32.partialorder %v383_v34, 8.507059e+37 }
 0x526   :  { %v2254_v22 = vpop.eup %2253 }
 0x527   :  { %v2256_v23 = vpop.eup %2255  ;;  %v360_v25 = vmul.f32 %v2254_v22, %v357_v20  ;;  %vm365_vm5 = vweird.f32 %v2254_v22 }
 0x528   :  { %v375_v24 = vmul.f32 %v2256_v23, %v358_v21  ;;  %vm380_vm6 = vweird.f32 %v2256_v23  ;;  %vm366_vm9 = vmor %vm364_vm7, %vm365_vm5 }
 0x529   :  { %v361_v27 = vsub.f32 1.0, %v360_v25  ;;  %vm381_vm12 = vmor %vm379_vm8, %vm380_vm6 }
 0x52a   :  { %v376_v26 = vsub.f32 1.0, %v375_v24 }
 0x52b   :  { %v362_v29 = vmul.f32 %v2254_v22, %v361_v27 }
 0x52c   :  { %v377_v28 = vmul.f32 %v2256_v23, %v376_v26 }
 0x52d   :  { %v363_v31 = vadd.f32 %v2254_v22, %v362_v29 }
 0x52e   :  { %v378_v30 = vadd.f32 %v2256_v23, %v377_v28 }
 0x52f   :  { %v367_v37 = vsel %vm366_vm9, %v2254_v22, %v363_v31 }
 0x530   :  { %v382_v36 = vsel %vm381_vm12, %v2256_v23, %v378_v30  ;;  %v372_v43 = vsel %vm369_vm14, %v371_v39, %v367_v37 }
 0x531   :  { %v387_v41 = vsel %vm384_vm13, %v386_v38, %v382_v36  ;;  %v413_v52 = vsub.f32 1.0, %v372_v43  ;;  %v429_v58 = vmul.f32 %v425_v53, %v372_v43 }
 0x532   :  { %v414_v54 = vsub.f32 1.0, %v387_v41  ;;  %v430_v60 = vmul.f32 %v426_v55, %v387_v41 }
 0x587   :  { %v396_v40 = vpop.permute.xlu1 %395  ;;  %v394_v42 = vpop.permute.xlu0 %393 }
 0x588   :  { %v400_v44 = vmul.f32 %v396_v40, %v387_v41  ;;  %v399_v45 = vmul.f32 %v394_v42, %v372_v43 }
 0x58a   :  { %405 = vrot.lane.b32.xlu0 %v400_v44, %s2446_s19  ;;  %403 = vrot.lane.b32.xlu2 %v399_v45, %s2446_s19 }
 0x5e4   :  { %v404_v46 = vpop.permute.xlu2 %403 }
 0x5e5   :  { %v409_v47 = vadd.f32 %v404_v46, %v2482_v16 }
 0x5e7   :  { %2257 = vtanh.f32 %v409_v47 }
 0x5ed   :  { %v2258_v48 = vpop.eup %2257 }
 0x5ee   :  { %417 = vrot.lane.b32.xlu1 %v2258_v48, %s2448_s0 }
 0x5fc   :  { %v406_v49 = vpop.permute.xlu0 %405 }
 0x5fd   :  { %v410_v50 = vadd.f32 %v406_v49, %v2484_v18 }
 0x5ff   :  { %2259 = vtanh.f32 %v410_v50 }
 0x605   :  { %v2260_v51 = vpop.eup %2259 }
 0x606   :  { %419 = vrot.lane.b32.xlu2 %v2260_v51, %s2448_s0 }
 0x660   :  { %v418_v56 = vpop.permute.xlu1 %417  ;;  %v420_v57 = vpop.permute.xlu2 %419 }
 0x661   :  { %v423_v59 = vmul.f32 %v418_v56, %v413_v52  ;;  %v424_v63 = vmul.f32 %v420_v57, %v414_v54 }
 0x663   :  { %v2541_v0 = vadd.f32 %v429_v58, %v423_v59  ;;  %v2543_v4 = vadd.f32 %v430_v60, %v424_v63 }
 0x665   :  { %v444_v5 = vrot.slane %v2541_v0, 2  ;;  %v445_v6 = vrot.slane %v2543_v4, 1  ;;  %v552_v57 = vrot.slane %v2541_v0, 7  ;;  %v553_v59 = vrot.slane %v2543_v4, 7 }
 0x667   :  { %v446_v7 = vsel %vm195_vm10, %v445_v6, %v444_v5 }
 0x668   :  { %447 = vrot.lane.b32.xlu0 %v446_v7, %s2448_s0 }
 0x6da   :  { %v448_v9 = vpop.permute.xlu0 %447 }
 0x6db   :  { %2171 = vmatmul.msk.f32.vlgmr.msra.gmra.mxu1 %vm72_vm11, %v448_v9 }
 0x758   :  { %v468_v3 = vpop.f32.mrf.mxu1 }
 0x759   :  { %v516_v11 = vadd.f32 %v468_v3, %v2477_v10  ;;  %v473_v14 = vrot.slane %v468_v3, 6  ;;  %v472_v21 = vrot.slane %v468_v3, 5 }
 0x75b   :  { %v519_v12 = vrot.slane %v516_v11, 6  ;;  %v518_v13 = vrot.slane %v516_v11, 5  ;;  %v477_v15 = vadd.f32 %v473_v14, %v2484_v18  ;;  %v476_v22 = vadd.f32 %v472_v21, %v2482_v16 }
 0x75d   :  { %522 = vrot.lane.b32.xlu2 %v519_v12, %s2446_s19  ;;  %520 = vrot.lane.b32.xlu1 %v518_v13, %s2446_s19  ;;  %v2173_v17 = vmul.f32 -1.442695, %v477_v15  ;;  %v2172_v24 = vmul.f32 -1.442695, %v476_v22 }
 0x75f   :  { %2261 = vpow2.f32 %v2173_v17 }
 0x765   :  { %v2262_v19 = vpop.eup %2261 }
 0x766   :  { %v485_v20 = vadd.f32 1.0, %v2262_v19 }
 0x768   :  { %2263 = vrcp.f32 %v485_v20  ;;  %v512_v31 = vand.u32 2147483648, %v485_v20  ;;  %vm506_vm0 = vweird.f32 %v485_v20  ;;  %v510_v32 = vand.u32 2147483647, %v485_v20 }
 0x769   :  { %2265 = vpow2.f32 %v2172_v24 }
 0x76a   :  { %v513_v34 = vor.u32 1.1754944e-38, %v512_v31  ;;  %vm511_vm3 = vcmp.eq.f32.partialorder %v510_v32, 8.507059e+37 }
 0x76e   :  { %v2264_v23 = vpop.eup %2263 }
 0x76f   :  { %v502_v25 = vmul.f32 %v2264_v23, %v485_v20  ;;  %v2266_v27 = vpop.eup %2265  ;;  %vm507_vm15 = vweird.f32 %v2264_v23 }
 0x770   :  { %v484_v29 = vadd.f32 1.0, %v2266_v27  ;;  %vm508_vm2 = vmor %vm506_vm0, %vm507_vm15 }
 0x771   :  { %v503_v26 = vsub.f32 1.0, %v502_v25 }
 0x772   :  { %2267 = vrcp.f32 %v484_v29  ;;  %v497_v43 = vand.u32 2147483648, %v484_v29  ;;  %vm491_vm5 = vweird.f32 %v484_v29  ;;  %v495_v44 = vand.u32 2147483647, %v484_v29 }
 0x773   :  { %v504_v28 = vmul.f32 %v2264_v23, %v503_v26 }
 0x774   :  { %v498_v46 = vor.u32 1.1754944e-38, %v497_v43  ;;  %vm496_vm7 = vcmp.eq.f32.partialorder %v495_v44, 8.507059e+37 }
 0x775   :  { %v505_v30 = vadd.f32 %v2264_v23, %v504_v28 }
 0x777   :  { %v509_v33 = vsel %vm508_vm2, %v2264_v23, %v505_v30 }
 0x778   :  { %v514_v36 = vsel %vm511_vm3, %v513_v34, %v509_v33  ;;  %v2268_v38 = vpop.eup %2267 }
 0x779   :  { %v487_v39 = vmul.f32 %v2268_v38, %v484_v29  ;;  %vm492_vm4 = vweird.f32 %v2268_v38  ;;  %v541_v58 = vsub.f32 1.0, %v514_v36  ;;  %v557_v7 = vmul.f32 %v553_v59, %v514_v36 }
 0x77a   :  { %vm493_vm6 = vmor %vm491_vm5, %vm492_vm4 }
 0x77b   :  { %v488_v40 = vsub.f32 1.0, %v487_v39 }
 0x77d   :  { %v489_v41 = vmul.f32 %v2268_v38, %v488_v40 }
 0x77f   :  { %v490_v42 = vadd.f32 %v2268_v38, %v489_v41 }
 0x781   :  { %v494_v45 = vsel %vm493_vm6, %v2268_v38, %v490_v42 }
 0x782   :  { %v499_v48 = vsel %vm496_vm7, %v498_v46, %v494_v45 }
 0x783   :  { %v540_v56 = vsub.f32 1.0, %v499_v48  ;;  %v556_v5 = vmul.f32 %v552_v57, %v499_v48 }
 0x7b7   :  { %v523_v35 = vpop.permute.xlu2 %522 }
 0x7b8   :  { %v527_v37 = vmul.f32 %v523_v35, %v514_v36 }
 0x7ba   :  { %532 = vrot.lane.b32.xlu1 %v527_v37, %s2446_s19 }
 0x7cf   :  { %v521_v47 = vpop.permute.xlu1 %520 }
 0x7d0   :  { %v526_v49 = vmul.f32 %v521_v47, %v499_v48 }
 0x7d2   :  { %530 = vrot.lane.b32.xlu0 %v526_v49, %s2446_s19 }
 0x82c   :  { %v533_v50 = vpop.permute.xlu1 %532 }
 0x82d   :  { %v537_v51 = vadd.f32 %v533_v50, %v2484_v18 }
 0x82f   :  { %2269 = vtanh.f32 %v537_v51 }
 0x835   :  { %v2270_v52 = vpop.eup %2269 }
 0x836   :  { %546 = vrot.lane.b32.xlu0 %v2270_v52, %s2448_s0 }
 0x844   :  { %v531_v53 = vpop.permute.xlu0 %530 }
 0x845   :  { %v536_v54 = vadd.f32 %v531_v53, %v2482_v16 }
 0x847   :  { %2271 = vtanh.f32 %v536_v54 }
 0x84d   :  { %v2272_v55 = vpop.eup %2271 }
 0x84e   :  { %544 = vrot.lane.b32.xlu2 %v2272_v55, %s2448_s0 }
 0x8a8   :  { %v545_v60 = vpop.permute.xlu2 %544  ;;  %v547_v63 = vpop.permute.xlu0 %546 }
 0x8a9   :  { %v550_v6 = vmul.f32 %v545_v60, %v540_v56  ;;  %v551_v9 = vmul.f32 %v547_v63, %v541_v58 }
 0x8ab   :  { %v2563_v3 = vadd.f32 %v556_v5, %v550_v6  ;;  %v2565_v11 = vadd.f32 %v557_v7, %v551_v9 }
 0x8ad   :  { %v571_v12 = vrot.slane %v2563_v3, 3  ;;  %v572_v13 = vrot.slane %v2565_v11, 2  ;;  %v680_v6 = vrot.slane %v2565_v11, 7  ;;  %v679_v9 = vrot.slane %v2563_v3, 7 }
 0x8af   :  { %v573_v14 = vsel %vm195_vm10, %v572_v13, %v571_v12 }
 0x8b0   :  { %574 = vrot.lane.b32.xlu1 %v573_v14, %s2448_s0 }
 0x922   :  { %v575_v15 = vpop.permute.xlu1 %574 }
 0x923   :  { %2174 = vmatmul.msk.f32.vlgmr.msrb.gmra.mxu2 %vm72_vm11, %v575_v15 }
 0x9a6   :  { %v595_v17 = vpop.f32.mrf.mxu2 }
 0x9a7   :  { %v643_v19 = vadd.f32 %v595_v17, %v2477_v10  ;;  %v599_v22 = vrot.slane %v595_v17, 4  ;;  %v600_v27 = vrot.slane %v595_v17, 5 }
 0x9a9   :  { %v646_v20 = vrot.slane %v643_v19, 5  ;;  %v645_v21 = vrot.slane %v643_v19, 4  ;;  %v603_v23 = vadd.f32 %v599_v22, %v2482_v16  ;;  %v604_v28 = vadd.f32 %v600_v27, %v2484_v18 }
 0x9ab   :  { %649 = vrot.lane.b32.xlu0 %v646_v20, %s2446_s19  ;;  %647 = vrot.lane.b32.xlu2 %v645_v21, %s2446_s19  ;;  %v2175_v24 = vmul.f32 -1.442695, %v603_v23  ;;  %v2176_v30 = vmul.f32 -1.442695, %v604_v28 }
 0x9ad   :  { %2273 = vpow2.f32 %v2175_v24 }
 0x9b3   :  { %v2274_v25 = vpop.eup %2273 }
 0x9b4   :  { %v611_v26 = vadd.f32 1.0, %v2274_v25 }
 0x9b6   :  { %2275 = vrcp.f32 %v611_v26  ;;  %v624_v37 = vand.u32 2147483648, %v611_v26  ;;  %vm618_vm9 = vweird.f32 %v611_v26  ;;  %v622_v38 = vand.u32 2147483647, %v611_v26 }
 0x9b7   :  { %2277 = vpow2.f32 %v2176_v30 }
 0x9b8   :  { %v625_v40 = vor.u32 1.1754944e-38, %v624_v37  ;;  %vm623_vm13 = vcmp.eq.f32.partialorder %v622_v38, 8.507059e+37 }
 0x9bc   :  { %v2276_v29 = vpop.eup %2275 }
 0x9bd   :  { %v614_v31 = vmul.f32 %v2276_v29, %v611_v26  ;;  %v2278_v33 = vpop.eup %2277  ;;  %vm619_vm8 = vweird.f32 %v2276_v29 }
 0x9be   :  { %v612_v35 = vadd.f32 1.0, %v2278_v33  ;;  %vm620_vm12 = vmor %vm618_vm9, %vm619_vm8 }
 0x9bf   :  { %v615_v32 = vsub.f32 1.0, %v614_v31 }
 0x9c0   :  { %2279 = vrcp.f32 %v612_v35  ;;  %v639_v49 = vand.u32 2147483648, %v612_v35  ;;  %vm633_vm15 = vweird.f32 %v612_v35  ;;  %v637_v50 = vand.u32 2147483647, %v612_v35 }
 0x9c1   :  { %v616_v34 = vmul.f32 %v2276_v29, %v615_v32 }
 0x9c2   :  { %v640_v52 = vor.u32 1.1754944e-38, %v639_v49  ;;  %vm638_vm2 = vcmp.eq.f32.partialorder %v637_v50, 8.507059e+37 }
 0x9c3   :  { %v617_v36 = vadd.f32 %v2276_v29, %v616_v34 }
 0x9c5   :  { %v621_v39 = vsel %vm620_vm12, %v2276_v29, %v617_v36 }
 0x9c6   :  { %v626_v42 = vsel %vm623_vm13, %v625_v40, %v621_v39  ;;  %v2280_v44 = vpop.eup %2279 }
 0x9c7   :  { %v629_v45 = vmul.f32 %v2280_v44, %v612_v35  ;;  %vm634_vm14 = vweird.f32 %v2280_v44  ;;  %v667_v7 = vsub.f32 1.0, %v626_v42  ;;  %v683_v17 = vmul.f32 %v679_v9, %v626_v42 }
 0x9c8   :  { %vm635_vm0 = vmor %vm633_vm15, %vm634_vm14 }
 0x9c9   :  { %v630_v46 = vsub.f32 1.0, %v629_v45 }
 0x9cb   :  { %v631_v47 = vmul.f32 %v2280_v44, %v630_v46 }
 0x9cd   :  { %v632_v48 = vadd.f32 %v2280_v44, %v631_v47 }
 0x9cf   :  { %v636_v51 = vsel %vm635_vm0, %v2280_v44, %v632_v48 }
 0x9d0   :  { %v641_v54 = vsel %vm638_vm2, %v640_v52, %v636_v51 }
 0x9d1   :  { %v668_v5 = vsub.f32 1.0, %v641_v54  ;;  %v684_v14 = vmul.f32 %v680_v6, %v641_v54 }
 0xa05   :  { %v648_v41 = vpop.permute.xlu2 %647 }
 0xa06   :  { %v653_v43 = vmul.f32 %v648_v41, %v626_v42 }
 0xa08   :  { %657 = vrot.lane.b32.xlu1 %v653_v43, %s2446_s19 }
 0xa1d   :  { %v650_v53 = vpop.permute.xlu0 %649 }
 0xa1e   :  { %v654_v55 = vmul.f32 %v650_v53, %v641_v54 }
 0xa20   :  { %659 = vrot.lane.b32.xlu2 %v654_v55, %s2446_s19 }
 0xa7a   :  { %v660_v56 = vpop.permute.xlu2 %659  ;;  %v658_v57 = vpop.permute.xlu1 %657 }
 0xa7b   :  { %v664_v58 = vadd.f32 %v660_v56, %v2484_v18  ;;  %v663_v59 = vadd.f32 %v658_v57, %v2482_v16 }
 0xa7d   :  { %2281 = vtanh.f32 %v664_v58 }
 0xa7e   :  { %2283 = vtanh.f32 %v663_v59 }
 0xa83   :  { %v2282_v60 = vpop.eup %2281 }
 0xa84   :  { %v2284_v63 = vpop.eup %2283  ;;  %673 = vrot.lane.b32.xlu1 %v2282_v60, %s2448_s0 }
 0xa85   :  { %671 = vrot.lane.b32.xlu0 %v2284_v63, %s2448_s0 }
 0xaf6   :  { %v674_v12 = vpop.permute.xlu1 %673 }
 0xaf7   :  { %v672_v13 = vpop.permute.xlu0 %671  ;;  %v678_v15 = vmul.f32 %v674_v12, %v668_v5 }
 0xaf8   :  { %v677_v19 = vmul.f32 %v672_v13, %v667_v7 }
 0xaf9   :  { %v2585_v20 = vadd.f32 %v684_v14, %v678_v15 }
 0xafa   :  { %v2587_v21 = vadd.f32 %v683_v17, %v677_v19 }
 0xafb   :  { %v699_v22 = vrot.slane %v2585_v20, 3 }
 0xafc   :  { %v698_v23 = vrot.slane %v2587_v21, 4  ;;  %v806_v19 = vrot.slane %v2587_v21, 7 }
 0xafe   :  { %v700_v24 = vsel %vm195_vm10, %v699_v22, %v698_v23  ;;  %v807_v23 = vrot.slane %v2585_v20, 7 }
 0xaff   :  { %701 = vrot.lane.b32.xlu2 %v700_v24, %s2448_s0 }
 0xb59   :  { %v702_v25 = vpop.permute.xlu2 %701 }
 0xb5a   :  { %2177 = vmatmul.msk.f32.vlgmr.msrb.gmra.mxu3 %vm72_vm11, %v702_v25 }
 0xbdd   :  { %v722_v26 = vpop.f32.mrf.mxu3 }
 0xbde   :  { %v770_v27 = vadd.f32 %v722_v26, %v2477_v10  ;;  %v726_v30 = vrot.slane %v722_v26, 3  ;;  %v727_v31 = vrot.slane %v722_v26, 4 }
 0xbe0   :  { %v773_v28 = vrot.slane %v770_v27, 4  ;;  %v772_v29 = vrot.slane %v770_v27, 3  ;;  %v730_v32 = vadd.f32 %v726_v30, %v2482_v16  ;;  %v731_v33 = vadd.f32 %v727_v31, %v2484_v18 }
 0xbe2   :  { %776 = vrot.lane.b32.xlu1 %v773_v28, %s2446_s19  ;;  %774 = vrot.lane.b32.xlu0 %v772_v29, %s2446_s19  ;;  %v2178_v34 = vmul.f32 -1.442695, %v730_v32  ;;  %v2179_v35 = vmul.f32 -1.442695, %v731_v33 }
 0xbe4   :  { %2285 = vpow2.f32 %v2178_v34 }
 0xbe5   :  { %2287 = vpow2.f32 %v2179_v35 }
 0xbea   :  { %v2286_v36 = vpop.eup %2285 }
 0xbeb   :  { %v2288_v37 = vpop.eup %2287  ;;  %v738_v38 = vadd.f32 1.0, %v2286_v36 }
 0xbec   :  { %v739_v39 = vadd.f32 1.0, %v2288_v37 }
 0xbed   :  { %2289 = vrcp.f32 %v738_v38  ;;  %vm745_vm5 = vweird.f32 %v738_v38  ;;  %v751_v51 = vand.u32 2147483648, %v738_v38  ;;  %v749_v53 = vand.u32 2147483647, %v738_v38 }
 0xbee   :  { %2291 = vrcp.f32 %v739_v39  ;;  %v766_v50 = vand.u32 2147483648, %v739_v39  ;;  %vm760_vm6 = vweird.f32 %v739_v39  ;;  %v764_v52 = vand.u32 2147483647, %v739_v39 }
 0xbef   :  { %v752_v57 = vor.u32 1.1754944e-38, %v751_v51  ;;  %vm750_vm12 = vcmp.eq.f32.partialorder %v749_v53, 8.507059e+37 }
 0xbf0   :  { %v767_v56 = vor.u32 1.1754944e-38, %v766_v50  ;;  %vm765_vm9 = vcmp.eq.f32.partialorder %v764_v52, 8.507059e+37 }
 0xbf3   :  { %v2290_v40 = vpop.eup %2289 }
 0xbf4   :  { %v2292_v41 = vpop.eup %2291  ;;  %v741_v43 = vmul.f32 %v2290_v40, %v738_v38  ;;  %vm746_vm3 = vweird.f32 %v2290_v40 }
 0xbf5   :  { %v756_v42 = vmul.f32 %v2292_v41, %v739_v39  ;;  %vm761_vm4 = vweird.f32 %v2292_v41  ;;  %vm747_vm7 = vmor %vm745_vm5, %vm746_vm3 }
 0xbf6   :  { %v742_v45 = vsub.f32 1.0, %v741_v43  ;;  %vm762_vm8 = vmor %vm760_vm6, %vm761_vm4 }
 0xbf7   :  { %v757_v44 = vsub.f32 1.0, %v756_v42 }
 0xbf8   :  { %v743_v47 = vmul.f32 %v2290_v40, %v742_v45 }
 0xbf9   :  { %v758_v46 = vmul.f32 %v2292_v41, %v757_v44 }
 0xbfa   :  { %v744_v49 = vadd.f32 %v2290_v40, %v743_v47 }
 0xbfb   :  { %v759_v48 = vadd.f32 %v2292_v41, %v758_v46 }
 0xbfc   :  { %v748_v55 = vsel %vm747_vm7, %v2290_v40, %v744_v49 }
 0xbfd   :  { %v763_v54 = vsel %vm762_vm8, %v2292_v41, %v759_v48  ;;  %v753_v63 = vsel %vm750_vm12, %v752_v57, %v748_v55 }
 0xbfe   :  { %v768_v59 = vsel %vm765_vm9, %v767_v56, %v763_v54  ;;  %v794_v17 = vsub.f32 1.0, %v753_v63  ;;  %v810_v26 = vmul.f32 %v806_v19, %v753_v63 }
 0xbff   :  { %v795_v22 = vsub.f32 1.0, %v768_v59  ;;  %v811_v28 = vmul.f32 %v807_v23, %v768_v59 }
 0xc54   :  { %v777_v58 = vpop.permute.xlu1 %776  ;;  %v775_v60 = vpop.permute.xlu0 %774 }
 0xc55   :  { %v781_v5 = vmul.f32 %v777_v58, %v768_v59  ;;  %v780_v6 = vmul.f32 %v775_v60, %v753_v63 }
 0xc57   :  { %786 = vrot.lane.b32.xlu0 %v781_v5, %s2446_s19  ;;  %784 = vrot.lane.b32.xlu2 %v780_v6, %s2446_s19 }
 0xcb1   :  { %v785_v7 = vpop.permute.xlu2 %784 }
 0xcb2   :  { %v790_v9 = vadd.f32 %v785_v7, %v2482_v16 }
 0xcb4   :  { %2293 = vtanh.f32 %v790_v9 }
 0xcba   :  { %v2294_v12 = vpop.eup %2293 }
 0xcbb   :  { %798 = vrot.lane.b32.xlu1 %v2294_v12, %s2448_s0 }
 0xcc9   :  { %v787_v13 = vpop.permute.xlu0 %786 }
 0xcca   :  { %v791_v14 = vadd.f32 %v787_v13, %v2484_v18 }
 0xccc   :  { %2295 = vtanh.f32 %v791_v14 }
 0xcd2   :  { %v2296_v15 = vpop.eup %2295 }
 0xcd3   :  { %800 = vrot.lane.b32.xlu2 %v2296_v15, %s2448_s0 }
 0xd2d   :  { %v799_v24 = vpop.permute.xlu1 %798  ;;  %v801_v25 = vpop.permute.xlu2 %800 }
 0xd2e   :  { %v804_v27 = vmul.f32 %v799_v24, %v794_v17  ;;  %v805_v29 = vmul.f32 %v801_v25, %v795_v22 }
 0xd30   :  { %v2607_v30 = vadd.f32 %v810_v26, %v804_v27  ;;  %v2609_v31 = vadd.f32 %v811_v28, %v805_v29 }
 0xd32   :  { %v825_v32 = vrot.slane %v2607_v30, 5  ;;  %v826_v33 = vrot.slane %v2609_v31, 4 }
 0xd34   :  { %v827_v34 = vsel %vm195_vm10, %v826_v33, %v825_v32  ;;  %v933_v33 = vrot.slane %v2607_v30, 7 }
 0xd35   :  { %828 = vrot.lane.b32.xlu0 %v827_v34, %s2448_s0 }
 0xda7   :  { %v829_v35 = vpop.permute.xlu0 %828 }
 0xda8   :  { %2180 = vmatmul.msk.f32.vlgmr.msrb.gmra.mxu0 %vm72_vm11, %v829_v35  ;;  %v934_v35 = vrot.slane %v2609_v31, 7 }
 0xe25   :  { %v849_v36 = vpop.f32.mrf.mxu0 }
 0xe26   :  { %v897_v37 = vadd.f32 %v849_v36, %v2477_v10  ;;  %v854_v40 = vrot.slane %v849_v36, 3  ;;  %v853_v45 = vrot.slane %v849_v36, 2 }
 0xe28   :  { %v900_v38 = vrot.slane %v897_v37, 3  ;;  %v899_v39 = vrot.slane %v897_v37, 2  ;;  %v858_v41 = vadd.f32 %v854_v40, %v2484_v18  ;;  %v857_v46 = vadd.f32 %v853_v45, %v2482_v16 }
 0xe2a   :  { %903 = vrot.lane.b32.xlu2 %v900_v38, %s2446_s19  ;;  %901 = vrot.lane.b32.xlu1 %v899_v39, %s2446_s19  ;;  %v2182_v42 = vmul.f32 -1.442695, %v858_v41  ;;  %v2181_v48 = vmul.f32 -1.442695, %v857_v46 }
 0xe2c   :  { %2297 = vpow2.f32 %v2182_v42 }
 0xe32   :  { %v2298_v43 = vpop.eup %2297 }
 0xe33   :  { %v866_v44 = vadd.f32 1.0, %v2298_v43 }
 0xe35   :  { %2299 = vrcp.f32 %v866_v44  ;;  %v893_v55 = vand.u32 2147483648, %v866_v44  ;;  %vm887_vm14 = vweird.f32 %v866_v44  ;;  %v891_v56 = vand.u32 2147483647, %v866_v44 }
 0xe36   :  { %2301 = vpow2.f32 %v2181_v48 }
 0xe37   :  { %v894_v58 = vor.u32 1.1754944e-38, %v893_v55  ;;  %vm892_vm0 = vcmp.eq.f32.partialorder %v891_v56, 8.507059e+37 }
 0xe3b   :  { %v2300_v47 = vpop.eup %2299 }
 0xe3c   :  { %v883_v49 = vmul.f32 %v2300_v47, %v866_v44  ;;  %v2302_v51 = vpop.eup %2301  ;;  %vm888_vm13 = vweird.f32 %v2300_v47 }
 0xe3d   :  { %v865_v53 = vadd.f32 1.0, %v2302_v51  ;;  %vm889_vm15 = vmor %vm887_vm14, %vm888_vm13 }
 0xe3e   :  { %v884_v50 = vsub.f32 1.0, %v883_v49 }
 0xe3f   :  { %2303 = vrcp.f32 %v865_v53  ;;  %v878_v13 = vand.u32 2147483648, %v865_v53  ;;  %vm872_vm3 = vweird.f32 %v865_v53  ;;  %v876_v14 = vand.u32 2147483647, %v865_v53 }
 0xe40   :  { %v885_v52 = vmul.f32 %v2300_v47, %v884_v50 }
 0xe41   :  { %v879_v17 = vor.u32 1.1754944e-38, %v878_v13  ;;  %vm877_vm5 = vcmp.eq.f32.partialorder %v876_v14, 8.507059e+37 }
 0xe42   :  { %v886_v54 = vadd.f32 %v2300_v47, %v885_v52 }
 0xe44   :  { %v890_v57 = vsel %vm889_vm15, %v2300_v47, %v886_v54 }
 0xe45   :  { %v895_v60 = vsel %vm892_vm0, %v894_v58, %v890_v57  ;;  %v2304_v5 = vpop.eup %2303  ;;  %vm191_vm0 = vcmask 253952  }
 0xe46   :  { %v868_v6 = vmul.f32 %v2304_v5, %v865_v53  ;;  %vm873_vm2 = vweird.f32 %v2304_v5  ;;  %v922_v34 = vsub.f32 1.0, %v895_v60  ;;  %v938_v40 = vmul.f32 %v934_v35, %v895_v60 }
 0xe47   :  { %vm874_vm4 = vmor %vm872_vm3, %vm873_vm2  ;;  %vm568_vm2 = vcmask 257027   ;;  %vm949_vm3 = vcmask 260102  }
 0xe48   :  { %v869_v7 = vsub.f32 1.0, %v868_v6 }
 0xe4a   :  { %v870_v9 = vmul.f32 %v2304_v5, %v869_v7 }
 0xe4c   :  { %v871_v12 = vadd.f32 %v2304_v5, %v870_v9 }
 0xe4e   :  { %v875_v15 = vsel %vm874_vm4, %v2304_v5, %v871_v12  ;;  %vm315_vm4 = vcmask 254977  }
 0xe4f   :  { %v880_v22 = vsel %vm877_vm5, %v879_v17, %v875_v15  ;;  %vm695_vm5 = vcmask 258052  }
 0xe50   :  { %v921_v32 = vsub.f32 1.0, %v880_v22  ;;  %v937_v38 = vmul.f32 %v933_v33, %v880_v22 }
 0xe84   :  { %v904_v59 = vpop.permute.xlu2 %903 }
 0xe85   :  { %v908_v63 = vmul.f32 %v904_v59, %v895_v60 }
 0xe87   :  { %913 = vrot.lane.b32.xlu1 %v908_v63, %s2446_s19 }
 0xe9c   :  { %v902_v19 = vpop.permute.xlu1 %901 }
 0xe9d   :  { %v907_v23 = vmul.f32 %v902_v19, %v880_v22 }
 0xe9f   :  { %911 = vrot.lane.b32.xlu0 %v907_v23, %s2446_s19 }
 0xef9   :  { %v914_v24 = vpop.permute.xlu1 %913 }
 0xefa   :  { %v918_v25 = vadd.f32 %v914_v24, %v2484_v18 }
 0xefc   :  { %2305 = vtanh.f32 %v918_v25 }
 0xf02   :  { %v2306_v26 = vpop.eup %2305 }
 0xf03   :  { %927 = vrot.lane.b32.xlu0 %v2306_v26, %s2448_s0 }
 0xf11   :  { %v912_v27 = vpop.permute.xlu0 %911 }
 0xf12   :  { %v917_v28 = vadd.f32 %v912_v27, %v2482_v16 }
 0xf14   :  { %2307 = vtanh.f32 %v917_v28 }
 0xf1a   :  { %v2308_v29 = vpop.eup %2307 }
 0xf1b   :  { %925 = vrot.lane.b32.xlu2 %v2308_v29, %s2448_s0 }
 0xf75   :  { %v926_v36 = vpop.permute.xlu2 %925  ;;  %v928_v37 = vpop.permute.xlu0 %927 }
 0xf76   :  { %v931_v39 = vmul.f32 %v926_v36, %v921_v32  ;;  %v932_v41 = vmul.f32 %v928_v37, %v922_v34 }
 0xf78   :  { %v2629_v42 = vadd.f32 %v937_v38, %v931_v39  ;;  %v2631_v43 = vadd.f32 %v938_v40, %v932_v41 }
 0xf7a   :  { %v952_v44 = vrot.slane %v2629_v42, 6  ;;  %v953_v45 = vrot.slane %v2631_v43, 5 }
 0xf7c   :  { %v954_v46 = vsel %vm195_vm10, %v953_v45, %v952_v44 }
 0xf7d   :  { %955 = vrot.lane.b32.xlu1 %v954_v46, %s2448_s0 }
 0xfef   :  { %v956_v47 = vpop.permute.xlu1 %955 }
 0xff0   :  { %2183 = vmatmul.msk.f32.vlgmr.msrb.gmra.mxu1 %vm72_vm11, %v956_v47 }
0x106d   :  { %v976_v48 = vpop.f32.mrf.mxu1 }
0x106e   :  { %v1024_v49 = vadd.f32 %v976_v48, %v2477_v10  ;;  %v980_v52 = vrot.slane %v976_v48, 1  ;;  %v981_v57 = vrot.slane %v976_v48, 2 }
0x1070   :  { %v1027_v50 = vrot.slane %v1024_v49, 2  ;;  %v1026_v51 = vrot.slane %v1024_v49, 1  ;;  %v984_v53 = vadd.f32 %v980_v52, %v2482_v16  ;;  %v985_v58 = vadd.f32 %v981_v57, %v2484_v18  ;;  %v1085_v52 = vld [vmem:[#allocation3 + $0x50] sm:$0xff] }
0x1072   :  { %1030 = vrot.lane.b32.xlu0 %v1027_v50, %s2446_s19  ;;  %1028 = vrot.lane.b32.xlu2 %v1026_v51, %s2446_s19  ;;  %v2184_v54 = vmul.f32 -1.442695, %v984_v53  ;;  %v2185_v60 = vmul.f32 -1.442695, %v985_v58  ;;  %v1088_v50 = vld [vmem:[#allocation3 + $0x68] sm:$0xff]  ;;  %v1086_v51 = vld [vmem:[#allocation3 + $0x58] sm:$0xff] }
0x1073   :  { %1134 = vmatpush.msra.mxu3 %v1088_v50  ;;  %1257 = vmatpush.msra.mxu0 %v1088_v50  ;;  %v1084_v58 = vld [vmem:[#allocation3 + $0x48] sm:$0xff] }
0x1074   :  { %2309 = vpow2.f32 %v2184_v54  ;;  %1379 = vmatpush.msra.mxu1 %v1088_v50  ;;  %1110 = vmatpush.msra.mxu2 %v1084_v58 }
0x107a   :  { %v2310_v55 = vpop.eup %2309 }
0x107b   :  { %v992_v56 = vadd.f32 1.0, %v2310_v55  ;;  %v2222_v55 = vld [vmem:[#allocation3 + $0x71] ss:$0 sm:$0xff] }
0x107d   :  { %2311 = vrcp.f32 %v992_v56  ;;  %v1005_v12 = vand.u32 2147483648, %v992_v56  ;;  %vm999_vm7 = vweird.f32 %v992_v56  ;;  %v1003_v13 = vand.u32 2147483647, %v992_v56 }
0x107e   :  { %2313 = vpow2.f32 %v2185_v60  ;;  %v1082_v60 = vld [vmem:[#allocation3 + $0x38] sm:$0xff] }
0x107f   :  { %v1006_v15 = vor.u32 1.1754944e-38, %v1005_v12  ;;  %vm1004_vm9 = vcmp.eq.f32.partialorder %v1003_v13, 8.507059e+37 }
0x1083   :  { %v2312_v59 = vpop.eup %2311 }
0x1084   :  { %v995_v10 = vmul.f32 %v2312_v59, %v992_v56  ;;  %v2314_v5 = vpop.eup %2313  ;;  %vm1000_vm6 = vweird.f32 %v2312_v59 }
0x1085   :  { %v993_v7 = vadd.f32 1.0, %v2314_v5  ;;  %vm1001_vm8 = vmor %vm999_vm7, %vm1000_vm6  ;;  %vm441_vm6 = vcmask 256002   ;;  %vm2946_vm7 = vcmask 259077  }
0x1086   :  { %v996_v63 = vsub.f32 1.0, %v995_v10  ;;  %v1081_v10 = vld [vmem:[#allocation3 + $0x30] sm:$0xff] }
0x1087   :  { %2315 = vrcp.f32 %v993_v7  ;;  %v1020_v28 = vand.u32 2147483648, %v993_v7  ;;  %vm1014_vm13 = vweird.f32 %v993_v7  ;;  %v1018_v29 = vand.u32 2147483647, %v993_v7 }
0x1088   :  { %v997_v6 = vmul.f32 %v2312_v59, %v996_v63 }
0x1089   :  { %v1021_v33 = vor.u32 1.1754944e-38, %v1020_v28  ;;  %vm1019_vm15 = vcmp.eq.f32.partialorder %v1018_v29, 8.507059e+37 }
0x108a   :  { %v998_v9 = vadd.f32 %v2312_v59, %v997_v6 }
0x108c   :  { %v1002_v14 = vsel %vm1001_vm8, %v2312_v59, %v998_v9  ;;  %v1083_v59 = vld [vmem:[#allocation3 + $0x40] sm:$0xff]  ;;  %vm2945_vm8 = vcmask 261127  }
0x108d   :  { %v2643_v19 = vsel %vm1004_vm9, %v1006_v15, %v1002_v14  ;;  %v2316_v23 = vpop.eup %2315  ;;  %1111 = vmatpush.msra.mxu2 %v1083_v59 }
0x108e   :  { %v1010_v24 = vmul.f32 %v2316_v23, %v993_v7  ;;  %vm1015_vm12 = vweird.f32 %v2316_v23 }
0x108f   :  { %vm1016_vm14 = vmor %vm1014_vm13, %vm1015_vm12  ;;  %1112 = vmatpush.msra.mxu2 %v1082_v60 }
0x1090   :  { %v1011_v25 = vsub.f32 1.0, %v1010_v24 }
0x1091   :  { %1113 = vmatpush.msra.mxu2 %v1081_v10 }
0x1092   :  { %v1012_v26 = vmul.f32 %v2316_v23, %v1011_v25 }
0x1093   :  { %1883 = vmatpush.msrb.mxu2 %v1088_v50 }
0x1094   :  { %v1013_v27 = vadd.f32 %v2316_v23, %v1012_v26 }
0x1096   :  { %v1017_v32 = vsel %vm1016_vm14, %v2316_v23, %v1013_v27 }
0x1097   :  { %v1022_v35 = vsel %vm1019_vm15, %v1021_v33, %v1017_v32 }
0x10cc   :  { %v1029_v17 = vpop.permute.xlu2 %1028 }
0x10cd   :  { %v1034_v22 = vmul.f32 %v1029_v17, %v2643_v19  ;;  %v2223_v17 = vld [vmem:[#allocation3 + $0x70] ss:$0 sm:$0xff] }
0x10cf   :  { %1038 = vrot.lane.b32.xlu1 %v1034_v22, %s2446_s19 }
0x10e4   :  { %v1031_v34 = vpop.permute.xlu0 %1030 }
0x10e5   :  { %v1035_v36 = vmul.f32 %v1031_v34, %v1022_v35 }
0x10e7   :  { %1040 = vrot.lane.b32.xlu2 %v1035_v36, %s2446_s19 }
0x10ef   :  { %185 = vrot.lane.b32.xlu2 %v2496_v2, %s2448_s0 }
0x10f7   :  { %562 = vrot.lane.b32.xlu2 %v2563_v3, %s2448_s0 }
0x10ff   :  { %943 = vrot.lane.b32.xlu2 %v2629_v42, %s2448_s0 }
0x1107   :  { %311 = vrot.lane.b32.xlu2 %v2521_v62, %s2448_s0 }
0x110f   :  { %691 = vrot.lane.b32.xlu2 %v2585_v20, %s2448_s0  ;;  %v1061_v20 = vrot.slane %v2631_v43, 7 }
0x1141   :  { %v1041_v37 = vpop.permute.xlu2 %1040  ;;  %v1039_v38 = vpop.permute.xlu1 %1038 }
0x1142   :  { %v1045_v39 = vadd.f32 %v1041_v37, %v2484_v18  ;;  %v1044_v40 = vadd.f32 %v1039_v38, %v2482_v16 }
0x1144   :  { %2317 = vtanh.f32 %v1045_v39 }
0x1145   :  { %2319 = vtanh.f32 %v1044_v40 }
0x1149   :  { %v186_v2 = vpop.permute.xlu2 %185 }
0x114a   :  { %v2318_v3 = vpop.eup %2317  ;;  %192 = vst.msk [vmem:[#allocation2] sm:$0x1] %vm191_vm0, %v186_v2 }
0x114b   :  { %v2320_v41 = vpop.eup %2319  ;;  %1054 = vrot.lane.b32.xlu1 %v2318_v3, %s2448_s0 }
0x114c   :  { %1052 = vrot.lane.b32.xlu0 %v2320_v41, %s2448_s0 }
0x1151   :  { %v563_v62 = vpop.permute.xlu2 %562 }
0x1152   :  { %569 = vst.msk [vmem:[#allocation2] sm:$0x8] %vm568_vm2, %v563_v62 }
0x1153   :  { %435 = vrot.lane.b32.xlu1 %v2541_v0, %s2448_s0  ;;  %v1049_v0 = vsub.f32 1.0, %v1022_v35 }
0x1154   :  { %309 = vrot.lane.b32.xlu0 %v2519_v61, %s2448_s0 }
0x1159   :  { %v944_v16 = vpop.permute.xlu2 %943 }
0x115a   :  { %950 = vst.msk [vmem:[#allocation2] sm:$0x40] %vm949_vm3, %v944_v16 }
0x115b   :  { %816 = vrot.lane.b32.xlu1 %v2607_v30, %s2448_s0 }
0x115c   :  { %689 = vrot.lane.b32.xlu0 %v2587_v21, %s2448_s0  ;;  %v1048_v21 = vsub.f32 1.0, %v2643_v19 }
0x1161   :  { %v312_v18 = vpop.permute.xlu2 %311 }
0x1162   :  { %317 = vst.msk [vmem:[#allocation2 + $0x8] sm:$0x2] %vm315_vm4, %v312_v18 }
0x1163   :  { %187 = vrot.lane.b32.xlu1 %v2494_v1, %s2448_s0  ;;  %v1060_v1 = vrot.slane %v2629_v42, 7  ;;  %v1087_v42 = vld [vmem:[#allocation3 + $0x60] sm:$0xff] }
0x1164   :  { %437 = vrot.lane.b32.xlu0 %v2543_v4, %s2448_s0  ;;  %v1065_v4 = vmul.f32 %v1061_v20, %v1022_v35  ;;  %1135 = vmatpush.msra.mxu3 %v1087_v42 }
0x1165   :  { %v1064_v46 = vmul.f32 %v1060_v1, %v2643_v19  ;;  %1258 = vmatpush.msra.mxu0 %v1087_v42  ;;  %1380 = vmatpush.msra.mxu1 %v1087_v42 }
0x1166   :  { %1136 = vmatpush.msra.mxu3 %v1086_v51  ;;  %1884 = vmatpush.msrb.mxu2 %v1087_v42 }
0x1167   :  { %1259 = vmatpush.msra.mxu0 %v1086_v51  ;;  %1381 = vmatpush.msra.mxu1 %v1086_v51 }
0x1168   :  { %1137 = vmatpush.msra.mxu3 %v1085_v52  ;;  %1885 = vmatpush.msrb.mxu2 %v1086_v51 }
0x1169   :  { %v692_v61 = vpop.permute.xlu2 %691  ;;  %1138 = vmatmul.f32.vlgmr.msra.gmra.mxu3 %v2447_v8  ;;  %1260 = vmatpush.msra.mxu0 %v1085_v52 }
0x116a   :  { %697 = vst.msk [vmem:[#allocation2 + $0x8] sm:$0x10] %vm695_vm5, %v692_v61  ;;  %1382 = vmatpush.msra.mxu1 %v1085_v52  ;;  %1505 = vmatpush.msrb.mxu3 %v1088_v50 }
0x116b   :  { %564 = vrot.lane.b32.xlu1 %v2565_v11, %s2448_s0  ;;  %1631 = vmatpush.msrb.mxu0 %v1088_v50 }
0x116c   :  { %1757 = vmatpush.msrb.mxu1 %v1088_v50  ;;  %1506 = vmatpush.msrb.mxu3 %v1087_v42 }
0x116d   :  { %1632 = vmatpush.msrb.mxu0 %v1087_v42  ;;  %1886 = vmatpush.msrb.mxu2 %v1085_v52 }
0x116e   :  { %1758 = vmatpush.msrb.mxu1 %v1087_v42  ;;  %1507 = vmatpush.msrb.mxu3 %v1086_v51 }
0x116f   :  { %1633 = vmatpush.msrb.mxu0 %v1086_v51 }
0x1170   :  { %1759 = vmatpush.msrb.mxu1 %v1086_v51  ;;  %1508 = vmatpush.msrb.mxu3 %v1085_v52 }
0x1171   :  { %1634 = vmatpush.msrb.mxu0 %v1085_v52 }
0x1172   :  { %1760 = vmatpush.msrb.mxu1 %v1085_v52  ;;  %2009 = vmatpush.msra.mxu3 %v1088_v50 }
0x1173   :  { %945 = vrot.lane.b32.xlu1 %v2631_v43, %s2448_s0 }
0x1174   :  { %2010 = vmatpush.msra.mxu3 %v1087_v42 }
0x1176   :  { %2011 = vmatpush.msra.mxu3 %v1086_v51 }
0x1178   :  { %2012 = vmatpush.msra.mxu3 %v1085_v52 }
0x11bd   :  { %v1055_v30 = vpop.permute.xlu1 %1054 }
0x11be   :  { %v1053_v44 = vpop.permute.xlu0 %1052  ;;  %v1059_v45 = vmul.f32 %v1055_v30, %v1049_v0 }
0x11bf   :  { %v1058_v47 = vmul.f32 %v1053_v44, %v1048_v21 }
0x11c0   :  { %v1067_v48 = vadd.f32 %v1065_v4, %v1059_v45 }
0x11c1   :  { %v1066_v49 = vadd.f32 %v1064_v46, %v1058_v47 }
0x11c2   :  { %1072 = vrot.lane.b32.xlu2 %v1067_v48, %s2448_s0 }
0x11c3   :  { %1070 = vrot.lane.b32.xlu0 %v1066_v49, %s2448_s0 }
0x11c5   :  { %v436_v11 = vpop.permute.xlu1 %435 }
0x11c6   :  { %v310_v43 = vpop.permute.xlu0 %309  ;;  %442 = vst.msk [vmem:[#allocation2] sm:$0x4] %vm441_vm6, %v436_v11 }
0x11c7   :  { %316 = vst.msk [vmem:[#allocation2] sm:$0x2] %vm315_vm4, %v310_v43 }
0x11cb   :  { %818 = vrot.lane.b32.xlu0 %v2609_v31, %s2448_s0 }
0x11cd   :  { %v817_v53 = vpop.permute.xlu1 %816 }
0x11ce   :  { %v690_v54 = vpop.permute.xlu0 %689  ;;  %823 = vst.msk [vmem:[#allocation2] sm:$0x20] %vm2946_vm7, %v817_v53 }
0x11cf   :  { %696 = vst.msk [vmem:[#allocation2] sm:$0x10] %vm695_vm5, %v690_v54 }
0x11d3   :  { %1187 = vrot.lane.b32.xlu0 %v2222_v55, %s2446_s19 }
0x11d5   :  { %v188_v31 = vpop.permute.xlu1 %187 }
0x11d6   :  { %v438_v56 = vpop.permute.xlu0 %437  ;;  %193 = vst.msk [vmem:[#allocation2 + $0x8] sm:$0x1] %vm191_vm0, %v188_v31 }
0x11d7   :  { %443 = vst.msk [vmem:[#allocation2 + $0x8] sm:$0x4] %vm441_vm6, %v438_v56 }
0x11dd   :  { %v565_v8 = vpop.permute.xlu1 %564 }
0x11de   :  { %570 = vst.msk [vmem:[#allocation2 + $0x8] sm:$0x8] %vm568_vm2, %v565_v8 }
0x11e5   :  { %v946_v57 = vpop.permute.xlu1 %945 }
0x11e6   :  { %951 = vst.msk [vmem:[#allocation2 + $0x8] sm:$0x40] %vm949_vm3, %v946_v57 }
0x11ec   :  { %v1139_v13 = vpop.f32.mrf.mxu3 }
0x11ed   :  { %v1143_v26 = vrot.slane %v1139_v13, 1 }
0x121c   :  { %v1073_v63 = vpop.permute.xlu2 %1072 }
0x121d   :  { %1078 = vst.msk [vmem:[#allocation2 + $0x8] sm:$0x80] %vm2945_vm8, %v1073_v63 }
0x1235   :  { %v1071_v5 = vpop.permute.xlu0 %1070 }
0x1236   :  { %1077 = vst.msk [vmem:[#allocation2] sm:$0x80] %vm2945_vm8, %v1071_v5 }
0x123d   :  { %v819_v6 = vpop.permute.xlu0 %818  ;;  %v1079_v7 = vld [vmem:[#allocation2] sm:$0xff] }
0x123e   :  { %824 = vst.msk [vmem:[#allocation2 + $0x8] sm:$0x20] %vm2946_vm7, %v819_v6  ;;  %2186 = vmatmul.msk.f32.vlgmr.msra.gmra.mxu2 %vm72_vm11, %v1079_v7 }
0x1245   :  { %v1080_v9 = vld [vmem:[#allocation2 + $0x8] sm:$0xff]  ;;  %v2706_v12 = vpop.permute.xlu0 %1187 }
0x1246   :  { %2187 = vmatmul.msk.f32.gmra.mxu2 %vm72_vm11, %v1080_v9  ;;  %v1190_v14 = vadd.f32 %v2706_v12, %v1139_v13 }
0x1248   :  { %v1192_v15 = vrot.slane %v1190_v14, 1  ;;  %1193 = vrot.lane.b32.xlu2 %v1190_v14, %s2446_s19 }
0x124a   :  { %1195 = vrot.lane.b32.xlu1 %v1192_v15, %s2446_s19 }
0x12a2   :  { %v1194_v61 = vpop.permute.xlu2 %1193 }
0x12bc   :  { %v1196_v46 = vpop.permute.xlu1 %1195 }
0x12c1   :  { %v1115_v19 = vpop.f32.mrf.mxu2 }
0x12c2   :  { %v2711_v22 = vadd.f32 %v2223_v17, %v1115_v19 }
0x12c4   :  { %v1146_v23 = vadd.f32 %v1139_v13, %v2711_v22 }
0x12c6   :  { %v2188_v24 = vmul.f32 -1.442695, %v1146_v23 }
0x12c8   :  { %2321 = vpow2.f32 %v2188_v24 }
0x12c9   :  { %v1118_v25 = vpop.f32.mrf.mxu2 }
0x12ca   :  { %v2714_v27 = vadd.f32 %v2223_v17, %v1118_v25 }
0x12cc   :  { %v1147_v28 = vadd.f32 %v1143_v26, %v2714_v27 }
0x12ce   :  { %v2322_v29 = vpop.eup %2321  ;;  %v2189_v32 = vmul.f32 -1.442695, %v1147_v28 }
0x12cf   :  { %v1154_v33 = vadd.f32 1.0, %v2322_v29 }
0x12d0   :  { %2323 = vpow2.f32 %v2189_v32 }
0x12d1   :  { %2325 = vrcp.f32 %v1154_v33  ;;  %v1167_v39 = vand.u32 2147483648, %v1154_v33  ;;  %v1165_v2 = vand.u32 2147483647, %v1154_v33  ;;  %vm1161_vm12 = vweird.f32 %v1154_v33 }
0x12d3   :  { %v1168_v62 = vor.u32 1.1754944e-38, %v1167_v39  ;;  %vm1166_vm14 = vcmp.eq.f32.partialorder %v1165_v2, 8.507059e+37 }
0x12d6   :  { %v2324_v34 = vpop.eup %2323 }
0x12d7   :  { %v2326_v35 = vpop.eup %2325  ;;  %v1155_v36 = vadd.f32 1.0, %v2324_v34 }
0x12d8   :  { %v1157_v37 = vmul.f32 %v2326_v35, %v1154_v33  ;;  %vm1162_vm9 = vweird.f32 %v2326_v35 }
0x12d9   :  { %2327 = vrcp.f32 %v1155_v36  ;;  %vm1163_vm13 = vmor %vm1161_vm12, %vm1162_vm9  ;;  %v1182_v1 = vand.u32 2147483648, %v1155_v36  ;;  %v1180_v44 = vand.u32 2147483647, %v1155_v36  ;;  %vm1176_vm1 = vweird.f32 %v1155_v36 }
0x12da   :  { %v1158_v38 = vsub.f32 1.0, %v1157_v37 }
0x12db   :  { %v1183_v45 = vor.u32 1.1754944e-38, %v1182_v1  ;;  %vm1181_vm9 = vcmp.eq.f32.partialorder %v1180_v44, 8.507059e+37 }
0x12dc   :  { %v1159_v40 = vmul.f32 %v2326_v35, %v1158_v38 }
0x12de   :  { %v1160_v3 = vadd.f32 %v2326_v35, %v1159_v40 }
0x12df   :  { %v2328_v41 = vpop.eup %2327 }
0x12e0   :  { %v1164_v16 = vsel %vm1163_vm13, %v2326_v35, %v1160_v3  ;;  %v1172_v18 = vmul.f32 %v2328_v41, %v1155_v36  ;;  %vm1177_vm15 = vweird.f32 %v2328_v41 }
0x12e1   :  { %v1169_v0 = vsel %vm1166_vm14, %v1168_v62, %v1164_v16  ;;  %vm1178_vm8 = vmor %vm1176_vm1, %vm1177_vm15 }
0x12e2   :  { %v1199_v20 = vmul.f32 %v1194_v61, %v1169_v0  ;;  %v1173_v21 = vsub.f32 1.0, %v1172_v18  ;;  %v1213_v8 = vsub.f32 1.0, %v1169_v0  ;;  %v1225_v58 = vmul.f32 0.0, %v1169_v0 }
0x12e4   :  { %1203 = vrot.lane.b32.xlu1 %v1199_v20, %s2446_s19  ;;  %v1174_v30 = vmul.f32 %v2328_v41, %v1173_v21 }
0x12e6   :  { %v1175_v4 = vadd.f32 %v2328_v41, %v1174_v30 }
0x12e8   :  { %v1179_v47 = vsel %vm1178_vm8, %v2328_v41, %v1175_v4 }
0x12e9   :  { %v1184_v48 = vsel %vm1181_vm9, %v1183_v45, %v1179_v47 }
0x12ea   :  { %v1200_v49 = vmul.f32 %v1196_v46, %v1184_v48  ;;  %v1214_v54 = vsub.f32 1.0, %v1184_v48  ;;  %v1226_v31 = vmul.f32 0.0, %v1184_v48 }
0x12ec   :  { %1205 = vrot.lane.b32.xlu0 %v1200_v49, %s2446_s19 }
0x1356   :  { %v1204_v11 = vpop.permute.xlu1 %1203 }
0x1357   :  { %v1209_v43 = vadd.f32 %v1204_v11, %v2711_v22 }
0x1359   :  { %2329 = vtanh.f32 %v1209_v43 }
0x135e   :  { %v1206_v50 = vpop.permute.xlu0 %1205 }
0x135f   :  { %v2330_v42 = vpop.eup %2329  ;;  %v1210_v51 = vadd.f32 %v1206_v50, %v2714_v27 }
0x1360   :  { %1217 = vrot.lane.b32.xlu0 %v2330_v42, %s2448_s0 }
0x1361   :  { %2331 = vtanh.f32 %v1210_v51 }
0x1367   :  { %v2332_v52 = vpop.eup %2331 }
0x1368   :  { %1219 = vrot.lane.b32.xlu2 %v2332_v52, %s2448_s0 }
0x13c2   :  { %v1220_v53 = vpop.permute.xlu2 %1219 }
0x13c3   :  { %v1224_v55 = vmul.f32 %v1220_v53, %v1214_v54 }
0x13c5   :  { %v2723_v56 = vadd.f32 %v1226_v31, %v1224_v55 }
0x13c7   :  { %v1239_v60 = vrot.slane %v2723_v56, 7 }
0x13d2   :  { %v1218_v57 = vpop.permute.xlu0 %1217 }
0x13d3   :  { %v1223_v59 = vmul.f32 %v1218_v57, %v1213_v8 }
0x13d5   :  { %v2726_v10 = vadd.f32 %v1225_v58, %v1223_v59 }
0x13d7   :  { %v1240_v63 = vsel %vm195_vm10, %v1239_v60, %v2726_v10  ;;  %v1344_v42 = vrot.slane %v2726_v10, 7 }
0x13d8   :  { %1241 = vrot.lane.b32.xlu1 %v1240_v63, %s2448_s0 }
0x144a   :  { %v1242_v5 = vpop.permute.xlu1 %1241 }
0x144b   :  { %2190 = vmatmul.msk.f32.vlgmr.msra.gmra.mxu0 %vm72_vm11, %v1242_v5 }
0x14c8   :  { %v1262_v6 = vpop.f32.mrf.mxu0 }
0x14c9   :  { %v1309_v7 = vadd.f32 %v1262_v6, %v2706_v12  ;;  %v1266_v13 = vrot.slane %v1262_v6, 7  ;;  %v1270_v23 = vadd.f32 %v1262_v6, %v2714_v27 }
0x14cb   :  { %1314 = vrot.lane.b32.xlu0 %v1309_v7, %s2446_s19  ;;  %v1311_v9 = vrot.slane %v1309_v7, 7  ;;  %v1269_v14 = vadd.f32 %v1266_v13, %v2711_v22  ;;  %v2192_v24 = vmul.f32 -1.442695, %v1270_v23 }
0x14cd   :  { %1312 = vrot.lane.b32.xlu2 %v1311_v9, %s2446_s19  ;;  %v2191_v15 = vmul.f32 -1.442695, %v1269_v14 }
0x14cf   :  { %2333 = vpow2.f32 %v2191_v15 }
0x14d5   :  { %v2334_v17 = vpop.eup %2333 }
0x14d6   :  { %v1277_v19 = vadd.f32 1.0, %v2334_v17 }
0x14d8   :  { %2335 = vrcp.f32 %v1277_v19  ;;  %v1290_v35 = vand.u32 2147483648, %v1277_v19  ;;  %vm1284_vm8 = vweird.f32 %v1277_v19  ;;  %v1288_v36 = vand.u32 2147483647, %v1277_v19 }
0x14d9   :  { %2337 = vpow2.f32 %v2192_v24 }
0x14da   :  { %v1291_v38 = vor.u32 1.1754944e-38, %v1290_v35  ;;  %vm1289_vm13 = vcmp.eq.f32.partialorder %v1288_v36, 8.507059e+37 }
0x14de   :  { %v2336_v25 = vpop.eup %2335 }
0x14df   :  { %v1280_v26 = vmul.f32 %v2336_v25, %v1277_v19  ;;  %v2338_v29 = vpop.eup %2337  ;;  %vm1285_vm1 = vweird.f32 %v2336_v25 }
0x14e0   :  { %v1278_v33 = vadd.f32 1.0, %v2338_v29  ;;  %vm1286_vm12 = vmor %vm1284_vm8, %vm1285_vm1 }
0x14e1   :  { %v1281_v28 = vsub.f32 1.0, %v1280_v26 }
0x14e2   :  { %2339 = vrcp.f32 %v1278_v33  ;;  %v1305_v61 = vand.u32 2147483648, %v1278_v33  ;;  %vm1299_vm15 = vweird.f32 %v1278_v33  ;;  %v1303_v0 = vand.u32 2147483647, %v1278_v33 }
0x14e3   :  { %v1282_v32 = vmul.f32 %v2336_v25, %v1281_v28 }
0x14e4   :  { %v1306_v21 = vor.u32 1.1754944e-38, %v1305_v61  ;;  %vm1304_vm1 = vcmp.eq.f32.partialorder %v1303_v0, 8.507059e+37 }
0x14e5   :  { %v1283_v34 = vadd.f32 %v2336_v25, %v1282_v32 }
0x14e7   :  { %v1287_v37 = vsel %vm1286_vm12, %v2336_v25, %v1283_v34 }
0x14e8   :  { %v2340_v39 = vpop.eup %2339  ;;  %v1292_v2 = vsel %vm1289_vm13, %v1291_v38, %v1287_v37 }
0x14e9   :  { %v1295_v41 = vmul.f32 %v2340_v39, %v1278_v33  ;;  %vm1300_vm14 = vweird.f32 %v2340_v39  ;;  %v1332_v50 = vsub.f32 1.0, %v1292_v2  ;;  %v1347_v53 = vmul.f32 %v1344_v42, %v1292_v2 }
0x14ea   :  { %vm1301_vm9 = vmor %vm1299_vm15, %vm1300_vm14 }
0x14eb   :  { %v1296_v62 = vsub.f32 1.0, %v1295_v41 }
0x14ed   :  { %v1297_v16 = vmul.f32 %v2340_v39, %v1296_v62 }
0x14ef   :  { %v1298_v18 = vadd.f32 %v2340_v39, %v1297_v16 }
0x14f1   :  { %v1302_v20 = vsel %vm1301_vm9, %v2340_v39, %v1298_v18 }
0x14f2   :  { %v1307_v30 = vsel %vm1304_vm1, %v1306_v21, %v1302_v20 }
0x14f3   :  { %v1333_v43 = vsub.f32 1.0, %v1307_v30  ;;  %v1348_v55 = vmul.f32 %v1307_v30, %v1239_v60 }
0x1527   :  { %v1313_v40 = vpop.permute.xlu2 %1312 }
0x1528   :  { %v1318_v3 = vmul.f32 %v1313_v40, %v1292_v2 }
0x152a   :  { %1322 = vrot.lane.b32.xlu1 %v1318_v3, %s2446_s19 }
0x153d   :  { %v1315_v1 = vpop.permute.xlu0 %1314 }
0x153e   :  { %v1319_v44 = vmul.f32 %v1315_v1, %v1307_v30 }
0x1540   :  { %1324 = vrot.lane.b32.xlu2 %v1319_v44, %s2446_s19 }
0x159a   :  { %v1325_v4 = vpop.permute.xlu2 %1324 }
0x159b   :  { %v1329_v45 = vadd.f32 %v1325_v4, %v2714_v27 }
0x159c   :  { %v1323_v46 = vpop.permute.xlu1 %1322 }
0x159d   :  { %2341 = vtanh.f32 %v1329_v45  ;;  %v1328_v47 = vadd.f32 %v1323_v46, %v2711_v22 }
0x159f   :  { %2343 = vtanh.f32 %v1328_v47 }
0x15a3   :  { %v2342_v48 = vpop.eup %2341 }
0x15a4   :  { %1338 = vrot.lane.b32.xlu1 %v2342_v48, %s2448_s0 }
0x15a5   :  { %v2344_v49 = vpop.eup %2343 }
0x15a6   :  { %1336 = vrot.lane.b32.xlu0 %v2344_v49, %s2448_s0 }
0x1616   :  { %v1339_v11 = vpop.permute.xlu1 %1338 }
0x1617   :  { %v1343_v52 = vmul.f32 %v1339_v11, %v1333_v43 }
0x1618   :  { %v1337_v51 = vpop.permute.xlu0 %1336 }
0x1619   :  { %v1342_v54 = vmul.f32 %v1337_v51, %v1332_v50  ;;  %v2750_v8 = vadd.f32 %v1348_v55, %v1343_v52 }
0x161b   :  { %v2748_v31 = vadd.f32 %v1347_v53, %v1342_v54  ;;  %v1469_v50 = vrot.slane %v2750_v8, 7 }
0x161d   :  { %v1361_v57 = vrot.slane %v2748_v31, 1  ;;  %v1468_v11 = vrot.slane %v2748_v31, 7 }
0x161f   :  { %v1362_v58 = vsel %vm195_vm10, %v2750_v8, %v1361_v57 }
0x1620   :  { %1363 = vrot.lane.b32.xlu2 %v1362_v58, %s2448_s0 }
0x167a   :  { %v1364_v59 = vpop.permute.xlu2 %1363 }
0x167b   :  { %2193 = vmatmul.msk.f32.vlgmr.msra.gmra.mxu1 %vm72_vm11, %v1364_v59 }
0x16f8   :  { %v1384_v63 = vpop.f32.mrf.mxu1 }
0x16f9   :  { %v1432_v5 = vadd.f32 %v1384_v63, %v2706_v12  ;;  %v1388_v60 = vrot.slane %v1384_v63, 6  ;;  %v1389_v9 = vrot.slane %v1384_v63, 7 }
0x16fb   :  { %v1435_v6 = vrot.slane %v1432_v5, 7  ;;  %v1434_v7 = vrot.slane %v1432_v5, 6  ;;  %v1392_v13 = vadd.f32 %v1388_v60, %v2711_v22  ;;  %v1393_v14 = vadd.f32 %v1389_v9, %v2714_v27 }
0x16fd   :  { %1438 = vrot.lane.b32.xlu1 %v1435_v6, %s2446_s19  ;;  %1436 = vrot.lane.b32.xlu0 %v1434_v7, %s2446_s19  ;;  %v2194_v15 = vmul.f32 -1.442695, %v1392_v13  ;;  %v2195_v17 = vmul.f32 -1.442695, %v1393_v14 }
0x16ff   :  { %2345 = vpow2.f32 %v2194_v15 }
0x1700   :  { %2347 = vpow2.f32 %v2195_v17 }
0x1705   :  { %v2346_v19 = vpop.eup %2345 }
0x1706   :  { %v2348_v23 = vpop.eup %2347  ;;  %v1400_v24 = vadd.f32 1.0, %v2346_v19 }
0x1707   :  { %v1401_v25 = vadd.f32 1.0, %v2348_v23 }
0x1708   :  { %2349 = vrcp.f32 %v1400_v24  ;;  %vm1407_vm13 = vweird.f32 %v1400_v24  ;;  %v1413_v40 = vand.u32 2147483648, %v1400_v24  ;;  %v1411_v3 = vand.u32 2147483647, %v1400_v24 }
0x1709   :  { %2351 = vrcp.f32 %v1401_v25  ;;  %v1428_v39 = vand.u32 2147483648, %v1401_v25  ;;  %vm1422_vm14 = vweird.f32 %v1401_v25  ;;  %v1426_v2 = vand.u32 2147483647, %v1401_v25 }
0x170a   :  { %v1414_v18 = vor.u32 1.1754944e-38, %v1413_v40  ;;  %vm1412_vm7 = vcmp.eq.f32.partialorder %v1411_v3, 8.507059e+37 }
0x170b   :  { %v1429_v16 = vor.u32 1.1754944e-38, %v1428_v39  ;;  %vm1427_vm1 = vcmp.eq.f32.partialorder %v1426_v2, 8.507059e+37 }
0x170e   :  { %v2350_v26 = vpop.eup %2349 }
0x170f   :  { %v2352_v28 = vpop.eup %2351  ;;  %v1403_v32 = vmul.f32 %v2350_v26, %v1400_v24  ;;  %vm1408_vm8 = vweird.f32 %v2350_v26 }
0x1710   :  { %v1418_v29 = vmul.f32 %v2352_v28, %v1401_v25  ;;  %vm1423_vm12 = vweird.f32 %v2352_v28  ;;  %vm1409_vm15 = vmor %vm1407_vm13, %vm1408_vm8 }
0x1711   :  { %v1404_v34 = vsub.f32 1.0, %v1403_v32  ;;  %vm1424_vm9 = vmor %vm1422_vm14, %vm1423_vm12 }
0x1712   :  { %v1419_v33 = vsub.f32 1.0, %v1418_v29 }
0x1713   :  { %v1405_v36 = vmul.f32 %v2350_v26, %v1404_v34 }
0x1714   :  { %v1420_v35 = vmul.f32 %v2352_v28, %v1419_v33 }
0x1715   :  { %v1406_v38 = vadd.f32 %v2350_v26, %v1405_v36 }
0x1716   :  { %v1421_v37 = vadd.f32 %v2352_v28, %v1420_v35 }
0x1717   :  { %v1410_v62 = vsel %vm1409_vm15, %v2350_v26, %v1406_v38 }
0x1718   :  { %v1425_v41 = vsel %vm1424_vm9, %v2352_v28, %v1421_v37  ;;  %v1415_v21 = vsel %vm1412_vm7, %v1414_v18, %v1410_v62 }
0x1719   :  { %v1430_v0 = vsel %vm1427_vm1, %v1429_v16, %v1425_v41  ;;  %v1456_v49 = vsub.f32 1.0, %v1415_v21  ;;  %v1472_v52 = vmul.f32 %v1468_v11, %v1415_v21 }
0x171a   :  { %v1457_v43 = vsub.f32 1.0, %v1430_v0  ;;  %v1473_v54 = vmul.f32 %v1469_v50, %v1430_v0 }
0x176f   :  { %v1439_v61 = vpop.permute.xlu1 %1438  ;;  %v1437_v20 = vpop.permute.xlu0 %1436 }
0x1770   :  { %v1443_v1 = vmul.f32 %v1439_v61, %v1430_v0  ;;  %v1442_v30 = vmul.f32 %v1437_v20, %v1415_v21 }
0x1772   :  { %1448 = vrot.lane.b32.xlu0 %v1443_v1, %s2446_s19  ;;  %1446 = vrot.lane.b32.xlu2 %v1442_v30, %s2446_s19 }
0x17cc   :  { %v1447_v44 = vpop.permute.xlu2 %1446 }
0x17cd   :  { %v1452_v4 = vadd.f32 %v1447_v44, %v2711_v22 }
0x17cf   :  { %2353 = vtanh.f32 %v1452_v4 }
0x17d5   :  { %v2354_v45 = vpop.eup %2353 }
0x17d6   :  { %1460 = vrot.lane.b32.xlu1 %v2354_v45, %s2448_s0 }
0x17e4   :  { %v1449_v46 = vpop.permute.xlu0 %1448 }
0x17e5   :  { %v1453_v47 = vadd.f32 %v1449_v46, %v2714_v27 }
0x17e7   :  { %2355 = vtanh.f32 %v1453_v47 }
0x17ed   :  { %v2356_v48 = vpop.eup %2355 }
0x17ee   :  { %1462 = vrot.lane.b32.xlu2 %v2356_v48, %s2448_s0 }
0x1848   :  { %v1461_v42 = vpop.permute.xlu1 %1460  ;;  %v1463_v51 = vpop.permute.xlu2 %1462 }
0x1849   :  { %v1466_v53 = vmul.f32 %v1461_v42, %v1456_v49  ;;  %v1467_v55 = vmul.f32 %v1463_v51, %v1457_v43 }
0x184b   :  { %v2770_v57 = vadd.f32 %v1472_v52, %v1466_v53  ;;  %v2772_v58 = vadd.f32 %v1473_v54, %v1467_v55 }
0x184d   :  { %v1486_v59 = vrot.slane %v2770_v57, 2  ;;  %v1487_v63 = vrot.slane %v2772_v58, 1  ;;  %v1594_v42 = vrot.slane %v2770_v57, 7  ;;  %v1595_v52 = vrot.slane %v2772_v58, 7 }
0x184f   :  { %v1488_v5 = vsel %vm195_vm10, %v1487_v63, %v1486_v59 }
0x1850   :  { %1489 = vrot.lane.b32.xlu0 %v1488_v5, %s2448_s0 }
0x18c2   :  { %v1490_v6 = vpop.permute.xlu0 %1489 }
0x18c3   :  { %2196 = vmatmul.msk.f32.vlgmr.msrb.gmra.mxu3 %vm72_vm11, %v1490_v6 }
0x1946   :  { %v1510_v7 = vpop.f32.mrf.mxu3 }
0x1947   :  { %v1558_v60 = vadd.f32 %v1510_v7, %v2706_v12  ;;  %v1515_v14 = vrot.slane %v1510_v7, 6  ;;  %v1514_v24 = vrot.slane %v1510_v7, 5 }
0x1949   :  { %v1561_v9 = vrot.slane %v1558_v60, 6  ;;  %v1560_v13 = vrot.slane %v1558_v60, 5  ;;  %v1519_v15 = vadd.f32 %v1515_v14, %v2714_v27  ;;  %v1518_v25 = vadd.f32 %v1514_v24, %v2711_v22 }
0x194b   :  { %1564 = vrot.lane.b32.xlu2 %v1561_v9, %s2446_s19  ;;  %1562 = vrot.lane.b32.xlu1 %v1560_v13, %s2446_s19  ;;  %v2198_v17 = vmul.f32 -1.442695, %v1519_v15  ;;  %v2197_v28 = vmul.f32 -1.442695, %v1518_v25 }
0x194d   :  { %2357 = vpow2.f32 %v2198_v17 }
0x1953   :  { %v2358_v19 = vpop.eup %2357 }
0x1954   :  { %v1527_v23 = vadd.f32 1.0, %v2358_v19 }
0x1956   :  { %2359 = vrcp.f32 %v1527_v23  ;;  %v1554_v37 = vand.u32 2147483648, %v1527_v23  ;;  %vm1548_vm8 = vweird.f32 %v1527_v23  ;;  %v1552_v38 = vand.u32 2147483647, %v1527_v23 }
0x1957   :  { %2361 = vpow2.f32 %v2197_v28 }
0x1958   :  { %v1555_v40 = vor.u32 1.1754944e-38, %v1554_v37  ;;  %vm1553_vm13 = vcmp.eq.f32.partialorder %v1552_v38, 8.507059e+37 }
0x195c   :  { %v2360_v26 = vpop.eup %2359 }
0x195d   :  { %v1544_v29 = vmul.f32 %v2360_v26, %v1527_v23  ;;  %v2362_v33 = vpop.eup %2361  ;;  %vm1549_vm7 = vweird.f32 %v2360_v26 }
0x195e   :  { %v1526_v35 = vadd.f32 1.0, %v2362_v33  ;;  %vm1550_vm12 = vmor %vm1548_vm8, %vm1549_vm7 }
0x195f   :  { %v1545_v32 = vsub.f32 1.0, %v1544_v29 }
0x1960   :  { %2363 = vrcp.f32 %v1526_v35  ;;  %v1539_v20 = vand.u32 2147483648, %v1526_v35  ;;  %vm1533_vm15 = vweird.f32 %v1526_v35  ;;  %v1537_v21 = vand.u32 2147483647, %v1526_v35 }
0x1961   :  { %v1546_v34 = vmul.f32 %v2360_v26, %v1545_v32 }
0x1962   :  { %v1540_v30 = vor.u32 1.1754944e-38, %v1539_v20  ;;  %vm1538_vm1 = vcmp.eq.f32.partialorder %v1537_v21, 8.507059e+37 }
0x1963   :  { %v1547_v36 = vadd.f32 %v2360_v26, %v1546_v34 }
0x1965   :  { %v1551_v39 = vsel %vm1550_vm12, %v2360_v26, %v1547_v36 }
0x1966   :  { %v1556_v3 = vsel %vm1553_vm13, %v1555_v40, %v1551_v39  ;;  %v2364_v62 = vpop.eup %2363 }
0x1967   :  { %v1529_v16 = vmul.f32 %v2364_v62, %v1526_v35  ;;  %vm1534_vm14 = vweird.f32 %v2364_v62  ;;  %v1583_v51 = vsub.f32 1.0, %v1556_v3  ;;  %v1599_v63 = vmul.f32 %v1595_v52, %v1556_v3 }
0x1968   :  { %vm1535_vm9 = vmor %vm1533_vm15, %vm1534_vm14 }
0x1969   :  { %v1530_v18 = vsub.f32 1.0, %v1529_v16 }
0x196b   :  { %v1531_v61 = vmul.f32 %v2364_v62, %v1530_v18 }
0x196d   :  { %v1532_v0 = vadd.f32 %v2364_v62, %v1531_v61 }
0x196f   :  { %v1536_v1 = vsel %vm1535_vm9, %v2364_v62, %v1532_v0 }
0x1970   :  { %v1541_v4 = vsel %vm1538_vm1, %v1540_v30, %v1536_v1 }
0x1971   :  { %v1582_v50 = vsub.f32 1.0, %v1541_v4  ;;  %v1598_v55 = vmul.f32 %v1594_v42, %v1541_v4 }
0x19a5   :  { %v1565_v2 = vpop.permute.xlu2 %1564 }
0x19a6   :  { %v1569_v41 = vmul.f32 %v1565_v2, %v1556_v3 }
0x19a8   :  { %1574 = vrot.lane.b32.xlu1 %v1569_v41, %s2446_s19 }
0x19bd   :  { %v1563_v44 = vpop.permute.xlu1 %1562 }
0x19be   :  { %v1568_v45 = vmul.f32 %v1563_v44, %v1541_v4 }
0x19c0   :  { %1572 = vrot.lane.b32.xlu0 %v1568_v45, %s2446_s19 }
0x1a1a   :  { %v1575_v46 = vpop.permute.xlu1 %1574 }
0x1a1b   :  { %v1579_v47 = vadd.f32 %v1575_v46, %v2714_v27 }
0x1a1d   :  { %2365 = vtanh.f32 %v1579_v47 }
0x1a23   :  { %v2366_v48 = vpop.eup %2365 }
0x1a24   :  { %1588 = vrot.lane.b32.xlu0 %v2366_v48, %s2448_s0 }
0x1a32   :  { %v1573_v49 = vpop.permute.xlu0 %1572 }
0x1a33   :  { %v1578_v11 = vadd.f32 %v1573_v49, %v2711_v22 }
0x1a35   :  { %2367 = vtanh.f32 %v1578_v11 }
0x1a3b   :  { %v2368_v43 = vpop.eup %2367 }
0x1a3c   :  { %1586 = vrot.lane.b32.xlu2 %v2368_v43, %s2448_s0 }
0x1a96   :  { %v1587_v53 = vpop.permute.xlu2 %1586  ;;  %v1589_v54 = vpop.permute.xlu0 %1588 }
0x1a97   :  { %v1592_v59 = vmul.f32 %v1587_v53, %v1582_v50  ;;  %v1593_v5 = vmul.f32 %v1589_v54, %v1583_v51 }
0x1a99   :  { %v2792_v6 = vadd.f32 %v1598_v55, %v1592_v59  ;;  %v2794_v7 = vadd.f32 %v1599_v63, %v1593_v5 }
0x1a9b   :  { %v1612_v60 = vrot.slane %v2792_v6, 3  ;;  %v1613_v9 = vrot.slane %v2794_v7, 2  ;;  %v1721_v55 = vrot.slane %v2794_v7, 7  ;;  %v1720_v63 = vrot.slane %v2792_v6, 7 }
0x1a9d   :  { %v1614_v13 = vsel %vm195_vm10, %v1613_v9, %v1612_v60 }
0x1a9e   :  { %1615 = vrot.lane.b32.xlu1 %v1614_v13, %s2448_s0 }
0x1b10   :  { %v1616_v14 = vpop.permute.xlu1 %1615 }
0x1b11   :  { %2199 = vmatmul.msk.f32.vlgmr.msrb.gmra.mxu0 %vm72_vm11, %v1616_v14 }
0x1b8e   :  { %v1636_v15 = vpop.f32.mrf.mxu0 }
0x1b8f   :  { %v1684_v17 = vadd.f32 %v1636_v15, %v2706_v12  ;;  %v1640_v24 = vrot.slane %v1636_v15, 4  ;;  %v1641_v32 = vrot.slane %v1636_v15, 5 }
0x1b91   :  { %v1687_v19 = vrot.slane %v1684_v17, 5  ;;  %v1686_v23 = vrot.slane %v1684_v17, 4  ;;  %v1644_v25 = vadd.f32 %v1640_v24, %v2711_v22  ;;  %v1645_v33 = vadd.f32 %v1641_v32, %v2714_v27 }
0x1b93   :  { %1690 = vrot.lane.b32.xlu0 %v1687_v19, %s2446_s19  ;;  %1688 = vrot.lane.b32.xlu2 %v1686_v23, %s2446_s19  ;;  %v2200_v26 = vmul.f32 -1.442695, %v1644_v25  ;;  %v2201_v35 = vmul.f32 -1.442695, %v1645_v33 }
0x1b95   :  { %2369 = vpow2.f32 %v2200_v26 }
0x1b9b   :  { %v2370_v28 = vpop.eup %2369 }
0x1b9c   :  { %v1652_v29 = vadd.f32 1.0, %v2370_v28 }
0x1b9e   :  { %2371 = vrcp.f32 %v1652_v29  ;;  %v1665_v3 = vand.u32 2147483648, %v1652_v29  ;;  %vm1659_vm8 = vweird.f32 %v1652_v29  ;;  %v1663_v41 = vand.u32 2147483647, %v1652_v29 }
0x1b9f   :  { %2373 = vpow2.f32 %v2201_v35 }
0x1ba0   :  { %v1666_v16 = vor.u32 1.1754944e-38, %v1665_v3  ;;  %vm1664_vm13 = vcmp.eq.f32.partialorder %v1663_v41, 8.507059e+37 }
0x1ba4   :  { %v2372_v34 = vpop.eup %2371 }
0x1ba5   :  { %v1655_v36 = vmul.f32 %v2372_v34, %v1652_v29  ;;  %v2374_v38 = vpop.eup %2373  ;;  %vm1660_vm7 = vweird.f32 %v2372_v34 }
0x1ba6   :  { %v1653_v40 = vadd.f32 1.0, %v2374_v38  ;;  %vm1661_vm12 = vmor %vm1659_vm8, %vm1660_vm7 }
0x1ba7   :  { %v1656_v37 = vsub.f32 1.0, %v1655_v36 }
0x1ba8   :  { %2375 = vrcp.f32 %v1653_v40  ;;  %v1680_v4 = vand.u32 2147483648, %v1653_v40  ;;  %vm1674_vm15 = vweird.f32 %v1653_v40  ;;  %v1678_v45 = vand.u32 2147483647, %v1653_v40 }
0x1ba9   :  { %v1657_v39 = vmul.f32 %v2372_v34, %v1656_v37 }
0x1baa   :  { %v1681_v47 = vor.u32 1.1754944e-38, %v1680_v4  ;;  %vm1679_vm1 = vcmp.eq.f32.partialorder %v1678_v45, 8.507059e+37 }
0x1bab   :  { %v1658_v2 = vadd.f32 %v2372_v34, %v1657_v39 }
0x1bad   :  { %v1662_v62 = vsel %vm1661_vm12, %v2372_v34, %v1658_v2 }
0x1bae   :  { %v1667_v61 = vsel %vm1664_vm13, %v1666_v16, %v1662_v62  ;;  %v2376_v20 = vpop.eup %2375 }
0x1baf   :  { %v1670_v21 = vmul.f32 %v2376_v20, %v1653_v40  ;;  %vm1675_vm14 = vweird.f32 %v2376_v20  ;;  %v1708_v59 = vsub.f32 1.0, %v1667_v61  ;;  %v1724_v14 = vmul.f32 %v1720_v63, %v1667_v61 }
0x1bb0   :  { %vm1676_vm9 = vmor %vm1674_vm15, %vm1675_vm14 }
0x1bb1   :  { %v1671_v1 = vsub.f32 1.0, %v1670_v21 }
0x1bb3   :  { %v1672_v30 = vmul.f32 %v2376_v20, %v1671_v1 }
0x1bb5   :  { %v1673_v44 = vadd.f32 %v2376_v20, %v1672_v30 }
0x1bb7   :  { %v1677_v46 = vsel %vm1676_vm9, %v2376_v20, %v1673_v44 }
0x1bb8   :  { %v1682_v49 = vsel %vm1679_vm1, %v1681_v47, %v1677_v46 }
0x1bb9   :  { %v1709_v54 = vsub.f32 1.0, %v1682_v49  ;;  %v1725_v9 = vmul.f32 %v1721_v55, %v1682_v49 }
0x1bed   :  { %v1689_v18 = vpop.permute.xlu2 %1688 }
0x1bee   :  { %v1694_v0 = vmul.f32 %v1689_v18, %v1667_v61 }
0x1bf0   :  { %1698 = vrot.lane.b32.xlu1 %v1694_v0, %s2446_s19 }
0x1c05   :  { %v1691_v48 = vpop.permute.xlu0 %1690 }
0x1c06   :  { %v1695_v11 = vmul.f32 %v1691_v48, %v1682_v49 }
0x1c08   :  { %1700 = vrot.lane.b32.xlu2 %v1695_v11, %s2446_s19 }
0x1c62   :  { %v1701_v43 = vpop.permute.xlu2 %1700  ;;  %v1699_v50 = vpop.permute.xlu1 %1698 }
0x1c63   :  { %v1705_v42 = vadd.f32 %v1701_v43, %v2714_v27  ;;  %v1704_v51 = vadd.f32 %v1699_v50, %v2711_v22 }
0x1c65   :  { %2377 = vtanh.f32 %v1705_v42 }
0x1c66   :  { %2379 = vtanh.f32 %v1704_v51 }
0x1c6b   :  { %v2378_v52 = vpop.eup %2377 }
0x1c6c   :  { %v2380_v53 = vpop.eup %2379  ;;  %1714 = vrot.lane.b32.xlu1 %v2378_v52, %s2448_s0 }
0x1c6d   :  { %1712 = vrot.lane.b32.xlu0 %v2380_v53, %s2448_s0 }
0x1cde   :  { %v1715_v5 = vpop.permute.xlu1 %1714 }
0x1cdf   :  { %v1713_v60 = vpop.permute.xlu0 %1712  ;;  %v1719_v13 = vmul.f32 %v1715_v5, %v1709_v54 }
0x1ce0   :  { %v1718_v15 = vmul.f32 %v1713_v60, %v1708_v59 }
0x1ce1   :  { %v2814_v17 = vadd.f32 %v1725_v9, %v1719_v13 }
0x1ce2   :  { %v2816_v19 = vadd.f32 %v1724_v14, %v1718_v15 }
0x1ce3   :  { %v1739_v23 = vrot.slane %v2814_v17, 3 }
0x1ce4   :  { %v1738_v24 = vrot.slane %v2816_v19, 4  ;;  %v1846_v14 = vrot.slane %v2816_v19, 7 }
0x1ce6   :  { %v1740_v25 = vsel %vm195_vm10, %v1739_v23, %v1738_v24  ;;  %v1847_v23 = vrot.slane %v2814_v17, 7 }
0x1ce7   :  { %1741 = vrot.lane.b32.xlu2 %v1740_v25, %s2448_s0 }
0x1d41   :  { %v1742_v26 = vpop.permute.xlu2 %1741 }
0x1d42   :  { %2202 = vmatmul.msk.f32.vlgmr.msrb.gmra.mxu1 %vm72_vm11, %v1742_v26 }
0x1dbf   :  { %v1762_v28 = vpop.f32.mrf.mxu1 }
0x1dc0   :  { %v1810_v29 = vadd.f32 %v1762_v28, %v2706_v12  ;;  %v1766_v34 = vrot.slane %v1762_v28, 3  ;;  %v1767_v35 = vrot.slane %v1762_v28, 4 }
0x1dc2   :  { %v1812_v32 = vrot.slane %v1810_v29, 3  ;;  %v1813_v33 = vrot.slane %v1810_v29, 4  ;;  %v1770_v36 = vadd.f32 %v1766_v34, %v2711_v22  ;;  %v1771_v37 = vadd.f32 %v1767_v35, %v2714_v27 }
0x1dc4   :  { %1816 = vrot.lane.b32.xlu1 %v1813_v33, %s2446_s19  ;;  %1814 = vrot.lane.b32.xlu0 %v1812_v32, %s2446_s19  ;;  %v2203_v38 = vmul.f32 -1.442695, %v1770_v36  ;;  %v2204_v39 = vmul.f32 -1.442695, %v1771_v37 }
0x1dc6   :  { %2381 = vpow2.f32 %v2203_v38 }
0x1dc7   :  { %2383 = vpow2.f32 %v2204_v39 }
0x1dcc   :  { %v2382_v40 = vpop.eup %2381 }
0x1dcd   :  { %v2384_v2 = vpop.eup %2383  ;;  %v1778_v3 = vadd.f32 1.0, %v2382_v40 }
0x1dce   :  { %v1779_v41 = vadd.f32 1.0, %v2384_v2 }
0x1dcf   :  { %2385 = vrcp.f32 %v1778_v3  ;;  %vm1785_vm12 = vweird.f32 %v1778_v3  ;;  %v1791_v45 = vand.u32 2147483648, %v1778_v3  ;;  %v1789_v47 = vand.u32 2147483647, %v1778_v3 }
0x1dd0   :  { %2387 = vrcp.f32 %v1779_v41  ;;  %v1806_v4 = vand.u32 2147483648, %v1779_v41  ;;  %vm1800_vm13 = vweird.f32 %v1779_v41  ;;  %v1804_v46 = vand.u32 2147483647, %v1779_v41 }
0x1dd1   :  { %v1792_v43 = vor.u32 1.1754944e-38, %v1791_v45  ;;  %vm1790_vm1 = vcmp.eq.f32.partialorder %v1789_v47, 8.507059e+37 }
0x1dd2   :  { %v1807_v11 = vor.u32 1.1754944e-38, %v1806_v4  ;;  %vm1805_vm9 = vcmp.eq.f32.partialorder %v1804_v46, 8.507059e+37 }
0x1dd5   :  { %v2386_v62 = vpop.eup %2385 }
0x1dd6   :  { %v2388_v16 = vpop.eup %2387  ;;  %v1781_v61 = vmul.f32 %v2386_v62, %v1778_v3  ;;  %vm1786_vm7 = vweird.f32 %v2386_v62 }
0x1dd7   :  { %v1796_v18 = vmul.f32 %v2388_v16, %v1779_v41  ;;  %vm1801_vm8 = vweird.f32 %v2388_v16  ;;  %vm1787_vm14 = vmor %vm1785_vm12, %vm1786_vm7 }
0x1dd8   :  { %v1782_v20 = vsub.f32 1.0, %v1781_v61  ;;  %vm1802_vm15 = vmor %vm1800_vm13, %vm1801_vm8 }
0x1dd9   :  { %v1797_v0 = vsub.f32 1.0, %v1796_v18 }
0x1dda   :  { %v1783_v1 = vmul.f32 %v2386_v62, %v1782_v20 }
0x1ddb   :  { %v1798_v21 = vmul.f32 %v2388_v16, %v1797_v0 }
0x1ddc   :  { %v1784_v44 = vadd.f32 %v2386_v62, %v1783_v1 }
0x1ddd   :  { %v1799_v30 = vadd.f32 %v2388_v16, %v1798_v21 }
0x1dde   :  { %v1788_v49 = vsel %vm1787_vm14, %v2386_v62, %v1784_v44 }
0x1ddf   :  { %v1803_v48 = vsel %vm1802_vm15, %v2388_v16, %v1799_v30  ;;  %v1793_v52 = vsel %vm1790_vm1, %v1792_v43, %v1788_v49 }
0x1de0   :  { %v1808_v42 = vsel %vm1805_vm9, %v1807_v11, %v1803_v48  ;;  %v1834_v13 = vsub.f32 1.0, %v1793_v52  ;;  %v1850_v26 = vmul.f32 %v1846_v14, %v1793_v52 }
0x1de1   :  { %v1835_v15 = vsub.f32 1.0, %v1808_v42  ;;  %v1851_v29 = vmul.f32 %v1847_v23, %v1808_v42 }
0x1e36   :  { %v1817_v50 = vpop.permute.xlu1 %1816  ;;  %v1815_v51 = vpop.permute.xlu0 %1814 }
0x1e37   :  { %v1821_v53 = vmul.f32 %v1817_v50, %v1808_v42  ;;  %v1820_v54 = vmul.f32 %v1815_v51, %v1793_v52 }
0x1e39   :  { %1826 = vrot.lane.b32.xlu0 %v1821_v53, %s2446_s19  ;;  %1824 = vrot.lane.b32.xlu2 %v1820_v54, %s2446_s19 }
0x1e93   :  { %v1825_v55 = vpop.permute.xlu2 %1824 }
0x1e94   :  { %v1830_v59 = vadd.f32 %v1825_v55, %v2711_v22 }
0x1e96   :  { %2389 = vtanh.f32 %v1830_v59 }
0x1e9c   :  { %v2390_v63 = vpop.eup %2389 }
0x1e9d   :  { %1838 = vrot.lane.b32.xlu1 %v2390_v63, %s2448_s0 }
0x1eab   :  { %v1827_v5 = vpop.permute.xlu0 %1826 }
0x1eac   :  { %v1831_v60 = vadd.f32 %v1827_v5, %v2714_v27 }
0x1eae   :  { %2391 = vtanh.f32 %v1831_v60 }
0x1eb4   :  { %v2392_v9 = vpop.eup %2391 }
0x1eb5   :  { %1840 = vrot.lane.b32.xlu2 %v2392_v9, %s2448_s0 }
0x1f0f   :  { %v1839_v24 = vpop.permute.xlu1 %1838  ;;  %v1841_v25 = vpop.permute.xlu2 %1840 }
0x1f10   :  { %v1844_v28 = vmul.f32 %v1839_v24, %v1834_v13  ;;  %v1845_v32 = vmul.f32 %v1841_v25, %v1835_v15 }
0x1f12   :  { %v2836_v33 = vadd.f32 %v1850_v26, %v1844_v28  ;;  %v2838_v34 = vadd.f32 %v1851_v29, %v1845_v32 }
0x1f14   :  { %v1864_v35 = vrot.slane %v2836_v33, 5  ;;  %v1865_v36 = vrot.slane %v2838_v34, 4 }
0x1f16   :  { %v1866_v37 = vsel %vm195_vm10, %v1865_v36, %v1864_v35  ;;  %v1972_v35 = vrot.slane %v2836_v33, 7 }
0x1f17   :  { %1867 = vrot.lane.b32.xlu0 %v1866_v37, %s2448_s0  ;;  %v1973_v37 = vrot.slane %v2838_v34, 7 }
0x1f89   :  { %v1868_v38 = vpop.permute.xlu0 %1867 }
0x1f8a   :  { %2205 = vmatmul.msk.f32.vlgmr.msrb.gmra.mxu2 %vm72_vm11, %v1868_v38 }
0x200d   :  { %v1888_v39 = vpop.f32.mrf.mxu2 }
0x200e   :  { %v1936_v40 = vadd.f32 %v1888_v39, %v2706_v12  ;;  %v1893_v41 = vrot.slane %v1888_v39, 3  ;;  %v1892_v0 = vrot.slane %v1888_v39, 2 }
0x2010   :  { %v1938_v2 = vrot.slane %v1936_v40, 2  ;;  %v1939_v3 = vrot.slane %v1936_v40, 3  ;;  %v1897_v62 = vadd.f32 %v1893_v41, %v2714_v27  ;;  %v1896_v20 = vadd.f32 %v1892_v0, %v2711_v22 }
0x2012   :  { %1942 = vrot.lane.b32.xlu2 %v1939_v3, %s2446_s19  ;;  %1940 = vrot.lane.b32.xlu1 %v1938_v2, %s2446_s19  ;;  %v2207_v16 = vmul.f32 -1.442695, %v1897_v62  ;;  %v2206_v1 = vmul.f32 -1.442695, %v1896_v20 }
0x2014   :  { %2393 = vpow2.f32 %v2207_v16 }
0x201a   :  { %v2394_v18 = vpop.eup %2393 }
0x201b   :  { %v1905_v61 = vadd.f32 1.0, %v2394_v18 }
0x201d   :  { %2395 = vrcp.f32 %v1905_v61  ;;  %v1932_v48 = vand.u32 2147483648, %v1905_v61  ;;  %vm1926_vm8 = vweird.f32 %v1905_v61  ;;  %v1930_v49 = vand.u32 2147483647, %v1905_v61 }
0x201e   :  { %2397 = vpow2.f32 %v2206_v1 }
0x201f   :  { %v1933_v43 = vor.u32 1.1754944e-38, %v1932_v48  ;;  %vm1931_vm13 = vcmp.eq.f32.partialorder %v1930_v49, 8.507059e+37 }
0x2023   :  { %v2396_v21 = vpop.eup %2395 }
0x2024   :  { %v1922_v30 = vmul.f32 %v2396_v21, %v1905_v61  ;;  %v2398_v4 = vpop.eup %2397  ;;  %vm1927_vm7 = vweird.f32 %v2396_v21 }
0x2025   :  { %v1904_v46 = vadd.f32 1.0, %v2398_v4  ;;  %vm1928_vm12 = vmor %vm1926_vm8, %vm1927_vm7 }
0x2026   :  { %v1923_v44 = vsub.f32 1.0, %v1922_v30 }
0x2027   :  { %2399 = vrcp.f32 %v1904_v46  ;;  %v1917_v63 = vand.u32 2147483648, %v1904_v46  ;;  %vm1911_vm15 = vweird.f32 %v1904_v46  ;;  %v1915_v5 = vand.u32 2147483647, %v1904_v46 }
0x2028   :  { %v1924_v45 = vmul.f32 %v2396_v21, %v1923_v44 }
0x2029   :  { %v1918_v9 = vor.u32 1.1754944e-38, %v1917_v63  ;;  %vm1916_vm1 = vcmp.eq.f32.partialorder %v1915_v5, 8.507059e+37 }
0x202a   :  { %v1925_v47 = vadd.f32 %v2396_v21, %v1924_v45 }
0x202c   :  { %v1929_v11 = vsel %vm1928_vm12, %v2396_v21, %v1925_v47 }
0x202d   :  { %v1934_v42 = vsel %vm1931_vm13, %v1933_v43, %v1929_v11  ;;  %v2400_v52 = vpop.eup %2399 }
0x202e   :  { %v1907_v53 = vmul.f32 %v2400_v52, %v1904_v46  ;;  %vm1912_vm14 = vweird.f32 %v2400_v52  ;;  %v1961_v36 = vsub.f32 1.0, %v1934_v42  ;;  %v1977_v3 = vmul.f32 %v1973_v37, %v1934_v42 }
0x202f   :  { %vm1913_vm9 = vmor %vm1911_vm15, %vm1912_vm14 }
0x2030   :  { %v1908_v54 = vsub.f32 1.0, %v1907_v53 }
0x2032   :  { %v1909_v55 = vmul.f32 %v2400_v52, %v1908_v54 }
0x2034   :  { %v1910_v59 = vadd.f32 %v2400_v52, %v1909_v55 }
0x2036   :  { %v1914_v60 = vsel %vm1913_vm9, %v2400_v52, %v1910_v59 }
0x2037   :  { %v1919_v14 = vsel %vm1916_vm1, %v1918_v9, %v1914_v60  ;;  %vm2947_vm1 = vcmask 259077  }
0x2038   :  { %v1960_v32 = vsub.f32 1.0, %v1919_v14  ;;  %v1976_v40 = vmul.f32 %v1972_v35, %v1919_v14 }
0x206c   :  { %v1943_v50 = vpop.permute.xlu2 %1942 }
0x206d   :  { %v1947_v51 = vmul.f32 %v1943_v50, %v1934_v42 }
0x206f   :  { %1952 = vrot.lane.b32.xlu1 %v1947_v51, %s2446_s19 }
0x2084   :  { %v1941_v13 = vpop.permute.xlu1 %1940 }
0x2085   :  { %v1946_v15 = vmul.f32 %v1941_v13, %v1919_v14 }
0x2087   :  { %1950 = vrot.lane.b32.xlu0 %v1946_v15, %s2446_s19 }
0x20e1   :  { %v1953_v23 = vpop.permute.xlu1 %1952 }
0x20e2   :  { %v1957_v24 = vadd.f32 %v1953_v23, %v2714_v27 }
0x20e4   :  { %2401 = vtanh.f32 %v1957_v24 }
0x20ea   :  { %v2402_v25 = vpop.eup %2401 }
0x20eb   :  { %1966 = vrot.lane.b32.xlu0 %v2402_v25, %s2448_s0 }
0x20f9   :  { %v1951_v26 = vpop.permute.xlu0 %1950 }
0x20fa   :  { %v1956_v28 = vadd.f32 %v1951_v26, %v2711_v22 }
0x20fc   :  { %2403 = vtanh.f32 %v1956_v28 }
0x2102   :  { %v2404_v29 = vpop.eup %2403 }
0x2103   :  { %1964 = vrot.lane.b32.xlu2 %v2404_v29, %s2448_s0 }
0x215d   :  { %v1965_v38 = vpop.permute.xlu2 %1964  ;;  %v1967_v39 = vpop.permute.xlu0 %1966 }
0x215e   :  { %v1970_v2 = vmul.f32 %v1965_v38, %v1960_v32  ;;  %v1971_v41 = vmul.f32 %v1967_v39, %v1961_v36 }
0x2160   :  { %v2858_v62 = vadd.f32 %v1976_v40, %v1970_v2  ;;  %v2860_v16 = vadd.f32 %v1977_v3, %v1971_v41 }
0x2162   :  { %v1990_v18 = vrot.slane %v2858_v62, 6  ;;  %v1991_v61 = vrot.slane %v2860_v16, 5 }
0x2164   :  { %v1992_v0 = vsel %vm195_vm10, %v1991_v61, %v1990_v18 }
0x2165   :  { %1993 = vrot.lane.b32.xlu1 %v1992_v0, %s2448_s0 }
0x21d7   :  { %v1994_v20 = vpop.permute.xlu1 %1993 }
0x21d8   :  { %2208 = vmatmul.msk.f32.vlgmr.msra.gmra.mxu3 %vm72_vm11, %v1994_v20 }
0x225b   :  { %v2014_v21 = vpop.f32.mrf.mxu3 }
0x225c   :  { %v2062_v1 = vadd.f32 %v2014_v21, %v2706_v12  ;;  %v2018_v4 = vrot.slane %v2014_v21, 1  ;;  %v2019_v49 = vrot.slane %v2014_v21, 2 }
0x225e   :  { %v2064_v30 = vrot.slane %v2062_v1, 1  ;;  %v2065_v44 = vrot.slane %v2062_v1, 2  ;;  %v2022_v45 = vadd.f32 %v2018_v4, %v2711_v22  ;;  %v2023_v11 = vadd.f32 %v2019_v49, %v2714_v27 }
0x2260   :  { %2068 = vrot.lane.b32.xlu0 %v2065_v44, %s2446_s19  ;;  %2066 = vrot.lane.b32.xlu2 %v2064_v30, %s2446_s19  ;;  %v2209_v46 = vmul.f32 -1.442695, %v2022_v45  ;;  %v2210_v50 = vmul.f32 -1.442695, %v2023_v11 }
0x2262   :  { %2405 = vpow2.f32 %v2209_v46  ;;  %v2121_v46 = vld [vmem:[#allocation3 + $0x90] sm:$0xff] }
0x2263   :  { %2142 = vmatpush.msra.mxu0 %v2121_v46 }
0x2268   :  { %v2406_v47 = vpop.eup %2405 }
0x2269   :  { %v2030_v48 = vadd.f32 1.0, %v2406_v47  ;;  %v2119_v47 = vld [vmem:[#allocation3 + $0x80] sm:$0xff] }
0x226b   :  { %2407 = vrcp.f32 %v2030_v48  ;;  %v2043_v55 = vand.u32 2147483648, %v2030_v48  ;;  %vm2037_vm7 = vweird.f32 %v2030_v48  ;;  %v2041_v59 = vand.u32 2147483647, %v2030_v48 }
0x226c   :  { %2409 = vpow2.f32 %v2210_v50 }
0x226d   :  { %v2044_v5 = vor.u32 1.1754944e-38, %v2043_v55  ;;  %vm2042_vm12 = vcmp.eq.f32.partialorder %v2041_v59, 8.507059e+37 }
0x2271   :  { %v2408_v43 = vpop.eup %2407 }
0x2272   :  { %v2033_v12 = vmul.f32 %v2408_v43, %v2030_v48  ;;  %v2410_v51 = vpop.eup %2409  ;;  %vm2038_vm10 = vweird.f32 %v2408_v43  ;;  %v2118_v48 = vld [vmem:[#allocation3 + $0x78] sm:$0xff] }
0x2273   :  { %v2031_v53 = vadd.f32 1.0, %v2410_v51  ;;  %vm2039_vm8 = vmor %vm2037_vm7, %vm2038_vm10 }
0x2274   :  { %v2034_v42 = vsub.f32 1.0, %v2033_v12 }
0x2275   :  { %2411 = vrcp.f32 %v2031_v53  ;;  %v2058_v26 = vand.u32 2147483648, %v2031_v53  ;;  %vm2052_vm14 = vweird.f32 %v2031_v53  ;;  %v2056_v28 = vand.u32 2147483647, %v2031_v53 }
0x2276   :  { %v2035_v52 = vmul.f32 %v2408_v43, %v2034_v42  ;;  %v2224_v42 = vld [vmem:[#allocation3 + $0x98] ss:$0 sm:$0xff] }
0x2277   :  { %v2059_v32 = vor.u32 1.1754944e-38, %v2058_v26  ;;  %vm2057_vm9 = vcmp.eq.f32.partialorder %v2056_v28, 8.507059e+37 }
0x2278   :  { %v2036_v54 = vadd.f32 %v2408_v43, %v2035_v52 }
0x227a   :  { %v2040_v63 = vsel %vm2039_vm8, %v2408_v43, %v2036_v54 }
0x227b   :  { %v2872_v9 = vsel %vm2042_vm12, %v2044_v5, %v2040_v63  ;;  %v2412_v14 = vpop.eup %2411 }
0x227c   :  { %v2048_v15 = vmul.f32 %v2412_v14, %v2031_v53  ;;  %vm2053_vm13 = vweird.f32 %v2412_v14 }
0x227d   :  { %vm2054_vm15 = vmor %vm2052_vm14, %vm2053_vm13 }
0x227e   :  { %v2049_v23 = vsub.f32 1.0, %v2048_v15 }
0x2280   :  { %v2050_v24 = vmul.f32 %v2412_v14, %v2049_v23 }
0x2282   :  { %v2051_v25 = vadd.f32 %v2412_v14, %v2050_v24 }
0x2284   :  { %v2055_v29 = vsel %vm2054_vm15, %v2412_v14, %v2051_v25 }
0x2285   :  { %v2060_v36 = vsel %vm2057_vm9, %v2059_v32, %v2055_v29 }
0x22ba   :  { %v2067_v60 = vpop.permute.xlu2 %2066 }
0x22bb   :  { %v2072_v13 = vmul.f32 %v2067_v60, %v2872_v9 }
0x22bd   :  { %2076 = vrot.lane.b32.xlu1 %v2072_v13, %s2446_s19 }
0x22d2   :  { %v2069_v35 = vpop.permute.xlu0 %2068 }
0x22d3   :  { %v2073_v37 = vmul.f32 %v2069_v35, %v2060_v36 }
0x22d5   :  { %2078 = vrot.lane.b32.xlu2 %v2073_v37, %s2446_s19 }
0x22dd   :  { %1231 = vrot.lane.b32.xlu2 %v2726_v10, %s2448_s0 }
0x22e5   :  { %1604 = vrot.lane.b32.xlu2 %v2792_v6, %s2448_s0 }
0x22ed   :  { %1982 = vrot.lane.b32.xlu2 %v2858_v62, %s2448_s0 }
0x22f5   :  { %1355 = vrot.lane.b32.xlu2 %v2750_v8, %s2448_s0 }
0x22fd   :  { %1732 = vrot.lane.b32.xlu2 %v2814_v17, %s2448_s0  ;;  %v2099_v17 = vrot.slane %v2860_v16, 7 }
0x22ff   :  { %v2103_v18 = vmul.f32 %v2099_v17, %v2060_v36 }
0x232f   :  { %v2079_v38 = vpop.permute.xlu2 %2078  ;;  %v2077_v39 = vpop.permute.xlu1 %2076 }
0x2330   :  { %v2083_v40 = vadd.f32 %v2079_v38, %v2714_v27  ;;  %v2082_v2 = vadd.f32 %v2077_v39, %v2711_v22 }
0x2332   :  { %2413 = vtanh.f32 %v2083_v40 }
0x2333   :  { %2415 = vtanh.f32 %v2082_v2 }
0x2337   :  { %v1232_v10 = vpop.permute.xlu2 %1231 }
0x2338   :  { %v2414_v3 = vpop.eup %2413  ;;  %1237 = vst.msk [vmem:[#allocation2] sm:$0x1] %vm191_vm0, %v1232_v10 }
0x2339   :  { %v2416_v6 = vpop.eup %2415  ;;  %2092 = vrot.lane.b32.xlu1 %v2414_v3, %s2448_s0 }
0x233a   :  { %2090 = vrot.lane.b32.xlu0 %v2416_v6, %s2448_s0 }
0x233f   :  { %v1605_v8 = vpop.permute.xlu2 %1604 }
0x2340   :  { %1610 = vst.msk [vmem:[#allocation2] sm:$0x8] %vm568_vm2, %v1605_v8 }
0x2341   :  { %1478 = vrot.lane.b32.xlu1 %v2770_v57, %s2448_s0 }
0x2342   :  { %1353 = vrot.lane.b32.xlu0 %v2748_v31, %s2448_s0  ;;  %v2087_v31 = vsub.f32 1.0, %v2060_v36 }
0x2347   :  { %v1983_v22 = vpop.permute.xlu2 %1982 }
0x2348   :  { %1988 = vst.msk [vmem:[#allocation2] sm:$0x40] %vm949_vm3, %v1983_v22 }
0x2349   :  { %1856 = vrot.lane.b32.xlu1 %v2836_v33, %s2448_s0  ;;  %v2098_v33 = vrot.slane %v2858_v62, 7 }
0x234a   :  { %1730 = vrot.lane.b32.xlu0 %v2816_v19, %s2448_s0  ;;  %v2086_v19 = vsub.f32 1.0, %v2872_v9 }
0x234b   :  { %v2102_v61 = vmul.f32 %v2098_v33, %v2872_v9 }
0x234f   :  { %v1356_v27 = vpop.permute.xlu2 %1355 }
0x2350   :  { %1360 = vst.msk [vmem:[#allocation2 + $0x8] sm:$0x2] %vm315_vm4, %v1356_v27 }
0x2351   :  { %1233 = vrot.lane.b32.xlu1 %v2723_v56, %s2448_s0 }
0x2352   :  { %1480 = vrot.lane.b32.xlu0 %v2772_v58, %s2448_s0 }
0x2357   :  { %v1733_v57 = vpop.permute.xlu2 %1732 }
0x2358   :  { %1737 = vst.msk [vmem:[#allocation2 + $0x8] sm:$0x10] %vm695_vm5, %v1733_v57 }
0x2359   :  { %1606 = vrot.lane.b32.xlu1 %v2794_v7, %s2448_s0 }
0x2361   :  { %1984 = vrot.lane.b32.xlu1 %v2860_v16, %s2448_s0 }
0x23ab   :  { %v2093_v56 = vpop.permute.xlu1 %2092 }
0x23ac   :  { %v2091_v41 = vpop.permute.xlu0 %2090  ;;  %v2097_v58 = vmul.f32 %v2093_v56, %v2087_v31 }
0x23ad   :  { %v2096_v0 = vmul.f32 %v2091_v41, %v2086_v19 }
0x23ae   :  { %v2105_v20 = vadd.f32 %v2103_v18, %v2097_v58 }
0x23af   :  { %v2104_v21 = vadd.f32 %v2102_v61, %v2096_v0 }
0x23b0   :  { %2110 = vrot.lane.b32.xlu2 %v2105_v20, %s2448_s0 }
0x23b1   :  { %2108 = vrot.lane.b32.xlu0 %v2104_v21, %s2448_s0 }
0x23b3   :  { %v1479_v7 = vpop.permute.xlu1 %1478 }
0x23b4   :  { %v1354_v1 = vpop.permute.xlu0 %1353  ;;  %1484 = vst.msk [vmem:[#allocation2] sm:$0x4] %vm441_vm6, %v1479_v7 }
0x23b5   :  { %1359 = vst.msk [vmem:[#allocation2] sm:$0x2] %vm315_vm4, %v1354_v1  ;;  %vm2948_vm4 = vcmask 261127  }
0x23b9   :  { %1858 = vrot.lane.b32.xlu0 %v2838_v34, %s2448_s0  ;;  %v2120_v34 = vld [vmem:[#allocation3 + $0x88] sm:$0xff] }
0x23ba   :  { %2143 = vmatpush.msra.mxu0 %v2120_v34 }
0x23bb   :  { %v1857_v62 = vpop.permute.xlu1 %1856 }
0x23bc   :  { %v1731_v16 = vpop.permute.xlu0 %1730  ;;  %1862 = vst.msk [vmem:[#allocation2] sm:$0x20] %vm2947_vm1, %v1857_v62  ;;  %2144 = vmatpush.msra.mxu0 %v2119_v47 }
0x23bd   :  { %1736 = vst.msk [vmem:[#allocation2] sm:$0x10] %vm695_vm5, %v1731_v16 }
0x23be   :  { %2145 = vmatpush.msra.mxu0 %v2118_v48 }
0x23c3   :  { %v1234_v30 = vpop.permute.xlu1 %1233 }
0x23c4   :  { %v1481_v44 = vpop.permute.xlu0 %1480  ;;  %1238 = vst.msk [vmem:[#allocation2 + $0x8] sm:$0x1] %vm191_vm0, %v1234_v30  ;;  %vm2949_vm0 = vmmov %vm2948_vm4 }
0x23c5   :  { %1485 = vst.msk [vmem:[#allocation2 + $0x8] sm:$0x4] %vm441_vm6, %v1481_v44 }
0x23cb   :  { %v1607_v4 = vpop.permute.xlu1 %1606 }
0x23cc   :  { %1611 = vst.msk [vmem:[#allocation2 + $0x8] sm:$0x8] %vm568_vm2, %v1607_v4  ;;  %vm2950_vm2 = vmmov %vm2947_vm1 }
0x23d3   :  { %v1985_v45 = vpop.permute.xlu1 %1984 }
0x23d4   :  { %1989 = vst.msk [vmem:[#allocation2 + $0x8] sm:$0x40] %vm949_vm3, %v1985_v45  ;;  %vm2951_vm3 = vcmask 31744  }
0x23d5   :  { %vm2952_vm5 = vmmov %vm2951_vm3 }
0x240a   :  { %v2111_v49 = vpop.permute.xlu2 %2110 }
0x240b   :  { %2115 = vst.msk [vmem:[#allocation2 + $0x8] sm:$0x80] %vm2948_vm4, %v2111_v49 }
0x2423   :  { %v2109_v11 = vpop.permute.xlu0 %2108 }
0x2424   :  { %2114 = vst.msk [vmem:[#allocation2] sm:$0x80] %vm2949_vm0, %v2109_v11 }
0x242b   :  { %v1859_v43 = vpop.permute.xlu0 %1858  ;;  %v2116_v50 = vld [vmem:[#allocation2] sm:$0xff] }
0x242c   :  { %1863 = vst.msk [vmem:[#allocation2 + $0x8] sm:$0x20] %vm2950_vm2, %v1859_v43  ;;  %2211 = vmatmul.msk.f32.vlgmr.msra.gmra.mxu0 %vm72_vm11, %v2116_v50 }
0x2433   :  { %v2117_v12 = vld [vmem:[#allocation2 + $0x8] sm:$0xff] }
0x2434   :  { %2212 = vmatmul.msk.f32.gmra.mxu0 %vm72_vm11, %v2117_v12 }
0x24a9   :  { %v2147_v51 = vpop.f32.mrf.mxu0 }
0x24aa   :  { %v2148_v52 = vadd.f32 %v2224_v42, %v2147_v51 }
0x24ac   :  { %2153 = vst.msk [vmem:[%s2943_s2] sm:$0xff] %vm2951_vm3, %v2148_v52 }
0x24b1   :  { %v2150_v53 = vpop.f32.mrf.mxu0 }
0x24b2   :  { %v2151_v54 = vadd.f32 %v2224_v42, %v2150_v53 }
0x24b4   :  { %2154 = vst.msk [vmem:[%s2943_s2 + $0x8] sm:$0xff] %vm2952_vm5, %v2151_v54 }
0x24b5   :  { %2159 = vsyncpa [#allocation4], 1 }

</bundles_post_ra>
